<compile_context>
chip_gen: v5e
topology: v5e:2x2
jax: 0.10.0
libtpu: 0.0.40
codegen_flags: <defaults>
</compile_context>

<pallas_src>
import math
import functools
import itertools

import jax
import jax.numpy as jnp
from jax.experimental import pallas as pl
from jax.experimental.pallas import tpu as pltpu

NEG_INF = -1e30
LN_EPS = 1e-5
COMPUTE_DTYPE = jnp.bfloat16   # MXU operand / boundary activation dtype; accumulation stays f32


# ----------------------------- helpers --------------------------------------

def _round_up(x, m):
    return (x + m - 1) // m * m


def _blocking(dim, target):
    """Return (block, padded_dim): full dim if small, else `target` (dim padded to a multiple)."""
    if dim <= target:
        return dim, dim
    return target, _round_up(dim, target)


def _pad_rows(x, rows):
    if x.shape[0] == rows:
        return x
    pad = [(0, rows - x.shape[0])] + [(0, 0)] * (x.ndim - 1)
    return jnp.pad(x, pad)


def _pad2(x, rows, cols):
    r, c = x.shape
    if r == rows and c == cols:
        return x
    return jnp.pad(x, ((0, rows - r), (0, cols - c)))


def _pad_seq(x, s_new, value=0.0):
    if x.shape[1] == s_new:
        return x
    return jnp.pad(x, ((0, 0), (0, s_new - x.shape[1]), (0, 0)), constant_values=value)


def _layernorm_f32(y, gamma, beta, eps):
    mean = jnp.mean(y, axis=-1, keepdims=True)
    var = jnp.mean(jnp.square(y - mean), axis=-1, keepdims=True)
    return (y - mean) * jax.lax.rsqrt(var + eps) * gamma + beta


def _compiler_params(semantics, blocks, scratch_bytes=0):
    """vmem_limit_bytes from actual per-step block footprint (x2 double-buffering) + headroom."""
    block_bytes = sum(math.prod(shape) * jnp.dtype(dt).itemsize for shape, dt in blocks)
    limit = 2 * block_bytes + scratch_bytes + (4 << 20)
    limit = int(min(max(limit, 8 << 20), 64 << 20))       # v7x has 64 MiB/TC physical
    return pltpu.CompilerParams(dimension_semantics=semantics, vmem_limit_bytes=limit)


# ----------------------- tiled NT matmul (tied logits head) ------------------

def _matmul_nt_kernel(x_ref, w_ref, o_ref, acc_ref):
    @pl.when(pl.program_id(2) == 0)
    def _():
        acc_ref[...] = jnp.zeros_like(acc_ref)

    acc_ref[...] += jax.lax.dot_general(
        x_ref[...], w_ref[...],
        dimension_numbers=(((1,), (1,)), ((), ())),
        preferred_element_type=jnp.float32)

    @pl.when(pl.program_id(2) == pl.num_programs(2) - 1)
    def _():
        o_ref[...] = acc_ref[...].astype(o_ref.dtype)


def pallas_matmul_nt(x, w, *, tm=512, tn=512, tk=512):
    """x: [M, K] bf16, w: [N, K] bf16 -> x @ w.T : [M, N] f32.  w.T never materialized in HBM."""
    M, K = x.shape
    N, K2 = w.shape
    assert K == K2
    bm, Mp = _blocking(M, tm)
    bn, Np = _blocking(N, tn)
    bk, Kp = _blocking(K, tk)
    xp = _pad2(x, Mp, Kp)
    wp = _pad2(w, Np, Kp)
    cp = _compiler_params(
        ("parallel", "parallel", "arbitrary"),
        [((bm, bk), x.dtype), ((bn, bk), w.dtype), ((bm, bn), jnp.float32)],
        scratch_bytes=bm * bn * 4)
    out = pl.pallas_call(
        _matmul_nt_kernel,
        out_shape=jax.ShapeDtypeStruct((Mp, Np), jnp.float32),
        grid=(Mp // bm, Np // bn, Kp // bk),
        in_specs=[pl.BlockSpec((bm, bk), lambda i, j, k: (i, k)),
                  pl.BlockSpec((bn, bk), lambda i, j, k: (j, k))],
        out_specs=pl.BlockSpec((bm, bn), lambda i, j, k: (i, j)),
        scratch_shapes=[pltpu.VMEM((bm, bn), jnp.float32)],
        compiler_params=cp,
    )(xp, wp)
    return out[:M, :N]


# -------------- row-gridded linear, multi-output split (Q|K|V, K|V) ----------

def _linear_split_kernel(x_ref, w_ref, b_ref, *o_refs):
    acc = jnp.dot(x_ref[...], w_ref[...], preferred_element_type=jnp.float32) + b_ref[...]
    n = acc.shape[-1] // len(o_refs)
    for i, o_ref in enumerate(o_refs):
        o_ref[...] = acc[:, i * n:(i + 1) * n].astype(o_ref.dtype)


def pallas_linear_split(x, w, b, n_out, *, block_rows=256):
    """x [M,K] @ w [K,N] + b, one matmul, split into n_out lane-contiguous bf16 outputs [M, N/n_out]."""
    M, K = x.shape
    N = w.shape[1]
    n = N // n_out
    bm, Mp = _blocking(M, block_rows)
    cp = _compiler_params(
        ("parallel",),
        [((bm, K), x.dtype), ((K, N), w.dtype), ((1, N), jnp.float32)]
        + [((bm, n), COMPUTE_DTYPE)] * n_out)
    outs = pl.pallas_call(
        _linear_split_kernel,
        out_shape=tuple(jax.ShapeDtypeStruct((Mp, n), COMPUTE_DTYPE) for _ in range(n_out)),
        grid=(Mp // bm,),
        in_specs=[pl.BlockSpec((bm, K), lambda i: (i, 0)),
                  pl.BlockSpec((K, N), lambda i: (0, 0)),
                  pl.BlockSpec((1, N), lambda i: (0, 0))],
        out_specs=tuple(pl.BlockSpec((bm, n), lambda i: (i, 0)) for _ in range(n_out)),
        compiler_params=cp,
    )(_pad_rows(x, Mp), w, b.reshape(1, N))
    return tuple(o[:M] for o in outs)


# -------------- linear + bias + residual-add + LayerNorm epilogue ------------

def _linear_res_ln_kernel(x_ref, w_ref, b_ref, r_ref, g_ref, bb_ref, o_ref, *, eps):
    acc = jnp.dot(x_ref[...], w_ref[...], preferred_element_type=jnp.float32)
    y = acc + b_ref[...] + r_ref[...].astype(jnp.float32)
    o_ref[...] = _layernorm_f32(y, g_ref[...], bb_ref[...], eps).astype(o_ref.dtype)


def pallas_linear_residual_ln(x, w, b, res, gamma, beta, *, block_rows=256, eps=LN_EPS):
    """LayerNorm(res + x @ w + b).  x, res: [M, D] bf16; w: [D, D] bf16 -> bf16."""
    M, K = x.shape
    N = w.shape[1]
    bm, Mp = _blocking(M, block_rows)
    cp = _compiler_params(
        ("parallel",),
        [((bm, K), x.dtype), ((K, N), w.dtype), ((1, N), jnp.float32),
         ((bm, N), res.dtype), ((1, N), jnp.float32), ((1, N), jnp.float32),
         ((bm, N), COMPUTE_DTYPE)])
    out = pl.pallas_call(
        functools.partial(_linear_res_ln_kernel, eps=eps),
        out_shape=jax.ShapeDtypeStruct((Mp, N), COMPUTE_DTYPE),
        grid=(Mp // bm,),
        in_specs=[pl.BlockSpec((bm, K), lambda i: (i, 0)),
                  pl.BlockSpec((K, N), lambda i: (0, 0)),
                  pl.BlockSpec((1, N), lambda i: (0, 0)),
                  pl.BlockSpec((bm, N), lambda i: (i, 0)),
                  pl.BlockSpec((1, N), lambda i: (0, 0)),
                  pl.BlockSpec((1, N), lambda i: (0, 0))],
        out_specs=pl.BlockSpec((bm, N), lambda i: (i, 0)),
        compiler_params=cp,
    )(_pad_rows(x, Mp), w, b.reshape(1, N), _pad_rows(res, Mp),
      gamma.reshape(1, N), beta.reshape(1, N))
    return out[:M]


# -------- FFN, F-chunked (bounded VMEM) + residual + LayerNorm finalize ------

def _ffn_res_ln_kernel(x_ref, w1_ref, b1_ref, w2_ref, b2_ref, g_ref, bb_ref, o_ref, acc_ref, *, eps):
    f = pl.program_id(1)

    @pl.when(f == 0)
    def _():
        acc_ref[...] = jnp.zeros_like(acc_ref)

    x = x_ref[...]                                                       # [bm, D] bf16
    h = jnp.dot(x, w1_ref[...], preferred_element_type=jnp.float32) + b1_ref[...]
    h = jnp.maximum(h, 0.0)                                              # ReLU (PyTorch default)
    acc_ref[...] += jnp.dot(h.astype(COMPUTE_DTYPE), w2_ref[...],
                            preferred_element_type=jnp.float32)

    @pl.when(f == pl.num_programs(1) - 1)
    def _():
        # broadcasts of b2/gamma/beta happen once per row tile (finalize only)
        y = acc_ref[...] + b2_ref[...] + x.astype(jnp.float32)           # residual
        o_ref[...] = _layernorm_f32(y, g_ref[...], bb_ref[...], eps).astype(o_ref.dtype)


def pallas_ffn_residual_ln(x, w1, b1, w2, b2, gamma, beta, *, block_rows=256, f_chunk=512, eps=LN_EPS):
    """LayerNorm(x + relu(x@W1 + b1) @ W2 + b2), F-chunked so weights are never fully resident."""
    M, D = x.shape
    F = w1.shape[1]
    bm, Mp = _blocking(M, block_rows)
    bf, Fp = _blocking(F, f_chunk)
    w1p = _pad2(w1, D, Fp)
    b1p = jnp.pad(b1, (0, Fp - F)).reshape(1, Fp)
    w2p = _pad2(w2, Fp, D)
    cp = _compiler_params(
        ("parallel", "arbitrary"),
        [((bm, D), x.dtype), ((D, bf), w1.dtype), ((1, bf), jnp.float32),
         ((bf, D), w2.dtype), ((1, D), jnp.float32), ((1, D), jnp.float32),
         ((1, D), jnp.float32), ((bm, D), COMPUTE_DTYPE)],
        scratch_bytes=bm * D * 4)
    out = pl.pallas_call(
        functools.partial(_ffn_res_ln_kernel, eps=eps),
        out_shape=jax.ShapeDtypeStruct((Mp, D), COMPUTE_DTYPE),
        grid=(Mp // bm, Fp // bf),
        in_specs=[pl.BlockSpec((bm, D), lambda i, f: (i, 0)),
                  pl.BlockSpec((D, bf), lambda i, f: (0, f)),
                  pl.BlockSpec((1, bf), lambda i, f: (0, f)),
                  pl.BlockSpec((bf, D), lambda i, f: (f, 0)),
                  pl.BlockSpec((1, D), lambda i, f: (0, 0)),
                  pl.BlockSpec((1, D), lambda i, f: (0, 0)),
                  pl.BlockSpec((1, D), lambda i, f: (0, 0))],
        out_specs=pl.BlockSpec((bm, D), lambda i, f: (i, 0)),
        scratch_shapes=[pltpu.VMEM((bm, D), jnp.float32)],
        compiler_params=cp,
    )(_pad_rows(x, Mp), w1p, b1p, w2p, b2.reshape(1, D),
      gamma.reshape(1, D), beta.reshape(1, D))
    return out[:M]


# ----------------------------- plain LayerNorm -------------------------------

def _ln_kernel(x_ref, g_ref, b_ref, o_ref, *, eps):
    y = x_ref[...].astype(jnp.float32)
    o_ref[...] = _layernorm_f32(y, g_ref[...], b_ref[...], eps).astype(o_ref.dtype)


def pallas_layernorm(x, gamma, beta, *, block_rows=256, eps=LN_EPS):
    M, D = x.shape
    bm, Mp = _blocking(M, block_rows)
    cp = _compiler_params(
        ("parallel",),
        [((bm, D), x.dtype), ((1, D), jnp.float32), ((1, D), jnp.float32),
         ((bm, D), COMPUTE_DTYPE)])
    out = pl.pallas_call(
        functools.partial(_ln_kernel, eps=eps),
        out_shape=jax.ShapeDtypeStruct((Mp, D), COMPUTE_DTYPE),
        grid=(Mp // bm,),
        in_specs=[pl.BlockSpec((bm, D), lambda i: (i, 0)),
                  pl.BlockSpec((1, D), lambda i: (0, 0)),
                  pl.BlockSpec((1, D), lambda i: (0, 0))],
        out_specs=pl.BlockSpec((bm, D), lambda i: (i, 0)),
        compiler_params=cp,
    )(_pad_rows(x, Mp), gamma.reshape(1, D), beta.reshape(1, D))
    return out[:M]


# --------------------- flash attention (online softmax) ----------------------
# grid = (B, q_tiles, kv_tiles); per-(b,q-tile) m/l/acc scratch persists across the kv axis.
# Full feature dim stays on lanes; the causal part of the mask is built in-kernel from iota;
# key-padding bias is one [B,1,S] row (never broadcast per head in HBM).
# TODO(synk): move to a head-major layout (batched dot over heads) to remove the per-head
# lane slicing + final concat, which cost XLU relayouts when d_head is not 128-aligned.

def _flash_attn_kernel(q_ref, k_ref, v_ref, bias_ref, o_ref,
                       m_scr, l_scr, acc_scr, *, num_heads, d_head, scale, causal):
    ki = pl.program_id(2)

    @pl.when(ki == 0)
    def _():
        m_scr[...] = jnp.full_like(m_scr, -jnp.inf)
        l_scr[...] = jnp.zeros_like(l_scr)
        acc_scr[...] = jnp.zeros_like(acc_scr)

    q = q_ref[0]                                      # [tq, D] bf16
    k = k_ref[0]                                      # [tk, D] bf16
    v = v_ref[0]                                      # [tk, D] bf16
    tq, tk = q.shape[0], k.shape[0]

    add = jnp.broadcast_to(bias_ref[0], (tq, tk))     # key-padding bias (shared by heads), f32
    if causal:
        row = jax.lax.broadcasted_iota(jnp.int32, (tq, tk), 0) + pl.program_id(1) * tq
        col = jax.lax.broadcasted_iota(jnp.int32, (tq, tk), 1) + ki * tk
        add = add + jnp.where(col > row, NEG_INF, 0.0)

    for h in range(num_heads):
        lo = h * d_head
        qh = q[:, lo:lo + d_head]
        kh = k[:, lo:lo + d_head]
        vh = v[:, lo:lo + d_head]
        s = jax.lax.dot_general(qh, kh, (((1,), (1,)), ((), ())),
                                preferred_element_type=jnp.float32) * scale + add
        m_prev = m_scr[h]                                                  # [tq, 1]
        m_new = jnp.maximum(m_prev, jnp.max(s, axis=-1, keepdims=True))
        alpha = jnp.exp(m_prev - m_new)
        p = jnp.exp(s - m_new)
        l_scr[h] = alpha * l_scr[h] + jnp.sum(p, axis=-1, keepdims=True)
        acc_scr[h] = alpha * acc_scr[h] + jnp.dot(p.astype(v.dtype), vh,
                                                  preferred_element_type=jnp.float32)
        m_scr[h] = m_new

    @pl.when(ki == pl.num_programs(2) - 1)
    def _():
        outs = [acc_scr[h] * pl.reciprocal(l_scr[h], approx=True) for h in range(num_heads)]
        o_ref[0] = jnp.concatenate(outs, axis=-1).astype(o_ref.dtype)      # one lane-dense store


def pallas_flash_attention(q, k, v, bias, num_heads, causal, *, q_tile=256, kv_tile=256):
    """q: [B, Sq, D]; k, v: [B, Sk, D] (bf16); bias: [B, 1, Sk] additive f32 -> [B, Sq, D] bf16."""
    B, Sq, D = q.shape
    Sk = k.shape[1]
    d_head = D // num_heads
    tq, Sqp = _blocking(Sq, q_tile)
    tk, Skp = _blocking(Sk, kv_tile)
    qp = _pad_seq(q, Sqp)
    kp = _pad_seq(k, Skp)
    vp = _pad_seq(v, Skp)
    biasp = jnp.pad(bias, ((0, 0), (0, 0), (0, Skp - Sk)), constant_values=NEG_INF)

    scratch_bytes = (2 * num_heads * tq + num_heads * tq * d_head) * 4
    cp = _compiler_params(
        ("parallel", "parallel", "arbitrary"),
        [((1, tq, D), q.dtype), ((1, tk, D), k.dtype), ((1, tk, D), v.dtype),
         ((1, 1, tk), jnp.float32), ((1, tq, D), COMPUTE_DTYPE)],
        scratch_bytes=scratch_bytes)
    kernel = functools.partial(_flash_attn_kernel, num_heads=num_heads, d_head=d_head,
                               scale=1.0 / math.sqrt(d_head), causal=causal)
    out = pl.pallas_call(
        kernel,
        out_shape=jax.ShapeDtypeStruct((B, Sqp, D), COMPUTE_DTYPE),
        grid=(B, Sqp // tq, Skp // tk),
        in_specs=[pl.BlockSpec((1, tq, D), lambda b, qi, ki: (b, qi, 0)),
                  pl.BlockSpec((1, tk, D), lambda b, qi, ki: (b, ki, 0)),
                  pl.BlockSpec((1, tk, D), lambda b, qi, ki: (b, ki, 0)),
                  pl.BlockSpec((1, 1, tk), lambda b, qi, ki: (b, 0, ki))],
        out_specs=pl.BlockSpec((1, tq, D), lambda b, qi, ki: (b, qi, 0)),
        scratch_shapes=[pltpu.VMEM((num_heads, tq, 1), jnp.float32),
                        pltpu.VMEM((num_heads, tq, 1), jnp.float32),
                        pltpu.VMEM((num_heads, tq, d_head), jnp.float32)],
        compiler_params=cp,
    )(qp, kp, vp, biasp)
    return out[:, :Sq, :]


# ----------------------------- model glue ------------------------------------

def self_attention_block(x, p, num_heads, kpm_add, causal, ln_g, ln_b):
    B, S, D = x.shape
    x2 = x.reshape(B * S, D)
    q, k, v = pallas_linear_split(x2, p["w_qkv"], p["b_qkv"], 3)     # fused Q|K|V projection
    attn = pallas_flash_attention(q.reshape(B, S, D), k.reshape(B, S, D), v.reshape(B, S, D),
                                  kpm_add, num_heads, causal)
    out = pallas_linear_residual_ln(attn.reshape(B * S, D), p["wo"], p["bo"],
                                    x2, ln_g, ln_b)                  # LN(x + proj(attn))
    return out.reshape(B, S, D)


def cross_attention_block(y, mem, mem_bias, p, num_heads, ln_g, ln_b):
    B, St, D = y.shape
    Ss = mem.shape[1]
    y2 = y.reshape(B * St, D)
    (q,) = pallas_linear_split(y2, p["w_q"], p["b_q"], 1)
    k, v = pallas_linear_split(mem.reshape(B * Ss, D), p["w_kv"], p["b_kv"], 2)
    attn = pallas_flash_attention(q.reshape(B, St, D), k.reshape(B, Ss, D), v.reshape(B, Ss, D),
                                  mem_bias, num_heads, causal=False)
    out = pallas_linear_residual_ln(attn.reshape(B * St, D), p["wo"], p["bo"],
                                    y2, ln_g, ln_b)
    return out.reshape(B, St, D)


def encoder_layer(x, p, num_heads, src_kpm_add):
    x = self_attention_block(x, p["self_attn"], num_heads, src_kpm_add, False,
                             p["ln1_g"], p["ln1_b"])
    B, S, D = x.shape
    x = pallas_ffn_residual_ln(x.reshape(B * S, D), p["ff_w1"], p["ff_b1"],
                               p["ff_w2"], p["ff_b2"],
                               p["ln2_g"], p["ln2_b"]).reshape(B, S, D)
    return x


def decoder_layer(y, mem, mem_bias, p, num_heads, tgt_kpm_add):
    y = self_attention_block(y, p["self_attn"], num_heads, tgt_kpm_add, True,
                             p["ln1_g"], p["ln1_b"])
    y = cross_attention_block(y, mem, mem_bias, p["cross_attn"], num_heads,
                              p["ln2_g"], p["ln2_b"])
    B, S, D = y.shape
    y = pallas_ffn_residual_ln(y.reshape(B * S, D), p["ff_w1"], p["ff_b1"],
                               p["ff_w2"], p["ff_b2"],
                               p["ln3_g"], p["ln3_b"]).reshape(B, S, D)
    return y


def sinusoidal_pe(max_len, d_model):
    position = jnp.arange(max_len, dtype=jnp.float32)[:, None]
    div_term = jnp.exp(jnp.arange(0, d_model, 2, dtype=jnp.float32)
                       * (-math.log(10000.0) / d_model))
    pe = jnp.zeros((max_len, d_model), jnp.float32)
    pe = pe.at[:, 0::2].set(jnp.sin(position * div_term))
    pe = pe.at[:, 1::2].set(jnp.cos(position * div_term))
    return pe


def transformer_forward(params, src_tokens, tgt_tokens, num_heads, pad_idx=0):
    emb = params["embedding"]                        # [V, D] bf16, tied with output projection
    d_model = emb.shape[1]
    B, Ss = src_tokens.shape
    _, St = tgt_tokens.shape
    scale = math.sqrt(d_model)
    pe = params["pe"]

    src = (jnp.take(emb, src_tokens, axis=0).astype(jnp.float32) * scale
           + pe[None, :Ss, :]).astype(COMPUTE_DTYPE)
    tgt = (jnp.take(emb, tgt_tokens, axis=0).astype(jnp.float32) * scale
           + pe[None, :St, :]).astype(COMPUTE_DTYPE)
    # dropout after positional encoding: identity (eval mode)

    # additive key-padding biases (0 keep / NEG_INF masked); causal part is built in-kernel.
    src_kpm_add = jnp.where(src_tokens == pad_idx, NEG_INF, 0.0).astype(jnp.float32)[:, None, :]
    tgt_kpm_add = jnp.where(tgt_tokens == pad_idx, NEG_INF, 0.0).astype(jnp.float32)[:, None, :]
    mem_bias = jnp.zeros((B, 1, Ss), jnp.float32)    # no memory mask in the reference

    x = src
    for lp in params["encoder_layers"]:
        x = encoder_layer(x, lp, num_heads, src_kpm_add)
    mem = pallas_layernorm(x.reshape(B * Ss, d_model),
                           params["enc_norm_g"], params["enc_norm_b"]).reshape(B, Ss, d_model)

    y = tgt
    for lp in params["decoder_layers"]:
        y = decoder_layer(y, mem, mem_bias, lp, num_heads, tgt_kpm_add)
    y = pallas_layernorm(y.reshape(B * St, d_model),
                         params["dec_norm_g"], params["dec_norm_b"]).reshape(B, St, d_model)

    # tied output projection (no bias): logits = y @ emb.T, contracted in-kernel against
    # emb [V, D] bf16 so the transpose is never materialized in HBM.
    V = emb.shape[0]
    logits = pallas_matmul_nt(y.reshape(B * St, d_model), emb).reshape(B, St, V)
    return logits


# ----------------------------- parameter init --------------------------------

def init_params(key, vocab_size, d_model, num_heads, n_enc, n_dec, d_ff, max_len):
    counter = itertools.count()

    def nk():
        return jax.random.fold_in(key, next(counter))

    def dense(shape, scale=0.02):
        # matmul weights pre-cast to bf16 at the boundary (f32 accumulation inside kernels)
        return (jax.random.normal(nk(), shape, jnp.float32) * scale).astype(COMPUTE_DTYPE)

    def zeros(n):
        return jnp.zeros((n,), jnp.float32)

    def ones(n):
        return jnp.ones((n,), jnp.float32)

    def self_attn_params():
        return {"w_qkv": dense((d_model, 3 * d_model)), "b_qkv": zeros(3 * d_model),
                "wo": dense((d_model, d_model)), "bo": zeros(d_model)}

    def cross_attn_params():
        return {"w_q": dense((d_model, d_model)), "b_q": zeros(d_model),
                "w_kv": dense((d_model, 2 * d_model)), "b_kv": zeros(2 * d_model),
                "wo": dense((d_model, d_model)), "bo": zeros(d_model)}

    def enc_layer_params():
        return {"self_attn": self_attn_params(),
                "ff_w1": dense((d_model, d_ff)), "ff_b1": zeros(d_ff),
                "ff_w2": dense((d_ff, d_model)), "ff_b2": zeros(d_model),
                "ln1_g": ones(d_model), "ln1_b": zeros(d_model),
                "ln2_g": ones(d_model), "ln2_b": zeros(d_model)}

    def dec_layer_params():
        p = enc_layer_params()
        p["cross_attn"] = cross_attn_params()
        p["ln3_g"] = ones(d_model)
        p["ln3_b"] = zeros(d_model)
        return p

    embedding = dense((vocab_size, d_model))
    embedding = embedding.at[0].set(0)               # padding_idx=0 row is zero (nn.Embedding)

    return {
        "embedding": embedding,                      # tied with output head (as in reference)
        "pe": sinusoidal_pe(max_len, d_model),
        "encoder_layers": [enc_layer_params() for _ in range(n_enc)],
        "decoder_layers": [dec_layer_params() for _ in range(n_dec)],
        "enc_norm_g": ones(d_model), "enc_norm_b": zeros(d_model),
        "dec_norm_g": ones(d_model), "dec_norm_b": zeros(d_model),
    }


# ----------------------------------- main -------------------------------------

if __name__ == "__main__":
    vocab_size, d_model, num_heads, d_ff, max_len = 64, 64, 4, 128, 16
    n_enc, n_dec = 2, 2
    B, Ss, St = 2, 8, 8

    key = jax.random.PRNGKey(0)
    params = init_params(key, vocab_size, d_model, num_heads, n_enc, n_dec, d_ff, max_len)

    ks, kt = jax.random.split(jax.random.fold_in(key, 10_000))
    src = jax.random.randint(ks, (B, Ss), 1, vocab_size, dtype=jnp.int32)
    tgt = jax.random.randint(kt, (B, St), 1, vocab_size, dtype=jnp.int32)
    # a couple of padding tokens (pad_idx = 0) at the tail, like real batches
    src = src.at[0, -1].set(0)
    tgt = tgt.at[1, -1].set(0)

    fwd = jax.jit(transformer_forward, static_argnames=("num_heads", "pad_idx"))
    logits = fwd(params, src, tgt, num_heads=num_heads, pad_idx=0)
    jax.block_until_ready(logits)
    assert logits.shape == (B, St, vocab_size)
    assert logits.dtype == jnp.float32
    assert bool(jnp.isfinite(logits).all())
    print("KERNEL_OK")
</pallas_src>

<mosaic_0001>
module attributes {stable_mosaic.version = 11 : i64} {
  func.func @_ffn_res_ln_kernel(%arg0: i32, %arg1: i32, %arg2: memref<16x64xbf16, #tpu.memory_space<vmem>>, %arg3: memref<64x128xbf16, #tpu.memory_space<vmem>>, %arg4: memref<1x128xf32, #tpu.memory_space<vmem>>, %arg5: memref<128x64xbf16, #tpu.memory_space<vmem>>, %arg6: memref<1x64xf32, #tpu.memory_space<vmem>>, %arg7: memref<1x64xf32, #tpu.memory_space<vmem>>, %arg8: memref<1x64xf32, #tpu.memory_space<vmem>>, %arg9: memref<16x64xbf16, #tpu.memory_space<vmem>>, %arg10: memref<16x64xf32, #tpu.memory_space<vmem>>) attributes {dimension_semantics = [#tpu.dimension_semantics<parallel>, #tpu.dimension_semantics<arbitrary>], iteration_bounds = array<i64: 1, 1>, scalar_prefetch = 0 : i64, scratch_operands = 1 : i64, tpu.core_type = #tpu.core_type<tc>, window_params = [{transform_indices = @transform_0, window_bounds = array<i64: 16, 64>}, {transform_indices = @transform_1, window_bounds = array<i64: 64, 128>}, {transform_indices = @transform_2, window_bounds = array<i64: 1, 128>}, {transform_indices = @transform_3, window_bounds = array<i64: 128, 64>}, {pipeline_mode = #tpu.pipeline_mode<synchronous>, transform_indices = @transform_4, window_bounds = array<i64: 1, 64>}, {pipeline_mode = #tpu.pipeline_mode<synchronous>, transform_indices = @transform_5, window_bounds = array<i64: 1, 64>}, {pipeline_mode = #tpu.pipeline_mode<synchronous>, transform_indices = @transform_6, window_bounds = array<i64: 1, 64>}, {transform_indices = @transform_7, window_bounds = array<i64: 16, 64>}]} {
    %c0_i32 = arith.constant 0 : i32
    %0 = arith.cmpi eq, %arg1, %c0_i32 : i32
    %1 = arith.extui %0 : i1 to i32
    %c0_i32_0 = arith.constant 0 : i32
    %2 = arith.cmpi ne, %1, %c0_i32_0 : i32
    scf.if %2 {
      %cst_16 = arith.constant 0.000000e+00 : f32
      %20 = vector.broadcast %cst_16 : f32 to vector<16x64xf32>
      %c0_17 = arith.constant 0 : index
      %c0_18 = arith.constant 0 : index
      %21 = vector.load %arg10[%c0_17, %c0_18] : memref<16x64xf32, #tpu.memory_space<vmem>>, vector<16x64xf32>
      tpu.vector_store %arg10[%c0_17, %c0_18], %20 {strides = array<i32>} : memref<16x64xf32, #tpu.memory_space<vmem>>, vector<16x64xf32>,
    } else {
    }
    %c0 = arith.constant 0 : index
    %c0_1 = arith.constant 0 : index
    %3 = vector.load %arg2[%c0, %c0_1] : memref<16x64xbf16, #tpu.memory_space<vmem>>, vector<16x64xbf16>
    %c0_2 = arith.constant 0 : index
    %c0_3 = arith.constant 0 : index
    %4 = vector.load %arg3[%c0_2, %c0_3] : memref<64x128xbf16, #tpu.memory_space<vmem>>, vector<64x128xbf16>
    %cst = arith.constant dense<0.000000e+00> : vector<16x128xf32>
    %5 = tpu.matmul %3, %4, %cst {dimension_numbers = #tpu.dot_dimension_numbers<[1], [0], [0], [1], [0, 0, 1, 1], [], []>} : vector<16x64xbf16>, vector<64x128xbf16>, vector<16x128xf32> -> vector<16x128xf32>
    %c0_4 = arith.constant 0 : index
    %c0_5 = arith.constant 0 : index
    %6 = vector.load %arg4[%c0_4, %c0_5] : memref<1x128xf32, #tpu.memory_space<vmem>>, vector<1x128xf32>
    %7 = vector.broadcast %6 : vector<1x128xf32> to vector<16x128xf32>
    %8 = arith.addf %5, %7 : vector<16x128xf32>
    %cst_6 = arith.constant 0.000000e+00 : f32
    %9 = vector.broadcast %cst_6 : f32 to vector<16x128xf32>
    %10 = arith.maximumf %8, %9 : vector<16x128xf32>
    %c0_7 = arith.constant 0 : index
    %c0_8 = arith.constant 0 : index
    %11 = vector.load %arg10[%c0_7, %c0_8] : memref<16x64xf32, #tpu.memory_space<vmem>>, vector<16x64xf32>
    %12 = arith.truncf %10 : vector<16x128xf32> to vector<16x128xbf16>
    %c0_9 = arith.constant 0 : index
    %c0_10 = arith.constant 0 : index
    %13 = vector.load %arg5[%c0_9, %c0_10] : memref<128x64xbf16, #tpu.memory_space<vmem>>, vector<128x64xbf16>
    %cst_11 = arith.constant dense<0.000000e+00> : vector<16x64xf32>
    %14 = tpu.matmul %12, %13, %cst_11 {dimension_numbers = #tpu.dot_dimension_numbers<[1], [0], [0], [1], [0, 0, 1, 1], [], []>} : vector<16x128xbf16>, vector<128x64xbf16>, vector<16x64xf32> -> vector<16x64xf32>
    %15 = arith.addf %11, %14 : vector<16x64xf32>
    %c0_12 = arith.constant 0 : index
    %c0_13 = arith.constant 0 : index
    %16 = vector.load %arg10[%c0_12, %c0_13] : memref<16x64xf32, #tpu.memory_space<vmem>>, vector<16x64xf32>
    tpu.vector_store %arg10[%c0_12, %c0_13], %15 {strides = array<i32>} : memref<16x64xf32, #tpu.memory_space<vmem>>, vector<16x64xf32>,
    %c0_i32_14 = arith.constant 0 : i32
    %17 = arith.cmpi eq, %arg1, %c0_i32_14 : i32
    %18 = arith.extui %17 : i1 to i32
    %c0_i32_15 = arith.constant 0 : i32
    %19 = arith.cmpi ne, %18, %c0_i32_15 : i32
    scf.if %19 {
      %c0_16 = arith.constant 0 : index
      %c0_17 = arith.constant 0 : index
      %20 = vector.load %arg10[%c0_16, %c0_17] : memref<16x64xf32, #tpu.memory_space<vmem>>, vector<16x64xf32>
      %c0_18 = arith.constant 0 : index
      %c0_19 = arith.constant 0 : index
      %21 = vector.load %arg6[%c0_18, %c0_19] : memref<1x64xf32, #tpu.memory_space<vmem>>, vector<1x64xf32>
      %22 = vector.broadcast %21 : vector<1x64xf32> to vector<16x64xf32>
      %23 = arith.addf %20, %22 : vector<16x64xf32>
      %24 = arith.extf %3 : vector<16x64xbf16> to vector<16x64xf32>
      %25 = arith.addf %23, %24 : vector<16x64xf32>
      %c0_20 = arith.constant 0 : index
      %c0_21 = arith.constant 0 : index
      %26 = vector.load %arg7[%c0_20, %c0_21] : memref<1x64xf32, #tpu.memory_space<vmem>>, vector<1x64xf32>
      %c0_22 = arith.constant 0 : index
      %c0_23 = arith.constant 0 : index
      %27 = vector.load %arg8[%c0_22, %c0_23] : memref<1x64xf32, #tpu.memory_space<vmem>>, vector<1x64xf32>
      %cst_24 = arith.constant dense<0.000000e+00> : vector<16xf32>
      %28 = vector.multi_reduction <add>, %25, %cst_24 [1] : vector<16x64xf32> to vector<16xf32>
      %29 = vector.shape_cast %28 : vector<16xf32> to vector<16x1xf32>
      %cst_25 = arith.constant 6.400000e+01 : f32
      %30 = vector.broadcast %cst_25 : f32 to vector<16x1xf32>
      %31 = arith.divf %29, %30 : vector<16x1xf32>
      %32 = vector.broadcast %31 : vector<16x1xf32> to vector<16x64xf32>
      %33 = arith.subf %25, %32 : vector<16x64xf32>
      %34 = arith.mulf %33, %33 : vector<16x64xf32>
      %cst_26 = arith.constant dense<0.000000e+00> : vector<16xf32>
      %35 = vector.multi_reduction <add>, %34, %cst_26 [1] : vector<16x64xf32> to vector<16xf32>
      %36 = vector.shape_cast %35 : vector<16xf32> to vector<16x1xf32>
      %cst_27 = arith.constant 6.400000e+01 : f32
      %37 = vector.broadcast %cst_27 : f32 to vector<16x1xf32>
      %38 = arith.divf %36, %37 : vector<16x1xf32>
      %39 = vector.broadcast %31 : vector<16x1xf32> to vector<16x64xf32>
      %40 = arith.subf %25, %39 : vector<16x64xf32>
      %cst_28 = arith.constant 9.99999974E-6 : f32
      %41 = vector.broadcast %cst_28 : f32 to vector<16x1xf32>
      %42 = arith.addf %38, %41 : vector<16x1xf32>
      %43 = math.rsqrt %42 : vector<16x1xf32>
      %44 = vector.broadcast %43 : vector<16x1xf32> to vector<16x64xf32>
      %45 = arith.mulf %40, %44 : vector<16x64xf32>
      %46 = vector.broadcast %26 : vector<1x64xf32> to vector<16x64xf32>
      %47 = arith.mulf %45, %46 : vector<16x64xf32>
      %48 = vector.broadcast %27 : vector<1x64xf32> to vector<16x64xf32>
      %49 = arith.addf %47, %48 : vector<16x64xf32>
      %50 = arith.truncf %49 : vector<16x64xf32> to vector<16x64xbf16>
      %c0_29 = arith.constant 0 : index
      %c0_30 = arith.constant 0 : index
      %51 = vector.load %arg9[%c0_29, %c0_30] : memref<16x64xbf16, #tpu.memory_space<vmem>>, vector<16x64xbf16>
      tpu.vector_store %arg9[%c0_29, %c0_30], %50 {strides = array<i32>} : memref<16x64xbf16, #tpu.memory_space<vmem>>, vector<16x64xbf16>,
    } else {
    }
    return
  }
  func.func @transform_0(%arg0: i32, %arg1: i32) -> (i32, i32) {
    %c0_i32 = arith.constant 0 : i32
    %c0_i32_0 = arith.constant 0 : i32
    return %arg0, %c0_i32 : i32, i32
  }
  func.func @transform_1(%arg0: i32, %arg1: i32) -> (i32, i32) {
    %c0_i32 = arith.constant 0 : i32
    %c0_i32_0 = arith.constant 0 : i32
    return %c0_i32, %arg1 : i32, i32
  }
  func.func @transform_2(%arg0: i32, %arg1: i32) -> (i32, i32) {
    %c0_i32 = arith.constant 0 : i32
    %c0_i32_0 = arith.constant 0 : i32
    return %c0_i32, %arg1 : i32, i32
  }
  func.func @transform_3(%arg0: i32, %arg1: i32) -> (i32, i32) {
    %c0_i32 = arith.constant 0 : i32
    %c0_i32_0 = arith.constant 0 : i32
    return %arg1, %c0_i32 : i32, i32
  }
  func.func @transform_4(%arg0: i32, %arg1: i32) -> (i32, i32) {
    %c0_i32 = arith.constant 0 : i32
    %c0_i32_0 = arith.constant 0 : i32
    %c0_i32_1 = arith.constant 0 : i32
    return %c0_i32, %c0_i32_0 : i32, i32
  }
  func.func @transform_5(%arg0: i32, %arg1: i32) -> (i32, i32) {
    %c0_i32 = arith.constant 0 : i32
    %c0_i32_0 = arith.constant 0 : i32
    %c0_i32_1 = arith.constant 0 : i32
    return %c0_i32, %c0_i32_0 : i32, i32
  }
  func.func @transform_6(%arg0: i32, %arg1: i32) -> (i32, i32) {
    %c0_i32 = arith.constant 0 : i32
    %c0_i32_0 = arith.constant 0 : i32
    %c0_i32_1 = arith.constant 0 : i32
    return %c0_i32, %c0_i32_0 : i32, i32
  }
  func.func @transform_7(%arg0: i32, %arg1: i32) -> (i32, i32) {
    %c0_i32 = arith.constant 0 : i32
    %c0_i32_0 = arith.constant 0 : i32
    return %arg0, %c0_i32 : i32, i32
  }
}

module attributes {stable_mosaic.version = 11 : i64} {
  func.func @_linear_split_kernel(%arg0: i32, %arg1: memref<16x64xbf16, #tpu.memory_space<vmem>>, %arg2: memref<64x192xbf16, #tpu.memory_space<vmem>>, %arg3: memref<1x192xf32, #tpu.memory_space<vmem>>, %arg4: memref<16x64xbf16, #tpu.memory_space<vmem>>, %arg5: memref<16x64xbf16, #tpu.memory_space<vmem>>, %arg6: memref<16x64xbf16, #tpu.memory_space<vmem>>) attributes {dimension_semantics = [#tpu.dimension_semantics<parallel>], iteration_bounds = array<i64: 1>, scalar_prefetch = 0 : i64, scratch_operands = 0 : i64, tpu.core_type = #tpu.core_type<tc>, window_params = [{transform_indices = @transform_0, window_bounds = array<i64: 16, 64>}, {pipeline_mode = #tpu.pipeline_mode<synchronous>, transform_indices = @transform_1, window_bounds = array<i64: 64, 192>}, {pipeline_mode = #tpu.pipeline_mode<synchronous>, transform_indices = @transform_2, window_bounds = array<i64: 1, 192>}, {transform_indices = @transform_3, window_bounds = array<i64: 16, 64>}, {transform_indices = @transform_4, window_bounds = array<i64: 16, 64>}, {transform_indices = @transform_5, window_bounds = array<i64: 16, 64>}]} {
    %c0 = arith.constant 0 : index
    %c0_0 = arith.constant 0 : index
    %0 = vector.load %arg1[%c0, %c0_0] : memref<16x64xbf16, #tpu.memory_space<vmem>>, vector<16x64xbf16>
    %c0_1 = arith.constant 0 : index
    %c0_2 = arith.constant 0 : index
    %1 = vector.load %arg2[%c0_1, %c0_2] : memref<64x192xbf16, #tpu.memory_space<vmem>>, vector<64x192xbf16>
    %cst = arith.constant dense<0.000000e+00> : vector<16x192xf32>
    %2 = tpu.matmul %0, %1, %cst {dimension_numbers = #tpu.dot_dimension_numbers<[1], [0], [0], [1], [0, 0, 1, 1], [], []>} : vector<16x64xbf16>, vector<64x192xbf16>, vector<16x192xf32> -> vector<16x192xf32>
    %c0_3 = arith.constant 0 : index
    %c0_4 = arith.constant 0 : index
    %3 = vector.load %arg3[%c0_3, %c0_4] : memref<1x192xf32, #tpu.memory_space<vmem>>, vector<1x192xf32>
    %4 = vector.broadcast %3 : vector<1x192xf32> to vector<16x192xf32>
    %5 = arith.addf %2, %4 : vector<16x192xf32>
    %6 = vector.extract_strided_slice %5 {offsets = [0, 0], sizes = [16, 64], strides = [1, 1]} : vector<16x192xf32> to vector<16x64xf32>
    %7 = arith.truncf %6 : vector<16x64xf32> to vector<16x64xbf16>
    %c0_5 = arith.constant 0 : index
    %c0_6 = arith.constant 0 : index
    %8 = vector.load %arg4[%c0_5, %c0_6] : memref<16x64xbf16, #tpu.memory_space<vmem>>, vector<16x64xbf16>
    tpu.vector_store %arg4[%c0_5, %c0_6], %7 {strides = array<i32>} : memref<16x64xbf16, #tpu.memory_space<vmem>>, vector<16x64xbf16>,
    %9 = vector.extract_strided_slice %5 {offsets = [0, 64], sizes = [16, 64], strides = [1, 1]} : vector<16x192xf32> to vector<16x64xf32>
    %10 = arith.truncf %9 : vector<16x64xf32> to vector<16x64xbf16>
    %c0_7 = arith.constant 0 : index
    %c0_8 = arith.constant 0 : index
    %11 = vector.load %arg5[%c0_7, %c0_8] : memref<16x64xbf16, #tpu.memory_space<vmem>>, vector<16x64xbf16>
    tpu.vector_store %arg5[%c0_7, %c0_8], %10 {strides = array<i32>} : memref<16x64xbf16, #tpu.memory_space<vmem>>, vector<16x64xbf16>,
    %12 = vector.extract_strided_slice %5 {offsets = [0, 128], sizes = [16, 64], strides = [1, 1]} : vector<16x192xf32> to vector<16x64xf32>
    %13 = arith.truncf %12 : vector<16x64xf32> to vector<16x64xbf16>
    %c0_9 = arith.constant 0 : index
    %c0_10 = arith.constant 0 : index
    %14 = vector.load %arg6[%c0_9, %c0_10] : memref<16x64xbf16, #tpu.memory_space<vmem>>, vector<16x64xbf16>
    tpu.vector_store %arg6[%c0_9, %c0_10], %13 {strides = array<i32>} : memref<16x64xbf16, #tpu.memory_space<vmem>>, vector<16x64xbf16>,
    return
  }
  func.func @transform_0(%arg0: i32) -> (i32, i32) {
    %c0_i32 = arith.constant 0 : i32
    %c0_i32_0 = arith.constant 0 : i32
    return %arg0, %c0_i32 : i32, i32
  }
  func.func @transform_1(%arg0: i32) -> (i32, i32) {
    %c0_i32 = arith.constant 0 : i32
    %c0_i32_0 = arith.constant 0 : i32
    %c0_i32_1 = arith.constant 0 : i32
    return %c0_i32, %c0_i32_0 : i32, i32
  }
  func.func @transform_2(%arg0: i32) -> (i32, i32) {
    %c0_i32 = arith.constant 0 : i32
    %c0_i32_0 = arith.constant 0 : i32
    %c0_i32_1 = arith.constant 0 : i32
    return %c0_i32, %c0_i32_0 : i32, i32
  }
  func.func @transform_3(%arg0: i32) -> (i32, i32) {
    %c0_i32 = arith.constant 0 : i32
    %c0_i32_0 = arith.constant 0 : i32
    return %arg0, %c0_i32 : i32, i32
  }
  func.func @transform_4(%arg0: i32) -> (i32, i32) {
    %c0_i32 = arith.constant 0 : i32
    %c0_i32_0 = arith.constant 0 : i32
    return %arg0, %c0_i32 : i32, i32
  }
  func.func @transform_5(%arg0: i32) -> (i32, i32) {
    %c0_i32 = arith.constant 0 : i32
    %c0_i32_0 = arith.constant 0 : i32
    return %arg0, %c0_i32 : i32, i32
  }
}

module attributes {stable_mosaic.version = 11 : i64} {
  func.func @_linear_res_ln_kernel(%arg0: i32, %arg1: memref<16x64xbf16, #tpu.memory_space<vmem>>, %arg2: memref<64x64xbf16, #tpu.memory_space<vmem>>, %arg3: memref<1x64xf32, #tpu.memory_space<vmem>>, %arg4: memref<16x64xbf16, #tpu.memory_space<vmem>>, %arg5: memref<1x64xf32, #tpu.memory_space<vmem>>, %arg6: memref<1x64xf32, #tpu.memory_space<vmem>>, %arg7: memref<16x64xbf16, #tpu.memory_space<vmem>>) attributes {dimension_semantics = [#tpu.dimension_semantics<parallel>], iteration_bounds = array<i64: 1>, scalar_prefetch = 0 : i64, scratch_operands = 0 : i64, tpu.core_type = #tpu.core_type<tc>, window_params = [{transform_indices = @transform_0, window_bounds = array<i64: 16, 64>}, {pipeline_mode = #tpu.pipeline_mode<synchronous>, transform_indices = @transform_1, window_bounds = array<i64: 64, 64>}, {pipeline_mode = #tpu.pipeline_mode<synchronous>, transform_indices = @transform_2, window_bounds = array<i64: 1, 64>}, {transform_indices = @transform_3, window_bounds = array<i64: 16, 64>}, {pipeline_mode = #tpu.pipeline_mode<synchronous>, transform_indices = @transform_4, window_bounds = array<i64: 1, 64>}, {pipeline_mode = #tpu.pipeline_mode<synchronous>, transform_indices = @transform_5, window_bounds = array<i64: 1, 64>}, {transform_indices = @transform_6, window_bounds = array<i64: 16, 64>}]} {
    %c0 = arith.constant 0 : index
    %c0_0 = arith.constant 0 : index
    %0 = vector.load %arg1[%c0, %c0_0] : memref<16x64xbf16, #tpu.memory_space<vmem>>, vector<16x64xbf16>
    %c0_1 = arith.constant 0 : index
    %c0_2 = arith.constant 0 : index
    %1 = vector.load %arg2[%c0_1, %c0_2] : memref<64x64xbf16, #tpu.memory_space<vmem>>, vector<64x64xbf16>
    %cst = arith.constant dense<0.000000e+00> : vector<16x64xf32>
    %2 = tpu.matmul %0, %1, %cst {dimension_numbers = #tpu.dot_dimension_numbers<[1], [0], [0], [1], [0, 0, 1, 1], [], []>} : vector<16x64xbf16>, vector<64x64xbf16>, vector<16x64xf32> -> vector<16x64xf32>
    %c0_3 = arith.constant 0 : index
    %c0_4 = arith.constant 0 : index
    %3 = vector.load %arg3[%c0_3, %c0_4] : memref<1x64xf32, #tpu.memory_space<vmem>>, vector<1x64xf32>
    %4 = vector.broadcast %3 : vector<1x64xf32> to vector<16x64xf32>
    %5 = arith.addf %2, %4 : vector<16x64xf32>
    %c0_5 = arith.constant 0 : index
    %c0_6 = arith.constant 0 : index
    %6 = vector.load %arg4[%c0_5, %c0_6] : memref<16x64xbf16, #tpu.memory_space<vmem>>, vector<16x64xbf16>
    %7 = arith.extf %6 : vector<16x64xbf16> to vector<16x64xf32>
    %8 = arith.addf %5, %7 : vector<16x64xf32>
    %c0_7 = arith.constant 0 : index
    %c0_8 = arith.constant 0 : index
    %9 = vector.load %arg5[%c0_7, %c0_8] : memref<1x64xf32, #tpu.memory_space<vmem>>, vector<1x64xf32>
    %c0_9 = arith.constant 0 : index
    %c0_10 = arith.constant 0 : index
    %10 = vector.load %arg6[%c0_9, %c0_10] : memref<1x64xf32, #tpu.memory_space<vmem>>, vector<1x64xf32>
    %cst_11 = arith.constant dense<0.000000e+00> : vector<16xf32>
    %11 = vector.multi_reduction <add>, %8, %cst_11 [1] : vector<16x64xf32> to vector<16xf32>
    %12 = vector.shape_cast %11 : vector<16xf32> to vector<16x1xf32>
    %cst_12 = arith.constant 6.400000e+01 : f32
    %13 = vector.broadcast %cst_12 : f32 to vector<16x1xf32>
    %14 = arith.divf %12, %13 : vector<16x1xf32>
    %15 = vector.broadcast %14 : vector<16x1xf32> to vector<16x64xf32>
    %16 = arith.subf %8, %15 : vector<16x64xf32>
    %17 = arith.mulf %16, %16 : vector<16x64xf32>
    %cst_13 = arith.constant dense<0.000000e+00> : vector<16xf32>
    %18 = vector.multi_reduction <add>, %17, %cst_13 [1] : vector<16x64xf32> to vector<16xf32>
    %19 = vector.shape_cast %18 : vector<16xf32> to vector<16x1xf32>
    %cst_14 = arith.constant 6.400000e+01 : f32
    %20 = vector.broadcast %cst_14 : f32 to vector<16x1xf32>
    %21 = arith.divf %19, %20 : vector<16x1xf32>
    %22 = vector.broadcast %14 : vector<16x1xf32> to vector<16x64xf32>
    %23 = arith.subf %8, %22 : vector<16x64xf32>
    %cst_15 = arith.constant 9.99999974E-6 : f32
    %24 = vector.broadcast %cst_15 : f32 to vector<16x1xf32>
    %25 = arith.addf %21, %24 : vector<16x1xf32>
    %26 = math.rsqrt %25 : vector<16x1xf32>
    %27 = vector.broadcast %26 : vector<16x1xf32> to vector<16x64xf32>
    %28 = arith.mulf %23, %27 : vector<16x64xf32>
    %29 = vector.broadcast %9 : vector<1x64xf32> to vector<16x64xf32>
    %30 = arith.mulf %28, %29 : vector<16x64xf32>
    %31 = vector.broadcast %10 : vector<1x64xf32> to vector<16x64xf32>
    %32 = arith.addf %30, %31 : vector<16x64xf32>
    %33 = arith.truncf %32 : vector<16x64xf32> to vector<16x64xbf16>
    %c0_16 = arith.constant 0 : index
    %c0_17 = arith.constant 0 : index
    %34 = vector.load %arg7[%c0_16, %c0_17] : memref<16x64xbf16, #tpu.memory_space<vmem>>, vector<16x64xbf16>
    tpu.vector_store %arg7[%c0_16, %c0_17], %33 {strides = array<i32>} : memref<16x64xbf16, #tpu.memory_space<vmem>>, vector<16x64xbf16>,
    return
  }
  func.func @transform_0(%arg0: i32) -> (i32, i32) {
    %c0_i32 = arith.constant 0 : i32
    %c0_i32_0 = arith.constant 0 : i32
    return %arg0, %c0_i32 : i32, i32
  }
  func.func @transform_1(%arg0: i32) -> (i32, i32) {
    %c0_i32 = arith.constant 0 : i32
    %c0_i32_0 = arith.constant 0 : i32
    %c0_i32_1 = arith.constant 0 : i32
    return %c0_i32, %c0_i32_0 : i32, i32
  }
  func.func @transform_2(%arg0: i32) -> (i32, i32) {
    %c0_i32 = arith.constant 0 : i32
    %c0_i32_0 = arith.constant 0 : i32
    %c0_i32_1 = arith.constant 0 : i32
    return %c0_i32, %c0_i32_0 : i32, i32
  }
  func.func @transform_3(%arg0: i32) -> (i32, i32) {
    %c0_i32 = arith.constant 0 : i32
    %c0_i32_0 = arith.constant 0 : i32
    return %arg0, %c0_i32 : i32, i32
  }
  func.func @transform_4(%arg0: i32) -> (i32, i32) {
    %c0_i32 = arith.constant 0 : i32
    %c0_i32_0 = arith.constant 0 : i32
    %c0_i32_1 = arith.constant 0 : i32
    return %c0_i32, %c0_i32_0 : i32, i32
  }
  func.func @transform_5(%arg0: i32) -> (i32, i32) {
    %c0_i32 = arith.constant 0 : i32
    %c0_i32_0 = arith.constant 0 : i32
    %c0_i32_1 = arith.constant 0 : i32
    return %c0_i32, %c0_i32_0 : i32, i32
  }
  func.func @transform_6(%arg0: i32) -> (i32, i32) {
    %c0_i32 = arith.constant 0 : i32
    %c0_i32_0 = arith.constant 0 : i32
    return %arg0, %c0_i32 : i32, i32
  }
}

module attributes {stable_mosaic.version = 11 : i64} {
  func.func @_flash_attn_kernel(%arg0: i32, %arg1: i32, %arg2: i32, %arg3: memref<1x8x64xbf16, #tpu.memory_space<vmem>>, %arg4: memref<1x8x64xbf16, #tpu.memory_space<vmem>>, %arg5: memref<1x8x64xbf16, #tpu.memory_space<vmem>>, %arg6: memref<1x1x8xf32, #tpu.memory_space<vmem>>, %arg7: memref<1x8x64xbf16, #tpu.memory_space<vmem>>, %arg8: memref<4x8x1xf32, #tpu.memory_space<vmem>>, %arg9: memref<4x8x1xf32, #tpu.memory_space<vmem>>, %arg10: memref<4x8x16xf32, #tpu.memory_space<vmem>>) attributes {dimension_semantics = [#tpu.dimension_semantics<parallel>, #tpu.dimension_semantics<parallel>, #tpu.dimension_semantics<arbitrary>], iteration_bounds = array<i64: 2, 1, 1>, scalar_prefetch = 0 : i64, scratch_operands = 3 : i64, tpu.core_type = #tpu.core_type<tc>, window_params = [{transform_indices = @transform_0, window_bounds = array<i64: 1, 8, 64>}, {transform_indices = @transform_1, window_bounds = array<i64: 1, 8, 64>}, {transform_indices = @transform_2, window_bounds = array<i64: 1, 8, 64>}, {transform_indices = @transform_3, window_bounds = array<i64: 1, 1, 8>}, {transform_indices = @transform_4, window_bounds = array<i64: 1, 8, 64>}]} {
    %c0_i32 = arith.constant 0 : i32
    %0 = arith.cmpi eq, %arg2, %c0_i32 : i32
    %1 = arith.extui %0 : i1 to i32
    %c0_i32_0 = arith.constant 0 : i32
    %2 = arith.cmpi ne, %1, %c0_i32_0 : i32
    scf.if %2 {
      %cst_102 = arith.constant 0xFF800000 : f32
      %172 = vector.broadcast %cst_102 : f32 to vector<4x8x1xf32>
      %c0_103 = arith.constant 0 : index
      %c0_104 = arith.constant 0 : index
      %c0_105 = arith.constant 0 : index
      %173 = vector.load %arg8[%c0_103, %c0_104, %c0_105] : memref<4x8x1xf32, #tpu.memory_space<vmem>>, vector<4x8x1xf32>
      tpu.vector_store %arg8[%c0_103, %c0_104, %c0_105], %172 {strides = array<i32>} : memref<4x8x1xf32, #tpu.memory_space<vmem>>, vector<4x8x1xf32>,
      %cst_106 = arith.constant 0.000000e+00 : f32
      %174 = vector.broadcast %cst_106 : f32 to vector<4x8x1xf32>
      %c0_107 = arith.constant 0 : index
      %c0_108 = arith.constant 0 : index
      %c0_109 = arith.constant 0 : index
      %175 = vector.load %arg9[%c0_107, %c0_108, %c0_109] : memref<4x8x1xf32, #tpu.memory_space<vmem>>, vector<4x8x1xf32>
      tpu.vector_store %arg9[%c0_107, %c0_108, %c0_109], %174 {strides = array<i32>} : memref<4x8x1xf32, #tpu.memory_space<vmem>>, vector<4x8x1xf32>,
      %cst_110 = arith.constant 0.000000e+00 : f32
      %176 = vector.broadcast %cst_110 : f32 to vector<4x8x16xf32>
      %c0_111 = arith.constant 0 : index
      %c0_112 = arith.constant 0 : index
      %c0_113 = arith.constant 0 : index
      %177 = vector.load %arg10[%c0_111, %c0_112, %c0_113] : memref<4x8x16xf32, #tpu.memory_space<vmem>>, vector<4x8x16xf32>
      tpu.vector_store %arg10[%c0_111, %c0_112, %c0_113], %176 {strides = array<i32>} : memref<4x8x16xf32, #tpu.memory_space<vmem>>, vector<4x8x16xf32>,
    } else {
    }
    %c0 = arith.constant 0 : index
    %c0_1 = arith.constant 0 : index
    %c0_2 = arith.constant 0 : index
    %3 = vector.load %arg3[%c0, %c0_1, %c0_2] : memref<1x8x64xbf16, #tpu.memory_space<vmem>>, vector<1x8x64xbf16>
    %4 = vector.shape_cast %3 : vector<1x8x64xbf16> to vector<8x64xbf16>
    %c0_3 = arith.constant 0 : index
    %c0_4 = arith.constant 0 : index
    %c0_5 = arith.constant 0 : index
    %5 = vector.load %arg4[%c0_3, %c0_4, %c0_5] : memref<1x8x64xbf16, #tpu.memory_space<vmem>>, vector<1x8x64xbf16>
    %6 = vector.shape_cast %5 : vector<1x8x64xbf16> to vector<8x64xbf16>
    %c0_6 = arith.constant 0 : index
    %c0_7 = arith.constant 0 : index
    %c0_8 = arith.constant 0 : index
    %7 = vector.load %arg5[%c0_6, %c0_7, %c0_8] : memref<1x8x64xbf16, #tpu.memory_space<vmem>>, vector<1x8x64xbf16>
    %8 = vector.shape_cast %7 : vector<1x8x64xbf16> to vector<8x64xbf16>
    %c0_9 = arith.constant 0 : index
    %c0_10 = arith.constant 0 : index
    %c0_11 = arith.constant 0 : index
    %9 = vector.load %arg6[%c0_9, %c0_10, %c0_11] : memref<1x1x8xf32, #tpu.memory_space<vmem>>, vector<1x1x8xf32>
    %10 = vector.shape_cast %9 : vector<1x1x8xf32> to vector<1x8xf32>
    %11 = vector.shape_cast %10 : vector<1x8xf32> to vector<1x8xf32>
    %12 = vector.broadcast %11 : vector<1x8xf32> to vector<8x8xf32>
    %13 = vector.extract_strided_slice %4 {offsets = [0, 0], sizes = [8, 16], strides = [1, 1]} : vector<8x64xbf16> to vector<8x16xbf16>
    %14 = vector.extract_strided_slice %6 {offsets = [0, 0], sizes = [8, 16], strides = [1, 1]} : vector<8x64xbf16> to vector<8x16xbf16>
    %15 = vector.extract_strided_slice %8 {offsets = [0, 0], sizes = [8, 16], strides = [1, 1]} : vector<8x64xbf16> to vector<8x16xbf16>
    %cst = arith.constant dense<0.000000e+00> : vector<8x8xf32>
    %16 = tpu.matmul %13, %14, %cst {dimension_numbers = #tpu.dot_dimension_numbers<[1], [1], [0], [0], [0, 0, 1, 0], [], []>} : vector<8x16xbf16>, vector<8x16xbf16>, vector<8x8xf32> -> vector<8x8xf32>
    %cst_12 = arith.constant 2.500000e-01 : f32
    %17 = vector.broadcast %cst_12 : f32 to vector<8x8xf32>
    %18 = arith.mulf %16, %17 : vector<8x8xf32>
    %19 = arith.addf %18, %12 : vector<8x8xf32>
    %c0_13 = arith.constant 0 : index
    %c0_14 = arith.constant 0 : index
    %c0_15 = arith.constant 0 : index
    %20 = vector.load %arg8[%c0_13, %c0_14, %c0_15] : memref<4x8x1xf32, #tpu.memory_space<vmem>>, vector<1x8x1xf32>
    %21 = vector.shape_cast %20 : vector<1x8x1xf32> to vector<8x1xf32>
    %cst_16 = arith.constant dense<0xFF800000> : vector<8xf32>
    %22 = vector.multi_reduction <maximumf>, %19, %cst_16 [1] : vector<8x8xf32> to vector<8xf32>
    %23 = vector.shape_cast %22 : vector<8xf32> to vector<8x1xf32>
    %24 = arith.maximumf %21, %23 : vector<8x1xf32>
    %25 = arith.subf %21, %24 : vector<8x1xf32>
    %26 = math.exp %25 : vector<8x1xf32>
    %27 = vector.broadcast %24 : vector<8x1xf32> to vector<8x8xf32>
    %28 = arith.subf %19, %27 : vector<8x8xf32>
    %29 = math.exp %28 : vector<8x8xf32>
    %c0_17 = arith.constant 0 : index
    %c0_18 = arith.constant 0 : index
    %c0_19 = arith.constant 0 : index
    %30 = vector.load %arg9[%c0_17, %c0_18, %c0_19] : memref<4x8x1xf32, #tpu.memory_space<vmem>>, vector<1x8x1xf32>
    %31 = vector.shape_cast %30 : vector<1x8x1xf32> to vector<8x1xf32>
    %32 = arith.mulf %26, %31 : vector<8x1xf32>
    %cst_20 = arith.constant dense<0.000000e+00> : vector<8xf32>
    %33 = vector.multi_reduction <add>, %29, %cst_20 [1] : vector<8x8xf32> to vector<8xf32>
    %34 = vector.shape_cast %33 : vector<8xf32> to vector<8x1xf32>
    %35 = arith.addf %32, %34 : vector<8x1xf32>
    %c0_21 = arith.constant 0 : index
    %c0_22 = arith.constant 0 : index
    %c0_23 = arith.constant 0 : index
    %36 = vector.load %arg9[%c0_21, %c0_22, %c0_23] : memref<4x8x1xf32, #tpu.memory_space<vmem>>, vector<1x8x1xf32>
    %37 = vector.shape_cast %36 : vector<1x8x1xf32> to vector<8x1xf32>
    %38 = vector.shape_cast %35 : vector<8x1xf32> to vector<1x8x1xf32>
    tpu.vector_store %arg9[%c0_21, %c0_22, %c0_23], %38 {strides = array<i32>} : memref<4x8x1xf32, #tpu.memory_space<vmem>>, vector<1x8x1xf32>,
    %c0_24 = arith.constant 0 : index
    %c0_25 = arith.constant 0 : index
    %c0_26 = arith.constant 0 : index
    %39 = vector.load %arg10[%c0_24, %c0_25, %c0_26] : memref<4x8x16xf32, #tpu.memory_space<vmem>>, vector<1x8x16xf32>
    %40 = vector.shape_cast %39 : vector<1x8x16xf32> to vector<8x16xf32>
    %41 = vector.broadcast %26 : vector<8x1xf32> to vector<8x16xf32>
    %42 = arith.mulf %41, %40 : vector<8x16xf32>
    %43 = arith.truncf %29 : vector<8x8xf32> to vector<8x8xbf16>
    %cst_27 = arith.constant dense<0.000000e+00> : vector<8x16xf32>
    %44 = tpu.matmul %43, %15, %cst_27 {dimension_numbers = #tpu.dot_dimension_numbers<[1], [0], [0], [1], [0, 0, 1, 1], [], []>} : vector<8x8xbf16>, vector<8x16xbf16>, vector<8x16xf32> -> vector<8x16xf32>
    %45 = arith.addf %42, %44 : vector<8x16xf32>
    %c0_28 = arith.constant 0 : index
    %c0_29 = arith.constant 0 : index
    %c0_30 = arith.constant 0 : index
    %46 = vector.load %arg10[%c0_28, %c0_29, %c0_30] : memref<4x8x16xf32, #tpu.memory_space<vmem>>, vector<1x8x16xf32>
    %47 = vector.shape_cast %46 : vector<1x8x16xf32> to vector<8x16xf32>
    %48 = vector.shape_cast %45 : vector<8x16xf32> to vector<1x8x16xf32>
    tpu.vector_store %arg10[%c0_28, %c0_29, %c0_30], %48 {strides = array<i32>} : memref<4x8x16xf32, #tpu.memory_space<vmem>>, vector<1x8x16xf32>,
    %c0_31 = arith.constant 0 : index
    %c0_32 = arith.constant 0 : index
    %c0_33 = arith.constant 0 : index
    %49 = vector.load %arg8[%c0_31, %c0_32, %c0_33] : memref<4x8x1xf32, #tpu.memory_space<vmem>>, vector<1x8x1xf32>
    %50 = vector.shape_cast %49 : vector<1x8x1xf32> to vector<8x1xf32>
    %51 = vector.shape_cast %24 : vector<8x1xf32> to vector<1x8x1xf32>
    tpu.vector_store %arg8[%c0_31, %c0_32, %c0_33], %51 {strides = array<i32>} : memref<4x8x1xf32, #tpu.memory_space<vmem>>, vector<1x8x1xf32>,
    %52 = vector.extract_strided_slice %4 {offsets = [0, 16], sizes = [8, 16], strides = [1, 1]} : vector<8x64xbf16> to vector<8x16xbf16>
    %53 = vector.extract_strided_slice %6 {offsets = [0, 16], sizes = [8, 16], strides = [1, 1]} : vector<8x64xbf16> to vector<8x16xbf16>
    %54 = vector.extract_strided_slice %8 {offsets = [0, 16], sizes = [8, 16], strides = [1, 1]} : vector<8x64xbf16> to vector<8x16xbf16>
    %cst_34 = arith.constant dense<0.000000e+00> : vector<8x8xf32>
    %55 = tpu.matmul %52, %53, %cst_34 {dimension_numbers = #tpu.dot_dimension_numbers<[1], [1], [0], [0], [0, 0, 1, 0], [], []>} : vector<8x16xbf16>, vector<8x16xbf16>, vector<8x8xf32> -> vector<8x8xf32>
    %cst_35 = arith.constant 2.500000e-01 : f32
    %56 = vector.broadcast %cst_35 : f32 to vector<8x8xf32>
    %57 = arith.mulf %55, %56 : vector<8x8xf32>
    %58 = arith.addf %57, %12 : vector<8x8xf32>
    %c1 = arith.constant 1 : index
    %c0_36 = arith.constant 0 : index
    %c0_37 = arith.constant 0 : index
    %59 = vector.load %arg8[%c1, %c0_36, %c0_37] : memref<4x8x1xf32, #tpu.memory_space<vmem>>, vector<1x8x1xf32>
    %60 = vector.shape_cast %59 : vector<1x8x1xf32> to vector<8x1xf32>
    %cst_38 = arith.constant dense<0xFF800000> : vector<8xf32>
    %61 = vector.multi_reduction <maximumf>, %58, %cst_38 [1] : vector<8x8xf32> to vector<8xf32>
    %62 = vector.shape_cast %61 : vector<8xf32> to vector<8x1xf32>
    %63 = arith.maximumf %60, %62 : vector<8x1xf32>
    %64 = arith.subf %60, %63 : vector<8x1xf32>
    %65 = math.exp %64 : vector<8x1xf32>
    %66 = vector.broadcast %63 : vector<8x1xf32> to vector<8x8xf32>
    %67 = arith.subf %58, %66 : vector<8x8xf32>
    %68 = math.exp %67 : vector<8x8xf32>
    %c1_39 = arith.constant 1 : index
    %c0_40 = arith.constant 0 : index
    %c0_41 = arith.constant 0 : index
    %69 = vector.load %arg9[%c1_39, %c0_40, %c0_41] : memref<4x8x1xf32, #tpu.memory_space<vmem>>, vector<1x8x1xf32>
    %70 = vector.shape_cast %69 : vector<1x8x1xf32> to vector<8x1xf32>
    %71 = arith.mulf %65, %70 : vector<8x1xf32>
    %cst_42 = arith.constant dense<0.000000e+00> : vector<8xf32>
    %72 = vector.multi_reduction <add>, %68, %cst_42 [1] : vector<8x8xf32> to vector<8xf32>
    %73 = vector.shape_cast %72 : vector<8xf32> to vector<8x1xf32>
    %74 = arith.addf %71, %73 : vector<8x1xf32>
    %c1_43 = arith.constant 1 : index
    %c0_44 = arith.constant 0 : index
    %c0_45 = arith.constant 0 : index
    %75 = vector.load %arg9[%c1_43, %c0_44, %c0_45] : memref<4x8x1xf32, #tpu.memory_space<vmem>>, vector<1x8x1xf32>
    %76 = vector.shape_cast %75 : vector<1x8x1xf32> to vector<8x1xf32>
    %77 = vector.shape_cast %74 : vector<8x1xf32> to vector<1x8x1xf32>
    tpu.vector_store %arg9[%c1_43, %c0_44, %c0_45], %77 {strides = array<i32>} : memref<4x8x1xf32, #tpu.memory_space<vmem>>, vector<1x8x1xf32>,
    %c1_46 = arith.constant 1 : index
    %c0_47 = arith.constant 0 : index
    %c0_48 = arith.constant 0 : index
    %78 = vector.load %arg10[%c1_46, %c0_47, %c0_48] : memref<4x8x16xf32, #tpu.memory_space<vmem>>, vector<1x8x16xf32>
    %79 = vector.shape_cast %78 : vector<1x8x16xf32> to vector<8x16xf32>
    %80 = vector.broadcast %65 : vector<8x1xf32> to vector<8x16xf32>
    %81 = arith.mulf %80, %79 : vector<8x16xf32>
    %82 = arith.truncf %68 : vector<8x8xf32> to vector<8x8xbf16>
    %cst_49 = arith.constant dense<0.000000e+00> : vector<8x16xf32>
    %83 = tpu.matmul %82, %54, %cst_49 {dimension_numbers = #tpu.dot_dimension_numbers<[1], [0], [0], [1], [0, 0, 1, 1], [], []>} : vector<8x8xbf16>, vector<8x16xbf16>, vector<8x16xf32> -> vector<8x16xf32>
    %84 = arith.addf %81, %83 : vector<8x16xf32>
    %c1_50 = arith.constant 1 : index
    %c0_51 = arith.constant 0 : index
    %c0_52 = arith.constant 0 : index
    %85 = vector.load %arg10[%c1_50, %c0_51, %c0_52] : memref<4x8x16xf32, #tpu.memory_space<vmem>>, vector<1x8x16xf32>
    %86 = vector.shape_cast %85 : vector<1x8x16xf32> to vector<8x16xf32>
    %87 = vector.shape_cast %84 : vector<8x16xf32> to vector<1x8x16xf32>
    tpu.vector_store %arg10[%c1_50, %c0_51, %c0_52], %87 {strides = array<i32>} : memref<4x8x16xf32, #tpu.memory_space<vmem>>, vector<1x8x16xf32>,
    %c1_53 = arith.constant 1 : index
    %c0_54 = arith.constant 0 : index
    %c0_55 = arith.constant 0 : index
    %88 = vector.load %arg8[%c1_53, %c0_54, %c0_55] : memref<4x8x1xf32, #tpu.memory_space<vmem>>, vector<1x8x1xf32>
    %89 = vector.shape_cast %88 : vector<1x8x1xf32> to vector<8x1xf32>
    %90 = vector.shape_cast %63 : vector<8x1xf32> to vector<1x8x1xf32>
    tpu.vector_store %arg8[%c1_53, %c0_54, %c0_55], %90 {strides = array<i32>} : memref<4x8x1xf32, #tpu.memory_space<vmem>>, vector<1x8x1xf32>,
    %91 = vector.extract_strided_slice %4 {offsets = [0, 32], sizes = [8, 16], strides = [1, 1]} : vector<8x64xbf16> to vector<8x16xbf16>
    %92 = vector.extract_strided_slice %6 {offsets = [0, 32], sizes = [8, 16], strides = [1, 1]} : vector<8x64xbf16> to vector<8x16xbf16>
    %93 = vector.extract_strided_slice %8 {offsets = [0, 32], sizes = [8, 16], strides = [1, 1]} : vector<8x64xbf16> to vector<8x16xbf16>
    %cst_56 = arith.constant dense<0.000000e+00> : vector<8x8xf32>
    %94 = tpu.matmul %91, %92, %cst_56 {dimension_numbers = #tpu.dot_dimension_numbers<[1], [1], [0], [0], [0, 0, 1, 0], [], []>} : vector<8x16xbf16>, vector<8x16xbf16>, vector<8x8xf32> -> vector<8x8xf32>
    %cst_57 = arith.constant 2.500000e-01 : f32
    %95 = vector.broadcast %cst_57 : f32 to vector<8x8xf32>
    %96 = arith.mulf %94, %95 : vector<8x8xf32>
    %97 = arith.addf %96, %12 : vector<8x8xf32>
    %c2 = arith.constant 2 : index
    %c0_58 = arith.constant 0 : index
    %c0_59 = arith.constant 0 : index
    %98 = vector.load %arg8[%c2, %c0_58, %c0_59] : memref<4x8x1xf32, #tpu.memory_space<vmem>>, vector<1x8x1xf32>
    %99 = vector.shape_cast %98 : vector<1x8x1xf32> to vector<8x1xf32>
    %cst_60 = arith.constant dense<0xFF800000> : vector<8xf32>
    %100 = vector.multi_reduction <maximumf>, %97, %cst_60 [1] : vector<8x8xf32> to vector<8xf32>
    %101 = vector.shape_cast %100 : vector<8xf32> to vector<8x1xf32>
    %102 = arith.maximumf %99, %101 : vector<8x1xf32>
    %103 = arith.subf %99, %102 : vector<8x1xf32>
    %104 = math.exp %103 : vector<8x1xf32>
    %105 = vector.broadcast %102 : vector<8x1xf32> to vector<8x8xf32>
    %106 = arith.subf %97, %105 : vector<8x8xf32>
    %107 = math.exp %106 : vector<8x8xf32>
    %c2_61 = arith.constant 2 : index
    %c0_62 = arith.constant 0 : index
    %c0_63 = arith.constant 0 : index
    %108 = vector.load %arg9[%c2_61, %c0_62, %c0_63] : memref<4x8x1xf32, #tpu.memory_space<vmem>>, vector<1x8x1xf32>
    %109 = vector.shape_cast %108 : vector<1x8x1xf32> to vector<8x1xf32>
    %110 = arith.mulf %104, %109 : vector<8x1xf32>
    %cst_64 = arith.constant dense<0.000000e+00> : vector<8xf32>
    %111 = vector.multi_reduction <add>, %107, %cst_64 [1] : vector<8x8xf32> to vector<8xf32>
    %112 = vector.shape_cast %111 : vector<8xf32> to vector<8x1xf32>
    %113 = arith.addf %110, %112 : vector<8x1xf32>
    %c2_65 = arith.constant 2 : index
    %c0_66 = arith.constant 0 : index
    %c0_67 = arith.constant 0 : index
    %114 = vector.load %arg9[%c2_65, %c0_66, %c0_67] : memref<4x8x1xf32, #tpu.memory_space<vmem>>, vector<1x8x1xf32>
    %115 = vector.shape_cast %114 : vector<1x8x1xf32> to vector<8x1xf32>
    %116 = vector.shape_cast %113 : vector<8x1xf32> to vector<1x8x1xf32>
    tpu.vector_store %arg9[%c2_65, %c0_66, %c0_67], %116 {strides = array<i32>} : memref<4x8x1xf32, #tpu.memory_space<vmem>>, vector<1x8x1xf32>,
    %c2_68 = arith.constant 2 : index
    %c0_69 = arith.constant 0 : index
    %c0_70 = arith.constant 0 : index
    %117 = vector.load %arg10[%c2_68, %c0_69, %c0_70] : memref<4x8x16xf32, #tpu.memory_space<vmem>>, vector<1x8x16xf32>
    %118 = vector.shape_cast %117 : vector<1x8x16xf32> to vector<8x16xf32>
    %119 = vector.broadcast %104 : vector<8x1xf32> to vector<8x16xf32>
    %120 = arith.mulf %119, %118 : vector<8x16xf32>
    %121 = arith.truncf %107 : vector<8x8xf32> to vector<8x8xbf16>
    %cst_71 = arith.constant dense<0.000000e+00> : vector<8x16xf32>
    %122 = tpu.matmul %121, %93, %cst_71 {dimension_numbers = #tpu.dot_dimension_numbers<[1], [0], [0], [1], [0, 0, 1, 1], [], []>} : vector<8x8xbf16>, vector<8x16xbf16>, vector<8x16xf32> -> vector<8x16xf32>
    %123 = arith.addf %120, %122 : vector<8x16xf32>
    %c2_72 = arith.constant 2 : index
    %c0_73 = arith.constant 0 : index
    %c0_74 = arith.constant 0 : index
    %124 = vector.load %arg10[%c2_72, %c0_73, %c0_74] : memref<4x8x16xf32, #tpu.memory_space<vmem>>, vector<1x8x16xf32>
    %125 = vector.shape_cast %124 : vector<1x8x16xf32> to vector<8x16xf32>
    %126 = vector.shape_cast %123 : vector<8x16xf32> to vector<1x8x16xf32>
    tpu.vector_store %arg10[%c2_72, %c0_73, %c0_74], %126 {strides = array<i32>} : memref<4x8x16xf32, #tpu.memory_space<vmem>>, vector<1x8x16xf32>,
    %c2_75 = arith.constant 2 : index
    %c0_76 = arith.constant 0 : index
    %c0_77 = arith.constant 0 : index
    %127 = vector.load %arg8[%c2_75, %c0_76, %c0_77] : memref<4x8x1xf32, #tpu.memory_space<vmem>>, vector<1x8x1xf32>
    %128 = vector.shape_cast %127 : vector<1x8x1xf32> to vector<8x1xf32>
    %129 = vector.shape_cast %102 : vector<8x1xf32> to vector<1x8x1xf32>
    tpu.vector_store %arg8[%c2_75, %c0_76, %c0_77], %129 {strides = array<i32>} : memref<4x8x1xf32, #tpu.memory_space<vmem>>, vector<1x8x1xf32>,
    %130 = vector.extract_strided_slice %4 {offsets = [0, 48], sizes = [8, 16], strides = [1, 1]} : vector<8x64xbf16> to vector<8x16xbf16>
    %131 = vector.extract_strided_slice %6 {offsets = [0, 48], sizes = [8, 16], strides = [1, 1]} : vector<8x64xbf16> to vector<8x16xbf16>
    %132 = vector.extract_strided_slice %8 {offsets = [0, 48], sizes = [8, 16], strides = [1, 1]} : vector<8x64xbf16> to vector<8x16xbf16>
    %cst_78 = arith.constant dense<0.000000e+00> : vector<8x8xf32>
    %133 = tpu.matmul %130, %131, %cst_78 {dimension_numbers = #tpu.dot_dimension_numbers<[1], [1], [0], [0], [0, 0, 1, 0], [], []>} : vector<8x16xbf16>, vector<8x16xbf16>, vector<8x8xf32> -> vector<8x8xf32>
    %cst_79 = arith.constant 2.500000e-01 : f32
    %134 = vector.broadcast %cst_79 : f32 to vector<8x8xf32>
    %135 = arith.mulf %133, %134 : vector<8x8xf32>
    %136 = arith.addf %135, %12 : vector<8x8xf32>
    %c3 = arith.constant 3 : index
    %c0_80 = arith.constant 0 : index
    %c0_81 = arith.constant 0 : index
    %137 = vector.load %arg8[%c3, %c0_80, %c0_81] : memref<4x8x1xf32, #tpu.memory_space<vmem>>, vector<1x8x1xf32>
    %138 = vector.shape_cast %137 : vector<1x8x1xf32> to vector<8x1xf32>
    %cst_82 = arith.constant dense<0xFF800000> : vector<8xf32>
    %139 = vector.multi_reduction <maximumf>, %136, %cst_82 [1] : vector<8x8xf32> to vector<8xf32>
    %140 = vector.shape_cast %139 : vector<8xf32> to vector<8x1xf32>
    %141 = arith.maximumf %138, %140 : vector<8x1xf32>
    %142 = arith.subf %138, %141 : vector<8x1xf32>
    %143 = math.exp %142 : vector<8x1xf32>
    %144 = vector.broadcast %141 : vector<8x1xf32> to vector<8x8xf32>
    %145 = arith.subf %136, %144 : vector<8x8xf32>
    %146 = math.exp %145 : vector<8x8xf32>
    %c3_83 = arith.constant 3 : index
    %c0_84 = arith.constant 0 : index
    %c0_85 = arith.constant 0 : index
    %147 = vector.load %arg9[%c3_83, %c0_84, %c0_85] : memref<4x8x1xf32, #tpu.memory_space<vmem>>, vector<1x8x1xf32>
    %148 = vector.shape_cast %147 : vector<1x8x1xf32> to vector<8x1xf32>
    %149 = arith.mulf %143, %148 : vector<8x1xf32>
    %cst_86 = arith.constant dense<0.000000e+00> : vector<8xf32>
    %150 = vector.multi_reduction <add>, %146, %cst_86 [1] : vector<8x8xf32> to vector<8xf32>
    %151 = vector.shape_cast %150 : vector<8xf32> to vector<8x1xf32>
    %152 = arith.addf %149, %151 : vector<8x1xf32>
    %c3_87 = arith.constant 3 : index
    %c0_88 = arith.constant 0 : index
    %c0_89 = arith.constant 0 : index
    %153 = vector.load %arg9[%c3_87, %c0_88, %c0_89] : memref<4x8x1xf32, #tpu.memory_space<vmem>>, vector<1x8x1xf32>
    %154 = vector.shape_cast %153 : vector<1x8x1xf32> to vector<8x1xf32>
    %155 = vector.shape_cast %152 : vector<8x1xf32> to vector<1x8x1xf32>
    tpu.vector_store %arg9[%c3_87, %c0_88, %c0_89], %155 {strides = array<i32>} : memref<4x8x1xf32, #tpu.memory_space<vmem>>, vector<1x8x1xf32>,
    %c3_90 = arith.constant 3 : index
    %c0_91 = arith.constant 0 : index
    %c0_92 = arith.constant 0 : index
    %156 = vector.load %arg10[%c3_90, %c0_91, %c0_92] : memref<4x8x16xf32, #tpu.memory_space<vmem>>, vector<1x8x16xf32>
    %157 = vector.shape_cast %156 : vector<1x8x16xf32> to vector<8x16xf32>
    %158 = vector.broadcast %143 : vector<8x1xf32> to vector<8x16xf32>
    %159 = arith.mulf %158, %157 : vector<8x16xf32>
    %160 = arith.truncf %146 : vector<8x8xf32> to vector<8x8xbf16>
    %cst_93 = arith.constant dense<0.000000e+00> : vector<8x16xf32>
    %161 = tpu.matmul %160, %132, %cst_93 {dimension_numbers = #tpu.dot_dimension_numbers<[1], [0], [0], [1], [0, 0, 1, 1], [], []>} : vector<8x8xbf16>, vector<8x16xbf16>, vector<8x16xf32> -> vector<8x16xf32>
    %162 = arith.addf %159, %161 : vector<8x16xf32>
    %c3_94 = arith.constant 3 : index
    %c0_95 = arith.constant 0 : index
    %c0_96 = arith.constant 0 : index
    %163 = vector.load %arg10[%c3_94, %c0_95, %c0_96] : memref<4x8x16xf32, #tpu.memory_space<vmem>>, vector<1x8x16xf32>
    %164 = vector.shape_cast %163 : vector<1x8x16xf32> to vector<8x16xf32>
    %165 = vector.shape_cast %162 : vector<8x16xf32> to vector<1x8x16xf32>
    tpu.vector_store %arg10[%c3_94, %c0_95, %c0_96], %165 {strides = array<i32>} : memref<4x8x16xf32, #tpu.memory_space<vmem>>, vector<1x8x16xf32>,
    %c3_97 = arith.constant 3 : index
    %c0_98 = arith.constant 0 : index
    %c0_99 = arith.constant 0 : index
    %166 = vector.load %arg8[%c3_97, %c0_98, %c0_99] : memref<4x8x1xf32, #tpu.memory_space<vmem>>, vector<1x8x1xf32>
    %167 = vector.shape_cast %166 : vector<1x8x1xf32> to vector<8x1xf32>
    %168 = vector.shape_cast %141 : vector<8x1xf32> to vector<1x8x1xf32>
    tpu.vector_store %arg8[%c3_97, %c0_98, %c0_99], %168 {strides = array<i32>} : memref<4x8x1xf32, #tpu.memory_space<vmem>>, vector<1x8x1xf32>,
    %c0_i32_100 = arith.constant 0 : i32
    %169 = arith.cmpi eq, %arg2, %c0_i32_100 : i32
    %170 = arith.extui %169 : i1 to i32
    %c0_i32_101 = arith.constant 0 : i32
    %171 = arith.cmpi ne, %170, %c0_i32_101 : i32
    scf.if %171 {
      %c0_102 = arith.constant 0 : index
      %c0_103 = arith.constant 0 : index
      %c0_104 = arith.constant 0 : index
      %172 = vector.load %arg10[%c0_102, %c0_103, %c0_104] : memref<4x8x16xf32, #tpu.memory_space<vmem>>, vector<1x8x16xf32>
      %173 = vector.shape_cast %172 : vector<1x8x16xf32> to vector<8x16xf32>
      %c0_105 = arith.constant 0 : index
      %c0_106 = arith.constant 0 : index
      %c0_107 = arith.constant 0 : index
      %174 = vector.load %arg9[%c0_105, %c0_106, %c0_107] : memref<4x8x1xf32, #tpu.memory_space<vmem>>, vector<1x8x1xf32>
      %175 = vector.shape_cast %174 : vector<1x8x1xf32> to vector<8x1xf32>
      %176 = tpu.reciprocal %175 {approx = true} : vector<8x1xf32> -> vector<8x1xf32>
      %177 = vector.broadcast %176 : vector<8x1xf32> to vector<8x16xf32>
      %178 = arith.mulf %173, %177 : vector<8x16xf32>
      %c1_108 = arith.constant 1 : index
      %c0_109 = arith.constant 0 : index
      %c0_110 = arith.constant 0 : index
      %179 = vector.load %arg10[%c1_108, %c0_109, %c0_110] : memref<4x8x16xf32, #tpu.memory_space<vmem>>, vector<1x8x16xf32>
      %180 = vector.shape_cast %179 : vector<1x8x16xf32> to vector<8x16xf32>
      %c1_111 = arith.constant 1 : index
      %c0_112 = arith.constant 0 : index
      %c0_113 = arith.constant 0 : index
      %181 = vector.load %arg9[%c1_111, %c0_112, %c0_113] : memref<4x8x1xf32, #tpu.memory_space<vmem>>, vector<1x8x1xf32>
      %182 = vector.shape_cast %181 : vector<1x8x1xf32> to vector<8x1xf32>
      %183 = tpu.reciprocal %182 {approx = true} : vector<8x1xf32> -> vector<8x1xf32>
      %184 = vector.broadcast %183 : vector<8x1xf32> to vector<8x16xf32>
      %185 = arith.mulf %180, %184 : vector<8x16xf32>
      %c2_114 = arith.constant 2 : index
      %c0_115 = arith.constant 0 : index
      %c0_116 = arith.constant 0 : index
      %186 = vector.load %arg10[%c2_114, %c0_115, %c0_116] : memref<4x8x16xf32, #tpu.memory_space<vmem>>, vector<1x8x16xf32>
      %187 = vector.shape_cast %186 : vector<1x8x16xf32> to vector<8x16xf32>
      %c2_117 = arith.constant 2 : index
      %c0_118 = arith.constant 0 : index
      %c0_119 = arith.constant 0 : index
      %188 = vector.load %arg9[%c2_117, %c0_118, %c0_119] : memref<4x8x1xf32, #tpu.memory_space<vmem>>, vector<1x8x1xf32>
      %189 = vector.shape_cast %188 : vector<1x8x1xf32> to vector<8x1xf32>
      %190 = tpu.reciprocal %189 {approx = true} : vector<8x1xf32> -> vector<8x1xf32>
      %191 = vector.broadcast %190 : vector<8x1xf32> to vector<8x16xf32>
      %192 = arith.mulf %187, %191 : vector<8x16xf32>
      %c3_120 = arith.constant 3 : index
      %c0_121 = arith.constant 0 : index
      %c0_122 = arith.constant 0 : index
      %193 = vector.load %arg10[%c3_120, %c0_121, %c0_122] : memref<4x8x16xf32, #tpu.memory_space<vmem>>, vector<1x8x16xf32>
      %194 = vector.shape_cast %193 : vector<1x8x16xf32> to vector<8x16xf32>
      %c3_123 = arith.constant 3 : index
      %c0_124 = arith.constant 0 : index
      %c0_125 = arith.constant 0 : index
      %195 = vector.load %arg9[%c3_123, %c0_124, %c0_125] : memref<4x8x1xf32, #tpu.memory_space<vmem>>, vector<1x8x1xf32>
      %196 = vector.shape_cast %195 : vector<1x8x1xf32> to vector<8x1xf32>
      %197 = tpu.reciprocal %196 {approx = true} : vector<8x1xf32> -> vector<8x1xf32>
      %198 = vector.broadcast %197 : vector<8x1xf32> to vector<8x16xf32>
      %199 = arith.mulf %194, %198 : vector<8x16xf32>
      %200 = tpu.concatenate %178, %185, %192, %199 in 1 : vector<8x16xf32>, vector<8x16xf32>, vector<8x16xf32>, vector<8x16xf32> -> vector<8x64xf32>
      %201 = arith.truncf %200 : vector<8x64xf32> to vector<8x64xbf16>
      %c0_126 = arith.constant 0 : index
      %c0_127 = arith.constant 0 : index
      %c0_128 = arith.constant 0 : index
      %202 = vector.load %arg7[%c0_126, %c0_127, %c0_128] : memref<1x8x64xbf16, #tpu.memory_space<vmem>>, vector<1x8x64xbf16>
      %203 = vector.shape_cast %202 : vector<1x8x64xbf16> to vector<8x64xbf16>
      %204 = vector.shape_cast %201 : vector<8x64xbf16> to vector<1x8x64xbf16>
      tpu.vector_store %arg7[%c0_126, %c0_127, %c0_128], %204 {strides = array<i32>} : memref<1x8x64xbf16, #tpu.memory_space<vmem>>, vector<1x8x64xbf16>,
    } else {
    }
    return
  }
  func.func @transform_0(%arg0: i32, %arg1: i32, %arg2: i32) -> (i32, i32, i32) {
    %c0_i32 = arith.constant 0 : i32
    %c0_i32_0 = arith.constant 0 : i32
    return %arg0, %arg1, %c0_i32 : i32, i32, i32
  }
  func.func @transform_1(%arg0: i32, %arg1: i32, %arg2: i32) -> (i32, i32, i32) {
    %c0_i32 = arith.constant 0 : i32
    %c0_i32_0 = arith.constant 0 : i32
    return %arg0, %arg2, %c0_i32 : i32, i32, i32
  }
  func.func @transform_2(%arg0: i32, %arg1: i32, %arg2: i32) -> (i32, i32, i32) {
    %c0_i32 = arith.constant 0 : i32
    %c0_i32_0 = arith.constant 0 : i32
    return %arg0, %arg2, %c0_i32 : i32, i32, i32
  }
  func.func @transform_3(%arg0: i32, %arg1: i32, %arg2: i32) -> (i32, i32, i32) {
    %c0_i32 = arith.constant 0 : i32
    %c0_i32_0 = arith.constant 0 : i32
    return %arg0, %c0_i32, %arg2 : i32, i32, i32
  }
  func.func @transform_4(%arg0: i32, %arg1: i32, %arg2: i32) -> (i32, i32, i32) {
    %c0_i32 = arith.constant 0 : i32
    %c0_i32_0 = arith.constant 0 : i32
    return %arg0, %arg1, %c0_i32 : i32, i32, i32
  }
}

module attributes {stable_mosaic.version = 11 : i64} {
  func.func @_flash_attn_kernel(%arg0: i32, %arg1: i32, %arg2: i32, %arg3: memref<1x8x64xbf16, #tpu.memory_space<vmem>>, %arg4: memref<1x8x64xbf16, #tpu.memory_space<vmem>>, %arg5: memref<1x8x64xbf16, #tpu.memory_space<vmem>>, %arg6: memref<1x1x8xf32, #tpu.memory_space<vmem>>, %arg7: memref<1x8x64xbf16, #tpu.memory_space<vmem>>, %arg8: memref<4x8x1xf32, #tpu.memory_space<vmem>>, %arg9: memref<4x8x1xf32, #tpu.memory_space<vmem>>, %arg10: memref<4x8x16xf32, #tpu.memory_space<vmem>>) attributes {dimension_semantics = [#tpu.dimension_semantics<parallel>, #tpu.dimension_semantics<parallel>, #tpu.dimension_semantics<arbitrary>], iteration_bounds = array<i64: 2, 1, 1>, scalar_prefetch = 0 : i64, scratch_operands = 3 : i64, tpu.core_type = #tpu.core_type<tc>, window_params = [{transform_indices = @transform_0, window_bounds = array<i64: 1, 8, 64>}, {transform_indices = @transform_1, window_bounds = array<i64: 1, 8, 64>}, {transform_indices = @transform_2, window_bounds = array<i64: 1, 8, 64>}, {transform_indices = @transform_3, window_bounds = array<i64: 1, 1, 8>}, {transform_indices = @transform_4, window_bounds = array<i64: 1, 8, 64>}]} {
    %c0_i32 = arith.constant 0 : i32
    %0 = arith.cmpi eq, %arg2, %c0_i32 : i32
    %1 = arith.extui %0 : i1 to i32
    %c0_i32_0 = arith.constant 0 : i32
    %2 = arith.cmpi ne, %1, %c0_i32_0 : i32
    scf.if %2 {
      %cst_105 = arith.constant 0xFF800000 : f32
      %185 = vector.broadcast %cst_105 : f32 to vector<4x8x1xf32>
      %c0_106 = arith.constant 0 : index
      %c0_107 = arith.constant 0 : index
      %c0_108 = arith.constant 0 : index
      %186 = vector.load %arg8[%c0_106, %c0_107, %c0_108] : memref<4x8x1xf32, #tpu.memory_space<vmem>>, vector<4x8x1xf32>
      tpu.vector_store %arg8[%c0_106, %c0_107, %c0_108], %185 {strides = array<i32>} : memref<4x8x1xf32, #tpu.memory_space<vmem>>, vector<4x8x1xf32>,
      %cst_109 = arith.constant 0.000000e+00 : f32
      %187 = vector.broadcast %cst_109 : f32 to vector<4x8x1xf32>
      %c0_110 = arith.constant 0 : index
      %c0_111 = arith.constant 0 : index
      %c0_112 = arith.constant 0 : index
      %188 = vector.load %arg9[%c0_110, %c0_111, %c0_112] : memref<4x8x1xf32, #tpu.memory_space<vmem>>, vector<4x8x1xf32>
      tpu.vector_store %arg9[%c0_110, %c0_111, %c0_112], %187 {strides = array<i32>} : memref<4x8x1xf32, #tpu.memory_space<vmem>>, vector<4x8x1xf32>,
      %cst_113 = arith.constant 0.000000e+00 : f32
      %189 = vector.broadcast %cst_113 : f32 to vector<4x8x16xf32>
      %c0_114 = arith.constant 0 : index
      %c0_115 = arith.constant 0 : index
      %c0_116 = arith.constant 0 : index
      %190 = vector.load %arg10[%c0_114, %c0_115, %c0_116] : memref<4x8x16xf32, #tpu.memory_space<vmem>>, vector<4x8x16xf32>
      tpu.vector_store %arg10[%c0_114, %c0_115, %c0_116], %189 {strides = array<i32>} : memref<4x8x16xf32, #tpu.memory_space<vmem>>, vector<4x8x16xf32>,
    } else {
    }
    %c0 = arith.constant 0 : index
    %c0_1 = arith.constant 0 : index
    %c0_2 = arith.constant 0 : index
    %3 = vector.load %arg3[%c0, %c0_1, %c0_2] : memref<1x8x64xbf16, #tpu.memory_space<vmem>>, vector<1x8x64xbf16>
    %4 = vector.shape_cast %3 : vector<1x8x64xbf16> to vector<8x64xbf16>
    %c0_3 = arith.constant 0 : index
    %c0_4 = arith.constant 0 : index
    %c0_5 = arith.constant 0 : index
    %5 = vector.load %arg4[%c0_3, %c0_4, %c0_5] : memref<1x8x64xbf16, #tpu.memory_space<vmem>>, vector<1x8x64xbf16>
    %6 = vector.shape_cast %5 : vector<1x8x64xbf16> to vector<8x64xbf16>
    %c0_6 = arith.constant 0 : index
    %c0_7 = arith.constant 0 : index
    %c0_8 = arith.constant 0 : index
    %7 = vector.load %arg5[%c0_6, %c0_7, %c0_8] : memref<1x8x64xbf16, #tpu.memory_space<vmem>>, vector<1x8x64xbf16>
    %8 = vector.shape_cast %7 : vector<1x8x64xbf16> to vector<8x64xbf16>
    %c0_9 = arith.constant 0 : index
    %c0_10 = arith.constant 0 : index
    %c0_11 = arith.constant 0 : index
    %9 = vector.load %arg6[%c0_9, %c0_10, %c0_11] : memref<1x1x8xf32, #tpu.memory_space<vmem>>, vector<1x1x8xf32>
    %10 = vector.shape_cast %9 : vector<1x1x8xf32> to vector<1x8xf32>
    %11 = vector.shape_cast %10 : vector<1x8xf32> to vector<1x8xf32>
    %12 = vector.broadcast %11 : vector<1x8xf32> to vector<8x8xf32>
    %13 = tpu.iota {dimensions = array<i32: 0>} : vector<8x8xi32>
    %c8_i32 = arith.constant 8 : i32
    %14 = arith.muli %arg1, %c8_i32 : i32
    %15 = vector.broadcast %14 : i32 to vector<8x8xi32>
    %16 = arith.addi %13, %15 : vector<8x8xi32>
    %17 = tpu.iota {dimensions = array<i32: 1>} : vector<8x8xi32>
    %c8_i32_12 = arith.constant 8 : i32
    %18 = arith.muli %arg2, %c8_i32_12 : i32
    %19 = vector.broadcast %18 : i32 to vector<8x8xi32>
    %20 = arith.addi %17, %19 : vector<8x8xi32>
    %21 = arith.cmpi sgt, %20, %16 : vector<8x8xi32>
    %cst = arith.constant -1.000000e+30 : f32
    %cst_13 = arith.constant 0.000000e+00 : f32
    %22 = vector.broadcast %cst : f32 to vector<8x8xf32>
    %23 = vector.broadcast %cst_13 : f32 to vector<8x8xf32>
    %24 = arith.select %21, %22, %23 : vector<8x8xi1>, vector<8x8xf32>
    %25 = arith.addf %12, %24 : vector<8x8xf32>
    %26 = vector.extract_strided_slice %4 {offsets = [0, 0], sizes = [8, 16], strides = [1, 1]} : vector<8x64xbf16> to vector<8x16xbf16>
    %27 = vector.extract_strided_slice %6 {offsets = [0, 0], sizes = [8, 16], strides = [1, 1]} : vector<8x64xbf16> to vector<8x16xbf16>
    %28 = vector.extract_strided_slice %8 {offsets = [0, 0], sizes = [8, 16], strides = [1, 1]} : vector<8x64xbf16> to vector<8x16xbf16>
    %cst_14 = arith.constant dense<0.000000e+00> : vector<8x8xf32>
    %29 = tpu.matmul %26, %27, %cst_14 {dimension_numbers = #tpu.dot_dimension_numbers<[1], [1], [0], [0], [0, 0, 1, 0], [], []>} : vector<8x16xbf16>, vector<8x16xbf16>, vector<8x8xf32> -> vector<8x8xf32>
    %cst_15 = arith.constant 2.500000e-01 : f32
    %30 = vector.broadcast %cst_15 : f32 to vector<8x8xf32>
    %31 = arith.mulf %29, %30 : vector<8x8xf32>
    %32 = arith.addf %31, %25 : vector<8x8xf32>
    %c0_16 = arith.constant 0 : index
    %c0_17 = arith.constant 0 : index
    %c0_18 = arith.constant 0 : index
    %33 = vector.load %arg8[%c0_16, %c0_17, %c0_18] : memref<4x8x1xf32, #tpu.memory_space<vmem>>, vector<1x8x1xf32>
    %34 = vector.shape_cast %33 : vector<1x8x1xf32> to vector<8x1xf32>
    %cst_19 = arith.constant dense<0xFF800000> : vector<8xf32>
    %35 = vector.multi_reduction <maximumf>, %32, %cst_19 [1] : vector<8x8xf32> to vector<8xf32>
    %36 = vector.shape_cast %35 : vector<8xf32> to vector<8x1xf32>
    %37 = arith.maximumf %34, %36 : vector<8x1xf32>
    %38 = arith.subf %34, %37 : vector<8x1xf32>
    %39 = math.exp %38 : vector<8x1xf32>
    %40 = vector.broadcast %37 : vector<8x1xf32> to vector<8x8xf32>
    %41 = arith.subf %32, %40 : vector<8x8xf32>
    %42 = math.exp %41 : vector<8x8xf32>
    %c0_20 = arith.constant 0 : index
    %c0_21 = arith.constant 0 : index
    %c0_22 = arith.constant 0 : index
    %43 = vector.load %arg9[%c0_20, %c0_21, %c0_22] : memref<4x8x1xf32, #tpu.memory_space<vmem>>, vector<1x8x1xf32>
    %44 = vector.shape_cast %43 : vector<1x8x1xf32> to vector<8x1xf32>
    %45 = arith.mulf %39, %44 : vector<8x1xf32>
    %cst_23 = arith.constant dense<0.000000e+00> : vector<8xf32>
    %46 = vector.multi_reduction <add>, %42, %cst_23 [1] : vector<8x8xf32> to vector<8xf32>
    %47 = vector.shape_cast %46 : vector<8xf32> to vector<8x1xf32>
    %48 = arith.addf %45, %47 : vector<8x1xf32>
    %c0_24 = arith.constant 0 : index
    %c0_25 = arith.constant 0 : index
    %c0_26 = arith.constant 0 : index
    %49 = vector.load %arg9[%c0_24, %c0_25, %c0_26] : memref<4x8x1xf32, #tpu.memory_space<vmem>>, vector<1x8x1xf32>
    %50 = vector.shape_cast %49 : vector<1x8x1xf32> to vector<8x1xf32>
    %51 = vector.shape_cast %48 : vector<8x1xf32> to vector<1x8x1xf32>
    tpu.vector_store %arg9[%c0_24, %c0_25, %c0_26], %51 {strides = array<i32>} : memref<4x8x1xf32, #tpu.memory_space<vmem>>, vector<1x8x1xf32>,
    %c0_27 = arith.constant 0 : index
    %c0_28 = arith.constant 0 : index
    %c0_29 = arith.constant 0 : index
    %52 = vector.load %arg10[%c0_27, %c0_28, %c0_29] : memref<4x8x16xf32, #tpu.memory_space<vmem>>, vector<1x8x16xf32>
    %53 = vector.shape_cast %52 : vector<1x8x16xf32> to vector<8x16xf32>
    %54 = vector.broadcast %39 : vector<8x1xf32> to vector<8x16xf32>
    %55 = arith.mulf %54, %53 : vector<8x16xf32>
    %56 = arith.truncf %42 : vector<8x8xf32> to vector<8x8xbf16>
    %cst_30 = arith.constant dense<0.000000e+00> : vector<8x16xf32>
    %57 = tpu.matmul %56, %28, %cst_30 {dimension_numbers = #tpu.dot_dimension_numbers<[1], [0], [0], [1], [0, 0, 1, 1], [], []>} : vector<8x8xbf16>, vector<8x16xbf16>, vector<8x16xf32> -> vector<8x16xf32>
    %58 = arith.addf %55, %57 : vector<8x16xf32>
    %c0_31 = arith.constant 0 : index
    %c0_32 = arith.constant 0 : index
    %c0_33 = arith.constant 0 : index
    %59 = vector.load %arg10[%c0_31, %c0_32, %c0_33] : memref<4x8x16xf32, #tpu.memory_space<vmem>>, vector<1x8x16xf32>
    %60 = vector.shape_cast %59 : vector<1x8x16xf32> to vector<8x16xf32>
    %61 = vector.shape_cast %58 : vector<8x16xf32> to vector<1x8x16xf32>
    tpu.vector_store %arg10[%c0_31, %c0_32, %c0_33], %61 {strides = array<i32>} : memref<4x8x16xf32, #tpu.memory_space<vmem>>, vector<1x8x16xf32>,
    %c0_34 = arith.constant 0 : index
    %c0_35 = arith.constant 0 : index
    %c0_36 = arith.constant 0 : index
    %62 = vector.load %arg8[%c0_34, %c0_35, %c0_36] : memref<4x8x1xf32, #tpu.memory_space<vmem>>, vector<1x8x1xf32>
    %63 = vector.shape_cast %62 : vector<1x8x1xf32> to vector<8x1xf32>
    %64 = vector.shape_cast %37 : vector<8x1xf32> to vector<1x8x1xf32>
    tpu.vector_store %arg8[%c0_34, %c0_35, %c0_36], %64 {strides = array<i32>} : memref<4x8x1xf32, #tpu.memory_space<vmem>>, vector<1x8x1xf32>,
    %65 = vector.extract_strided_slice %4 {offsets = [0, 16], sizes = [8, 16], strides = [1, 1]} : vector<8x64xbf16> to vector<8x16xbf16>
    %66 = vector.extract_strided_slice %6 {offsets = [0, 16], sizes = [8, 16], strides = [1, 1]} : vector<8x64xbf16> to vector<8x16xbf16>
    %67 = vector.extract_strided_slice %8 {offsets = [0, 16], sizes = [8, 16], strides = [1, 1]} : vector<8x64xbf16> to vector<8x16xbf16>
    %cst_37 = arith.constant dense<0.000000e+00> : vector<8x8xf32>
    %68 = tpu.matmul %65, %66, %cst_37 {dimension_numbers = #tpu.dot_dimension_numbers<[1], [1], [0], [0], [0, 0, 1, 0], [], []>} : vector<8x16xbf16>, vector<8x16xbf16>, vector<8x8xf32> -> vector<8x8xf32>
    %cst_38 = arith.constant 2.500000e-01 : f32
    %69 = vector.broadcast %cst_38 : f32 to vector<8x8xf32>
    %70 = arith.mulf %68, %69 : vector<8x8xf32>
    %71 = arith.addf %70, %25 : vector<8x8xf32>
    %c1 = arith.constant 1 : index
    %c0_39 = arith.constant 0 : index
    %c0_40 = arith.constant 0 : index
    %72 = vector.load %arg8[%c1, %c0_39, %c0_40] : memref<4x8x1xf32, #tpu.memory_space<vmem>>, vector<1x8x1xf32>
    %73 = vector.shape_cast %72 : vector<1x8x1xf32> to vector<8x1xf32>
    %cst_41 = arith.constant dense<0xFF800000> : vector<8xf32>
    %74 = vector.multi_reduction <maximumf>, %71, %cst_41 [1] : vector<8x8xf32> to vector<8xf32>
    %75 = vector.shape_cast %74 : vector<8xf32> to vector<8x1xf32>
    %76 = arith.maximumf %73, %75 : vector<8x1xf32>
    %77 = arith.subf %73, %76 : vector<8x1xf32>
    %78 = math.exp %77 : vector<8x1xf32>
    %79 = vector.broadcast %76 : vector<8x1xf32> to vector<8x8xf32>
    %80 = arith.subf %71, %79 : vector<8x8xf32>
    %81 = math.exp %80 : vector<8x8xf32>
    %c1_42 = arith.constant 1 : index
    %c0_43 = arith.constant 0 : index
    %c0_44 = arith.constant 0 : index
    %82 = vector.load %arg9[%c1_42, %c0_43, %c0_44] : memref<4x8x1xf32, #tpu.memory_space<vmem>>, vector<1x8x1xf32>
    %83 = vector.shape_cast %82 : vector<1x8x1xf32> to vector<8x1xf32>
    %84 = arith.mulf %78, %83 : vector<8x1xf32>
    %cst_45 = arith.constant dense<0.000000e+00> : vector<8xf32>
    %85 = vector.multi_reduction <add>, %81, %cst_45 [1] : vector<8x8xf32> to vector<8xf32>
    %86 = vector.shape_cast %85 : vector<8xf32> to vector<8x1xf32>
    %87 = arith.addf %84, %86 : vector<8x1xf32>
    %c1_46 = arith.constant 1 : index
    %c0_47 = arith.constant 0 : index
    %c0_48 = arith.constant 0 : index
    %88 = vector.load %arg9[%c1_46, %c0_47, %c0_48] : memref<4x8x1xf32, #tpu.memory_space<vmem>>, vector<1x8x1xf32>
    %89 = vector.shape_cast %88 : vector<1x8x1xf32> to vector<8x1xf32>
    %90 = vector.shape_cast %87 : vector<8x1xf32> to vector<1x8x1xf32>
    tpu.vector_store %arg9[%c1_46, %c0_47, %c0_48], %90 {strides = array<i32>} : memref<4x8x1xf32, #tpu.memory_space<vmem>>, vector<1x8x1xf32>,
    %c1_49 = arith.constant 1 : index
    %c0_50 = arith.constant 0 : index
    %c0_51 = arith.constant 0 : index
    %91 = vector.load %arg10[%c1_49, %c0_50, %c0_51] : memref<4x8x16xf32, #tpu.memory_space<vmem>>, vector<1x8x16xf32>
    %92 = vector.shape_cast %91 : vector<1x8x16xf32> to vector<8x16xf32>
    %93 = vector.broadcast %78 : vector<8x1xf32> to vector<8x16xf32>
    %94 = arith.mulf %93, %92 : vector<8x16xf32>
    %95 = arith.truncf %81 : vector<8x8xf32> to vector<8x8xbf16>
    %cst_52 = arith.constant dense<0.000000e+00> : vector<8x16xf32>
    %96 = tpu.matmul %95, %67, %cst_52 {dimension_numbers = #tpu.dot_dimension_numbers<[1], [0], [0], [1], [0, 0, 1, 1], [], []>} : vector<8x8xbf16>, vector<8x16xbf16>, vector<8x16xf32> -> vector<8x16xf32>
    %97 = arith.addf %94, %96 : vector<8x16xf32>
    %c1_53 = arith.constant 1 : index
    %c0_54 = arith.constant 0 : index
    %c0_55 = arith.constant 0 : index
    %98 = vector.load %arg10[%c1_53, %c0_54, %c0_55] : memref<4x8x16xf32, #tpu.memory_space<vmem>>, vector<1x8x16xf32>
    %99 = vector.shape_cast %98 : vector<1x8x16xf32> to vector<8x16xf32>
    %100 = vector.shape_cast %97 : vector<8x16xf32> to vector<1x8x16xf32>
    tpu.vector_store %arg10[%c1_53, %c0_54, %c0_55], %100 {strides = array<i32>} : memref<4x8x16xf32, #tpu.memory_space<vmem>>, vector<1x8x16xf32>,
    %c1_56 = arith.constant 1 : index
    %c0_57 = arith.constant 0 : index
    %c0_58 = arith.constant 0 : index
    %101 = vector.load %arg8[%c1_56, %c0_57, %c0_58] : memref<4x8x1xf32, #tpu.memory_space<vmem>>, vector<1x8x1xf32>
    %102 = vector.shape_cast %101 : vector<1x8x1xf32> to vector<8x1xf32>
    %103 = vector.shape_cast %76 : vector<8x1xf32> to vector<1x8x1xf32>
    tpu.vector_store %arg8[%c1_56, %c0_57, %c0_58], %103 {strides = array<i32>} : memref<4x8x1xf32, #tpu.memory_space<vmem>>, vector<1x8x1xf32>,
    %104 = vector.extract_strided_slice %4 {offsets = [0, 32], sizes = [8, 16], strides = [1, 1]} : vector<8x64xbf16> to vector<8x16xbf16>
    %105 = vector.extract_strided_slice %6 {offsets = [0, 32], sizes = [8, 16], strides = [1, 1]} : vector<8x64xbf16> to vector<8x16xbf16>
    %106 = vector.extract_strided_slice %8 {offsets = [0, 32], sizes = [8, 16], strides = [1, 1]} : vector<8x64xbf16> to vector<8x16xbf16>
    %cst_59 = arith.constant dense<0.000000e+00> : vector<8x8xf32>
    %107 = tpu.matmul %104, %105, %cst_59 {dimension_numbers = #tpu.dot_dimension_numbers<[1], [1], [0], [0], [0, 0, 1, 0], [], []>} : vector<8x16xbf16>, vector<8x16xbf16>, vector<8x8xf32> -> vector<8x8xf32>
    %cst_60 = arith.constant 2.500000e-01 : f32
    %108 = vector.broadcast %cst_60 : f32 to vector<8x8xf32>
    %109 = arith.mulf %107, %108 : vector<8x8xf32>
    %110 = arith.addf %109, %25 : vector<8x8xf32>
    %c2 = arith.constant 2 : index
    %c0_61 = arith.constant 0 : index
    %c0_62 = arith.constant 0 : index
    %111 = vector.load %arg8[%c2, %c0_61, %c0_62] : memref<4x8x1xf32, #tpu.memory_space<vmem>>, vector<1x8x1xf32>
    %112 = vector.shape_cast %111 : vector<1x8x1xf32> to vector<8x1xf32>
    %cst_63 = arith.constant dense<0xFF800000> : vector<8xf32>
    %113 = vector.multi_reduction <maximumf>, %110, %cst_63 [1] : vector<8x8xf32> to vector<8xf32>
    %114 = vector.shape_cast %113 : vector<8xf32> to vector<8x1xf32>
    %115 = arith.maximumf %112, %114 : vector<8x1xf32>
    %116 = arith.subf %112, %115 : vector<8x1xf32>
    %117 = math.exp %116 : vector<8x1xf32>
    %118 = vector.broadcast %115 : vector<8x1xf32> to vector<8x8xf32>
    %119 = arith.subf %110, %118 : vector<8x8xf32>
    %120 = math.exp %119 : vector<8x8xf32>
    %c2_64 = arith.constant 2 : index
    %c0_65 = arith.constant 0 : index
    %c0_66 = arith.constant 0 : index
    %121 = vector.load %arg9[%c2_64, %c0_65, %c0_66] : memref<4x8x1xf32, #tpu.memory_space<vmem>>, vector<1x8x1xf32>
    %122 = vector.shape_cast %121 : vector<1x8x1xf32> to vector<8x1xf32>
    %123 = arith.mulf %117, %122 : vector<8x1xf32>
    %cst_67 = arith.constant dense<0.000000e+00> : vector<8xf32>
    %124 = vector.multi_reduction <add>, %120, %cst_67 [1] : vector<8x8xf32> to vector<8xf32>
    %125 = vector.shape_cast %124 : vector<8xf32> to vector<8x1xf32>
    %126 = arith.addf %123, %125 : vector<8x1xf32>
    %c2_68 = arith.constant 2 : index
    %c0_69 = arith.constant 0 : index
    %c0_70 = arith.constant 0 : index
    %127 = vector.load %arg9[%c2_68, %c0_69, %c0_70] : memref<4x8x1xf32, #tpu.memory_space<vmem>>, vector<1x8x1xf32>
    %128 = vector.shape_cast %127 : vector<1x8x1xf32> to vector<8x1xf32>
    %129 = vector.shape_cast %126 : vector<8x1xf32> to vector<1x8x1xf32>
    tpu.vector_store %arg9[%c2_68, %c0_69, %c0_70], %129 {strides = array<i32>} : memref<4x8x1xf32, #tpu.memory_space<vmem>>, vector<1x8x1xf32>,
    %c2_71 = arith.constant 2 : index
    %c0_72 = arith.constant 0 : index
    %c0_73 = arith.constant 0 : index
    %130 = vector.load %arg10[%c2_71, %c0_72, %c0_73] : memref<4x8x16xf32, #tpu.memory_space<vmem>>, vector<1x8x16xf32>
    %131 = vector.shape_cast %130 : vector<1x8x16xf32> to vector<8x16xf32>
    %132 = vector.broadcast %117 : vector<8x1xf32> to vector<8x16xf32>
    %133 = arith.mulf %132, %131 : vector<8x16xf32>
    %134 = arith.truncf %120 : vector<8x8xf32> to vector<8x8xbf16>
    %cst_74 = arith.constant dense<0.000000e+00> : vector<8x16xf32>
    %135 = tpu.matmul %134, %106, %cst_74 {dimension_numbers = #tpu.dot_dimension_numbers<[1], [0], [0], [1], [0, 0, 1, 1], [], []>} : vector<8x8xbf16>, vector<8x16xbf16>, vector<8x16xf32> -> vector<8x16xf32>
    %136 = arith.addf %133, %135 : vector<8x16xf32>
    %c2_75 = arith.constant 2 : index
    %c0_76 = arith.constant 0 : index
    %c0_77 = arith.constant 0 : index
    %137 = vector.load %arg10[%c2_75, %c0_76, %c0_77] : memref<4x8x16xf32, #tpu.memory_space<vmem>>, vector<1x8x16xf32>
    %138 = vector.shape_cast %137 : vector<1x8x16xf32> to vector<8x16xf32>
    %139 = vector.shape_cast %136 : vector<8x16xf32> to vector<1x8x16xf32>
    tpu.vector_store %arg10[%c2_75, %c0_76, %c0_77], %139 {strides = array<i32>} : memref<4x8x16xf32, #tpu.memory_space<vmem>>, vector<1x8x16xf32>,
    %c2_78 = arith.constant 2 : index
    %c0_79 = arith.constant 0 : index
    %c0_80 = arith.constant 0 : index
    %140 = vector.load %arg8[%c2_78, %c0_79, %c0_80] : memref<4x8x1xf32, #tpu.memory_space<vmem>>, vector<1x8x1xf32>
    %141 = vector.shape_cast %140 : vector<1x8x1xf32> to vector<8x1xf32>
    %142 = vector.shape_cast %115 : vector<8x1xf32> to vector<1x8x1xf32>
    tpu.vector_store %arg8[%c2_78, %c0_79, %c0_80], %142 {strides = array<i32>} : memref<4x8x1xf32, #tpu.memory_space<vmem>>, vector<1x8x1xf32>,
    %143 = vector.extract_strided_slice %4 {offsets = [0, 48], sizes = [8, 16], strides = [1, 1]} : vector<8x64xbf16> to vector<8x16xbf16>
    %144 = vector.extract_strided_slice %6 {offsets = [0, 48], sizes = [8, 16], strides = [1, 1]} : vector<8x64xbf16> to vector<8x16xbf16>
    %145 = vector.extract_strided_slice %8 {offsets = [0, 48], sizes = [8, 16], strides = [1, 1]} : vector<8x64xbf16> to vector<8x16xbf16>
    %cst_81 = arith.constant dense<0.000000e+00> : vector<8x8xf32>
    %146 = tpu.matmul %143, %144, %cst_81 {dimension_numbers = #tpu.dot_dimension_numbers<[1], [1], [0], [0], [0, 0, 1, 0], [], []>} : vector<8x16xbf16>, vector<8x16xbf16>, vector<8x8xf32> -> vector<8x8xf32>
    %cst_82 = arith.constant 2.500000e-01 : f32
    %147 = vector.broadcast %cst_82 : f32 to vector<8x8xf32>
    %148 = arith.mulf %146, %147 : vector<8x8xf32>
    %149 = arith.addf %148, %25 : vector<8x8xf32>
    %c3 = arith.constant 3 : index
    %c0_83 = arith.constant 0 : index
    %c0_84 = arith.constant 0 : index
    %150 = vector.load %arg8[%c3, %c0_83, %c0_84] : memref<4x8x1xf32, #tpu.memory_space<vmem>>, vector<1x8x1xf32>
    %151 = vector.shape_cast %150 : vector<1x8x1xf32> to vector<8x1xf32>
    %cst_85 = arith.constant dense<0xFF800000> : vector<8xf32>
    %152 = vector.multi_reduction <maximumf>, %149, %cst_85 [1] : vector<8x8xf32> to vector<8xf32>
    %153 = vector.shape_cast %152 : vector<8xf32> to vector<8x1xf32>
    %154 = arith.maximumf %151, %153 : vector<8x1xf32>
    %155 = arith.subf %151, %154 : vector<8x1xf32>
    %156 = math.exp %155 : vector<8x1xf32>
    %157 = vector.broadcast %154 : vector<8x1xf32> to vector<8x8xf32>
    %158 = arith.subf %149, %157 : vector<8x8xf32>
    %159 = math.exp %158 : vector<8x8xf32>
    %c3_86 = arith.constant 3 : index
    %c0_87 = arith.constant 0 : index
    %c0_88 = arith.constant 0 : index
    %160 = vector.load %arg9[%c3_86, %c0_87, %c0_88] : memref<4x8x1xf32, #tpu.memory_space<vmem>>, vector<1x8x1xf32>
    %161 = vector.shape_cast %160 : vector<1x8x1xf32> to vector<8x1xf32>
    %162 = arith.mulf %156, %161 : vector<8x1xf32>
    %cst_89 = arith.constant dense<0.000000e+00> : vector<8xf32>
    %163 = vector.multi_reduction <add>, %159, %cst_89 [1] : vector<8x8xf32> to vector<8xf32>
    %164 = vector.shape_cast %163 : vector<8xf32> to vector<8x1xf32>
    %165 = arith.addf %162, %164 : vector<8x1xf32>
    %c3_90 = arith.constant 3 : index
    %c0_91 = arith.constant 0 : index
    %c0_92 = arith.constant 0 : index
    %166 = vector.load %arg9[%c3_90, %c0_91, %c0_92] : memref<4x8x1xf32, #tpu.memory_space<vmem>>, vector<1x8x1xf32>
    %167 = vector.shape_cast %166 : vector<1x8x1xf32> to vector<8x1xf32>
    %168 = vector.shape_cast %165 : vector<8x1xf32> to vector<1x8x1xf32>
    tpu.vector_store %arg9[%c3_90, %c0_91, %c0_92], %168 {strides = array<i32>} : memref<4x8x1xf32, #tpu.memory_space<vmem>>, vector<1x8x1xf32>,
    %c3_93 = arith.constant 3 : index
    %c0_94 = arith.constant 0 : index
    %c0_95 = arith.constant 0 : index
    %169 = vector.load %arg10[%c3_93, %c0_94, %c0_95] : memref<4x8x16xf32, #tpu.memory_space<vmem>>, vector<1x8x16xf32>
    %170 = vector.shape_cast %169 : vector<1x8x16xf32> to vector<8x16xf32>
    %171 = vector.broadcast %156 : vector<8x1xf32> to vector<8x16xf32>
    %172 = arith.mulf %171, %170 : vector<8x16xf32>
    %173 = arith.truncf %159 : vector<8x8xf32> to vector<8x8xbf16>
    %cst_96 = arith.constant dense<0.000000e+00> : vector<8x16xf32>
    %174 = tpu.matmul %173, %145, %cst_96 {dimension_numbers = #tpu.dot_dimension_numbers<[1], [0], [0], [1], [0, 0, 1, 1], [], []>} : vector<8x8xbf16>, vector<8x16xbf16>, vector<8x16xf32> -> vector<8x16xf32>
    %175 = arith.addf %172, %174 : vector<8x16xf32>
    %c3_97 = arith.constant 3 : index
    %c0_98 = arith.constant 0 : index
    %c0_99 = arith.constant 0 : index
    %176 = vector.load %arg10[%c3_97, %c0_98, %c0_99] : memref<4x8x16xf32, #tpu.memory_space<vmem>>, vector<1x8x16xf32>
    %177 = vector.shape_cast %176 : vector<1x8x16xf32> to vector<8x16xf32>
    %178 = vector.shape_cast %175 : vector<8x16xf32> to vector<1x8x16xf32>
    tpu.vector_store %arg10[%c3_97, %c0_98, %c0_99], %178 {strides = array<i32>} : memref<4x8x16xf32, #tpu.memory_space<vmem>>, vector<1x8x16xf32>,
    %c3_100 = arith.constant 3 : index
    %c0_101 = arith.constant 0 : index
    %c0_102 = arith.constant 0 : index
    %179 = vector.load %arg8[%c3_100, %c0_101, %c0_102] : memref<4x8x1xf32, #tpu.memory_space<vmem>>, vector<1x8x1xf32>
    %180 = vector.shape_cast %179 : vector<1x8x1xf32> to vector<8x1xf32>
    %181 = vector.shape_cast %154 : vector<8x1xf32> to vector<1x8x1xf32>
    tpu.vector_store %arg8[%c3_100, %c0_101, %c0_102], %181 {strides = array<i32>} : memref<4x8x1xf32, #tpu.memory_space<vmem>>, vector<1x8x1xf32>,
    %c0_i32_103 = arith.constant 0 : i32
    %182 = arith.cmpi eq, %arg2, %c0_i32_103 : i32
    %183 = arith.extui %182 : i1 to i32
    %c0_i32_104 = arith.constant 0 : i32
    %184 = arith.cmpi ne, %183, %c0_i32_104 : i32
    scf.if %184 {
      %c0_105 = arith.constant 0 : index
      %c0_106 = arith.constant 0 : index
      %c0_107 = arith.constant 0 : index
      %185 = vector.load %arg10[%c0_105, %c0_106, %c0_107] : memref<4x8x16xf32, #tpu.memory_space<vmem>>, vector<1x8x16xf32>
      %186 = vector.shape_cast %185 : vector<1x8x16xf32> to vector<8x16xf32>
      %c0_108 = arith.constant 0 : index
      %c0_109 = arith.constant 0 : index
      %c0_110 = arith.constant 0 : index
      %187 = vector.load %arg9[%c0_108, %c0_109, %c0_110] : memref<4x8x1xf32, #tpu.memory_space<vmem>>, vector<1x8x1xf32>
      %188 = vector.shape_cast %187 : vector<1x8x1xf32> to vector<8x1xf32>
      %189 = tpu.reciprocal %188 {approx = true} : vector<8x1xf32> -> vector<8x1xf32>
      %190 = vector.broadcast %189 : vector<8x1xf32> to vector<8x16xf32>
      %191 = arith.mulf %186, %190 : vector<8x16xf32>
      %c1_111 = arith.constant 1 : index
      %c0_112 = arith.constant 0 : index
      %c0_113 = arith.constant 0 : index
      %192 = vector.load %arg10[%c1_111, %c0_112, %c0_113] : memref<4x8x16xf32, #tpu.memory_space<vmem>>, vector<1x8x16xf32>
      %193 = vector.shape_cast %192 : vector<1x8x16xf32> to vector<8x16xf32>
      %c1_114 = arith.constant 1 : index
      %c0_115 = arith.constant 0 : index
      %c0_116 = arith.constant 0 : index
      %194 = vector.load %arg9[%c1_114, %c0_115, %c0_116] : memref<4x8x1xf32, #tpu.memory_space<vmem>>, vector<1x8x1xf32>
      %195 = vector.shape_cast %194 : vector<1x8x1xf32> to vector<8x1xf32>
      %196 = tpu.reciprocal %195 {approx = true} : vector<8x1xf32> -> vector<8x1xf32>
      %197 = vector.broadcast %196 : vector<8x1xf32> to vector<8x16xf32>
      %198 = arith.mulf %193, %197 : vector<8x16xf32>
      %c2_117 = arith.constant 2 : index
      %c0_118 = arith.constant 0 : index
      %c0_119 = arith.constant 0 : index
      %199 = vector.load %arg10[%c2_117, %c0_118, %c0_119] : memref<4x8x16xf32, #tpu.memory_space<vmem>>, vector<1x8x16xf32>
      %200 = vector.shape_cast %199 : vector<1x8x16xf32> to vector<8x16xf32>
      %c2_120 = arith.constant 2 : index
      %c0_121 = arith.constant 0 : index
      %c0_122 = arith.constant 0 : index
      %201 = vector.load %arg9[%c2_120, %c0_121, %c0_122] : memref<4x8x1xf32, #tpu.memory_space<vmem>>, vector<1x8x1xf32>
      %202 = vector.shape_cast %201 : vector<1x8x1xf32> to vector<8x1xf32>
      %203 = tpu.reciprocal %202 {approx = true} : vector<8x1xf32> -> vector<8x1xf32>
      %204 = vector.broadcast %203 : vector<8x1xf32> to vector<8x16xf32>
      %205 = arith.mulf %200, %204 : vector<8x16xf32>
      %c3_123 = arith.constant 3 : index
      %c0_124 = arith.constant 0 : index
      %c0_125 = arith.constant 0 : index
      %206 = vector.load %arg10[%c3_123, %c0_124, %c0_125] : memref<4x8x16xf32, #tpu.memory_space<vmem>>, vector<1x8x16xf32>
      %207 = vector.shape_cast %206 : vector<1x8x16xf32> to vector<8x16xf32>
      %c3_126 = arith.constant 3 : index
      %c0_127 = arith.constant 0 : index
      %c0_128 = arith.constant 0 : index
      %208 = vector.load %arg9[%c3_126, %c0_127, %c0_128] : memref<4x8x1xf32, #tpu.memory_space<vmem>>, vector<1x8x1xf32>
      %209 = vector.shape_cast %208 : vector<1x8x1xf32> to vector<8x1xf32>
      %210 = tpu.reciprocal %209 {approx = true} : vector<8x1xf32> -> vector<8x1xf32>
      %211 = vector.broadcast %210 : vector<8x1xf32> to vector<8x16xf32>
      %212 = arith.mulf %207, %211 : vector<8x16xf32>
      %213 = tpu.concatenate %191, %198, %205, %212 in 1 : vector<8x16xf32>, vector<8x16xf32>, vector<8x16xf32>, vector<8x16xf32> -> vector<8x64xf32>
      %214 = arith.truncf %213 : vector<8x64xf32> to vector<8x64xbf16>
      %c0_129 = arith.constant 0 : index
      %c0_130 = arith.constant 0 : index
      %c0_131 = arith.constant 0 : index
      %215 = vector.load %arg7[%c0_129, %c0_130, %c0_131] : memref<1x8x64xbf16, #tpu.memory_space<vmem>>, vector<1x8x64xbf16>
      %216 = vector.shape_cast %215 : vector<1x8x64xbf16> to vector<8x64xbf16>
      %217 = vector.shape_cast %214 : vector<8x64xbf16> to vector<1x8x64xbf16>
      tpu.vector_store %arg7[%c0_129, %c0_130, %c0_131], %217 {strides = array<i32>} : memref<1x8x64xbf16, #tpu.memory_space<vmem>>, vector<1x8x64xbf16>,
    } else {
    }
    return
  }
  func.func @transform_0(%arg0: i32, %arg1: i32, %arg2: i32) -> (i32, i32, i32) {
    %c0_i32 = arith.constant 0 : i32
    %c0_i32_0 = arith.constant 0 : i32
    return %arg0, %arg1, %c0_i32 : i32, i32, i32
  }
  func.func @transform_1(%arg0: i32, %arg1: i32, %arg2: i32) -> (i32, i32, i32) {
    %c0_i32 = arith.constant 0 : i32
    %c0_i32_0 = arith.constant 0 : i32
    return %arg0, %arg2, %c0_i32 : i32, i32, i32
  }
  func.func @transform_2(%arg0: i32, %arg1: i32, %arg2: i32) -> (i32, i32, i32) {
    %c0_i32 = arith.constant 0 : i32
    %c0_i32_0 = arith.constant 0 : i32
    return %arg0, %arg2, %c0_i32 : i32, i32, i32
  }
  func.func @transform_3(%arg0: i32, %arg1: i32, %arg2: i32) -> (i32, i32, i32) {
    %c0_i32 = arith.constant 0 : i32
    %c0_i32_0 = arith.constant 0 : i32
    return %arg0, %c0_i32, %arg2 : i32, i32, i32
  }
  func.func @transform_4(%arg0: i32, %arg1: i32, %arg2: i32) -> (i32, i32, i32) {
    %c0_i32 = arith.constant 0 : i32
    %c0_i32_0 = arith.constant 0 : i32
    return %arg0, %arg1, %c0_i32 : i32, i32, i32
  }
}

module attributes {stable_mosaic.version = 11 : i64} {
  func.func @_linear_split_kernel(%arg0: i32, %arg1: memref<16x64xbf16, #tpu.memory_space<vmem>>, %arg2: memref<64x128xbf16, #tpu.memory_space<vmem>>, %arg3: memref<1x128xf32, #tpu.memory_space<vmem>>, %arg4: memref<16x64xbf16, #tpu.memory_space<vmem>>, %arg5: memref<16x64xbf16, #tpu.memory_space<vmem>>) attributes {dimension_semantics = [#tpu.dimension_semantics<parallel>], iteration_bounds = array<i64: 1>, scalar_prefetch = 0 : i64, scratch_operands = 0 : i64, tpu.core_type = #tpu.core_type<tc>, window_params = [{transform_indices = @transform_0, window_bounds = array<i64: 16, 64>}, {pipeline_mode = #tpu.pipeline_mode<synchronous>, transform_indices = @transform_1, window_bounds = array<i64: 64, 128>}, {pipeline_mode = #tpu.pipeline_mode<synchronous>, transform_indices = @transform_2, window_bounds = array<i64: 1, 128>}, {transform_indices = @transform_3, window_bounds = array<i64: 16, 64>}, {transform_indices = @transform_4, window_bounds = array<i64: 16, 64>}]} {
    %c0 = arith.constant 0 : index
    %c0_0 = arith.constant 0 : index
    %0 = vector.load %arg1[%c0, %c0_0] : memref<16x64xbf16, #tpu.memory_space<vmem>>, vector<16x64xbf16>
    %c0_1 = arith.constant 0 : index
    %c0_2 = arith.constant 0 : index
    %1 = vector.load %arg2[%c0_1, %c0_2] : memref<64x128xbf16, #tpu.memory_space<vmem>>, vector<64x128xbf16>
    %cst = arith.constant dense<0.000000e+00> : vector<16x128xf32>
    %2 = tpu.matmul %0, %1, %cst {dimension_numbers = #tpu.dot_dimension_numbers<[1], [0], [0], [1], [0, 0, 1, 1], [], []>} : vector<16x64xbf16>, vector<64x128xbf16>, vector<16x128xf32> -> vector<16x128xf32>
    %c0_3 = arith.constant 0 : index
    %c0_4 = arith.constant 0 : index
    %3 = vector.load %arg3[%c0_3, %c0_4] : memref<1x128xf32, #tpu.memory_space<vmem>>, vector<1x128xf32>
    %4 = vector.broadcast %3 : vector<1x128xf32> to vector<16x128xf32>
    %5 = arith.addf %2, %4 : vector<16x128xf32>
    %6 = vector.extract_strided_slice %5 {offsets = [0, 0], sizes = [16, 64], strides = [1, 1]} : vector<16x128xf32> to vector<16x64xf32>
    %7 = arith.truncf %6 : vector<16x64xf32> to vector<16x64xbf16>
    %c0_5 = arith.constant 0 : index
    %c0_6 = arith.constant 0 : index
    %8 = vector.load %arg4[%c0_5, %c0_6] : memref<16x64xbf16, #tpu.memory_space<vmem>>, vector<16x64xbf16>
    tpu.vector_store %arg4[%c0_5, %c0_6], %7 {strides = array<i32>} : memref<16x64xbf16, #tpu.memory_space<vmem>>, vector<16x64xbf16>,
    %9 = vector.extract_strided_slice %5 {offsets = [0, 64], sizes = [16, 64], strides = [1, 1]} : vector<16x128xf32> to vector<16x64xf32>
    %10 = arith.truncf %9 : vector<16x64xf32> to vector<16x64xbf16>
    %c0_7 = arith.constant 0 : index
    %c0_8 = arith.constant 0 : index
    %11 = vector.load %arg5[%c0_7, %c0_8] : memref<16x64xbf16, #tpu.memory_space<vmem>>, vector<16x64xbf16>
    tpu.vector_store %arg5[%c0_7, %c0_8], %10 {strides = array<i32>} : memref<16x64xbf16, #tpu.memory_space<vmem>>, vector<16x64xbf16>,
    return
  }
  func.func @transform_0(%arg0: i32) -> (i32, i32) {
    %c0_i32 = arith.constant 0 : i32
    %c0_i32_0 = arith.constant 0 : i32
    return %arg0, %c0_i32 : i32, i32
  }
  func.func @transform_1(%arg0: i32) -> (i32, i32) {
    %c0_i32 = arith.constant 0 : i32
    %c0_i32_0 = arith.constant 0 : i32
    %c0_i32_1 = arith.constant 0 : i32
    return %c0_i32, %c0_i32_0 : i32, i32
  }
  func.func @transform_2(%arg0: i32) -> (i32, i32) {
    %c0_i32 = arith.constant 0 : i32
    %c0_i32_0 = arith.constant 0 : i32
    %c0_i32_1 = arith.constant 0 : i32
    return %c0_i32, %c0_i32_0 : i32, i32
  }
  func.func @transform_3(%arg0: i32) -> (i32, i32) {
    %c0_i32 = arith.constant 0 : i32
    %c0_i32_0 = arith.constant 0 : i32
    return %arg0, %c0_i32 : i32, i32
  }
  func.func @transform_4(%arg0: i32) -> (i32, i32) {
    %c0_i32 = arith.constant 0 : i32
    %c0_i32_0 = arith.constant 0 : i32
    return %arg0, %c0_i32 : i32, i32
  }
}

module attributes {stable_mosaic.version = 11 : i64} {
  func.func @_ln_kernel(%arg0: i32, %arg1: memref<16x64xbf16, #tpu.memory_space<vmem>>, %arg2: memref<1x64xf32, #tpu.memory_space<vmem>>, %arg3: memref<1x64xf32, #tpu.memory_space<vmem>>, %arg4: memref<16x64xbf16, #tpu.memory_space<vmem>>) attributes {dimension_semantics = [#tpu.dimension_semantics<parallel>], iteration_bounds = array<i64: 1>, scalar_prefetch = 0 : i64, scratch_operands = 0 : i64, tpu.core_type = #tpu.core_type<tc>, window_params = [{transform_indices = @transform_0, window_bounds = array<i64: 16, 64>}, {pipeline_mode = #tpu.pipeline_mode<synchronous>, transform_indices = @transform_1, window_bounds = array<i64: 1, 64>}, {pipeline_mode = #tpu.pipeline_mode<synchronous>, transform_indices = @transform_2, window_bounds = array<i64: 1, 64>}, {transform_indices = @transform_3, window_bounds = array<i64: 16, 64>}]} {
    %c0 = arith.constant 0 : index
    %c0_0 = arith.constant 0 : index
    %0 = vector.load %arg1[%c0, %c0_0] : memref<16x64xbf16, #tpu.memory_space<vmem>>, vector<16x64xbf16>
    %1 = arith.extf %0 : vector<16x64xbf16> to vector<16x64xf32>
    %c0_1 = arith.constant 0 : index
    %c0_2 = arith.constant 0 : index
    %2 = vector.load %arg2[%c0_1, %c0_2] : memref<1x64xf32, #tpu.memory_space<vmem>>, vector<1x64xf32>
    %c0_3 = arith.constant 0 : index
    %c0_4 = arith.constant 0 : index
    %3 = vector.load %arg3[%c0_3, %c0_4] : memref<1x64xf32, #tpu.memory_space<vmem>>, vector<1x64xf32>
    %cst = arith.constant dense<0.000000e+00> : vector<16xf32>
    %4 = vector.multi_reduction <add>, %1, %cst [1] : vector<16x64xf32> to vector<16xf32>
    %5 = vector.shape_cast %4 : vector<16xf32> to vector<16x1xf32>
    %cst_5 = arith.constant 6.400000e+01 : f32
    %6 = vector.broadcast %cst_5 : f32 to vector<16x1xf32>
    %7 = arith.divf %5, %6 : vector<16x1xf32>
    %8 = vector.broadcast %7 : vector<16x1xf32> to vector<16x64xf32>
    %9 = arith.subf %1, %8 : vector<16x64xf32>
    %10 = arith.mulf %9, %9 : vector<16x64xf32>
    %cst_6 = arith.constant dense<0.000000e+00> : vector<16xf32>
    %11 = vector.multi_reduction <add>, %10, %cst_6 [1] : vector<16x64xf32> to vector<16xf32>
    %12 = vector.shape_cast %11 : vector<16xf32> to vector<16x1xf32>
    %cst_7 = arith.constant 6.400000e+01 : f32
    %13 = vector.broadcast %cst_7 : f32 to vector<16x1xf32>
    %14 = arith.divf %12, %13 : vector<16x1xf32>
    %15 = vector.broadcast %7 : vector<16x1xf32> to vector<16x64xf32>
    %16 = arith.subf %1, %15 : vector<16x64xf32>
    %cst_8 = arith.constant 9.99999974E-6 : f32
    %17 = vector.broadcast %cst_8 : f32 to vector<16x1xf32>
    %18 = arith.addf %14, %17 : vector<16x1xf32>
    %19 = math.rsqrt %18 : vector<16x1xf32>
    %20 = vector.broadcast %19 : vector<16x1xf32> to vector<16x64xf32>
    %21 = arith.mulf %16, %20 : vector<16x64xf32>
    %22 = vector.broadcast %2 : vector<1x64xf32> to vector<16x64xf32>
    %23 = arith.mulf %21, %22 : vector<16x64xf32>
    %24 = vector.broadcast %3 : vector<1x64xf32> to vector<16x64xf32>
    %25 = arith.addf %23, %24 : vector<16x64xf32>
    %26 = arith.truncf %25 : vector<16x64xf32> to vector<16x64xbf16>
    %c0_9 = arith.constant 0 : index
    %c0_10 = arith.constant 0 : index
    %27 = vector.load %arg4[%c0_9, %c0_10] : memref<16x64xbf16, #tpu.memory_space<vmem>>, vector<16x64xbf16>
    tpu.vector_store %arg4[%c0_9, %c0_10], %26 {strides = array<i32>} : memref<16x64xbf16, #tpu.memory_space<vmem>>, vector<16x64xbf16>,
    return
  }
  func.func @transform_0(%arg0: i32) -> (i32, i32) {
    %c0_i32 = arith.constant 0 : i32
    %c0_i32_0 = arith.constant 0 : i32
    return %arg0, %c0_i32 : i32, i32
  }
  func.func @transform_1(%arg0: i32) -> (i32, i32) {
    %c0_i32 = arith.constant 0 : i32
    %c0_i32_0 = arith.constant 0 : i32
    %c0_i32_1 = arith.constant 0 : i32
    return %c0_i32, %c0_i32_0 : i32, i32
  }
  func.func @transform_2(%arg0: i32) -> (i32, i32) {
    %c0_i32 = arith.constant 0 : i32
    %c0_i32_0 = arith.constant 0 : i32
    %c0_i32_1 = arith.constant 0 : i32
    return %c0_i32, %c0_i32_0 : i32, i32
  }
  func.func @transform_3(%arg0: i32) -> (i32, i32) {
    %c0_i32 = arith.constant 0 : i32
    %c0_i32_0 = arith.constant 0 : i32
    return %arg0, %c0_i32 : i32, i32
  }
}

module attributes {stable_mosaic.version = 11 : i64} {
  func.func @_linear_split_kernel(%arg0: i32, %arg1: memref<16x64xbf16, #tpu.memory_space<vmem>>, %arg2: memref<64x64xbf16, #tpu.memory_space<vmem>>, %arg3: memref<1x64xf32, #tpu.memory_space<vmem>>, %arg4: memref<16x64xbf16, #tpu.memory_space<vmem>>) attributes {dimension_semantics = [#tpu.dimension_semantics<parallel>], iteration_bounds = array<i64: 1>, scalar_prefetch = 0 : i64, scratch_operands = 0 : i64, tpu.core_type = #tpu.core_type<tc>, window_params = [{transform_indices = @transform_0, window_bounds = array<i64: 16, 64>}, {pipeline_mode = #tpu.pipeline_mode<synchronous>, transform_indices = @transform_1, window_bounds = array<i64: 64, 64>}, {pipeline_mode = #tpu.pipeline_mode<synchronous>, transform_indices = @transform_2, window_bounds = array<i64: 1, 64>}, {transform_indices = @transform_3, window_bounds = array<i64: 16, 64>}]} {
    %c0 = arith.constant 0 : index
    %c0_0 = arith.constant 0 : index
    %0 = vector.load %arg1[%c0, %c0_0] : memref<16x64xbf16, #tpu.memory_space<vmem>>, vector<16x64xbf16>
    %c0_1 = arith.constant 0 : index
    %c0_2 = arith.constant 0 : index
    %1 = vector.load %arg2[%c0_1, %c0_2] : memref<64x64xbf16, #tpu.memory_space<vmem>>, vector<64x64xbf16>
    %cst = arith.constant dense<0.000000e+00> : vector<16x64xf32>
    %2 = tpu.matmul %0, %1, %cst {dimension_numbers = #tpu.dot_dimension_numbers<[1], [0], [0], [1], [0, 0, 1, 1], [], []>} : vector<16x64xbf16>, vector<64x64xbf16>, vector<16x64xf32> -> vector<16x64xf32>
    %c0_3 = arith.constant 0 : index
    %c0_4 = arith.constant 0 : index
    %3 = vector.load %arg3[%c0_3, %c0_4] : memref<1x64xf32, #tpu.memory_space<vmem>>, vector<1x64xf32>
    %4 = vector.broadcast %3 : vector<1x64xf32> to vector<16x64xf32>
    %5 = arith.addf %2, %4 : vector<16x64xf32>
    %6 = arith.truncf %5 : vector<16x64xf32> to vector<16x64xbf16>
    %c0_5 = arith.constant 0 : index
    %c0_6 = arith.constant 0 : index
    %7 = vector.load %arg4[%c0_5, %c0_6] : memref<16x64xbf16, #tpu.memory_space<vmem>>, vector<16x64xbf16>
    tpu.vector_store %arg4[%c0_5, %c0_6], %6 {strides = array<i32>} : memref<16x64xbf16, #tpu.memory_space<vmem>>, vector<16x64xbf16>,
    return
  }
  func.func @transform_0(%arg0: i32) -> (i32, i32) {
    %c0_i32 = arith.constant 0 : i32
    %c0_i32_0 = arith.constant 0 : i32
    return %arg0, %c0_i32 : i32, i32
  }
  func.func @transform_1(%arg0: i32) -> (i32, i32) {
    %c0_i32 = arith.constant 0 : i32
    %c0_i32_0 = arith.constant 0 : i32
    %c0_i32_1 = arith.constant 0 : i32
    return %c0_i32, %c0_i32_0 : i32, i32
  }
  func.func @transform_2(%arg0: i32) -> (i32, i32) {
    %c0_i32 = arith.constant 0 : i32
    %c0_i32_0 = arith.constant 0 : i32
    %c0_i32_1 = arith.constant 0 : i32
    return %c0_i32, %c0_i32_0 : i32, i32
  }
  func.func @transform_3(%arg0: i32) -> (i32, i32) {
    %c0_i32 = arith.constant 0 : i32
    %c0_i32_0 = arith.constant 0 : i32
    return %arg0, %c0_i32 : i32, i32
  }
}

module attributes {stable_mosaic.version = 11 : i64} {
  func.func @_linear_split_kernel(%arg0: i32, %arg1: memref<16x64xbf16, #tpu.memory_space<vmem>>, %arg2: memref<64x64xbf16, #tpu.memory_space<vmem>>, %arg3: memref<1x64xf32, #tpu.memory_space<vmem>>, %arg4: memref<16x64xbf16, #tpu.memory_space<vmem>>) attributes {dimension_semantics = [#tpu.dimension_semantics<parallel>], iteration_bounds = array<i64: 1>, scalar_prefetch = 0 : i64, scratch_operands = 0 : i64, tpu.core_type = #tpu.core_type<tc>, window_params = [{transform_indices = @transform_0, window_bounds = array<i64: 16, 64>}, {pipeline_mode = #tpu.pipeline_mode<synchronous>, transform_indices = @transform_1, window_bounds = array<i64: 64, 64>}, {pipeline_mode = #tpu.pipeline_mode<synchronous>, transform_indices = @transform_2, window_bounds = array<i64: 1, 64>}, {transform_indices = @transform_3, window_bounds = array<i64: 16, 64>}]} {
    %c0 = arith.constant 0 : index
    %c0_0 = arith.constant 0 : index
    %0 = vector.load %arg1[%c0, %c0_0] : memref<16x64xbf16, #tpu.memory_space<vmem>>, vector<16x64xbf16>
    %c0_1 = arith.constant 0 : index
    %c0_2 = arith.constant 0 : index
    %1 = vector.load %arg2[%c0_1, %c0_2] : memref<64x64xbf16, #tpu.memory_space<vmem>>, vector<64x64xbf16>
    %cst = arith.constant dense<0.000000e+00> : vector<16x64xf32>
    %2 = tpu.matmul %0, %1, %cst {dimension_numbers = #tpu.dot_dimension_numbers<[1], [0], [0], [1], [0, 0, 1, 1], [], []>} : vector<16x64xbf16>, vector<64x64xbf16>, vector<16x64xf32> -> vector<16x64xf32>
    %c0_3 = arith.constant 0 : index
    %c0_4 = arith.constant 0 : index
    %3 = vector.load %arg3[%c0_3, %c0_4] : memref<1x64xf32, #tpu.memory_space<vmem>>, vector<1x64xf32>
    %4 = vector.broadcast %3 : vector<1x64xf32> to vector<16x64xf32>
    %5 = arith.addf %2, %4 : vector<16x64xf32>
    %6 = arith.truncf %5 : vector<16x64xf32> to vector<16x64xbf16>
    %c0_5 = arith.constant 0 : index
    %c0_6 = arith.constant 0 : index
    %7 = vector.load %arg4[%c0_5, %c0_6] : memref<16x64xbf16, #tpu.memory_space<vmem>>, vector<16x64xbf16>
    tpu.vector_store %arg4[%c0_5, %c0_6], %6 {strides = array<i32>} : memref<16x64xbf16, #tpu.memory_space<vmem>>, vector<16x64xbf16>,
    return
  }
  func.func @transform_0(%arg0: i32) -> (i32, i32) {
    %c0_i32 = arith.constant 0 : i32
    %c0_i32_0 = arith.constant 0 : i32
    return %arg0, %c0_i32 : i32, i32
  }
  func.func @transform_1(%arg0: i32) -> (i32, i32) {
    %c0_i32 = arith.constant 0 : i32
    %c0_i32_0 = arith.constant 0 : i32
    %c0_i32_1 = arith.constant 0 : i32
    return %c0_i32, %c0_i32_0 : i32, i32
  }
  func.func @transform_2(%arg0: i32) -> (i32, i32) {
    %c0_i32 = arith.constant 0 : i32
    %c0_i32_0 = arith.constant 0 : i32
    %c0_i32_1 = arith.constant 0 : i32
    return %c0_i32, %c0_i32_0 : i32, i32
  }
  func.func @transform_3(%arg0: i32) -> (i32, i32) {
    %c0_i32 = arith.constant 0 : i32
    %c0_i32_0 = arith.constant 0 : i32
    return %arg0, %c0_i32 : i32, i32
  }
}

module attributes {stable_mosaic.version = 11 : i64} {
  func.func @_linear_res_ln_kernel(%arg0: i32, %arg1: memref<16x64xbf16, #tpu.memory_space<vmem>>, %arg2: memref<64x64xbf16, #tpu.memory_space<vmem>>, %arg3: memref<1x64xf32, #tpu.memory_space<vmem>>, %arg4: memref<16x64xbf16, #tpu.memory_space<vmem>>, %arg5: memref<1x64xf32, #tpu.memory_space<vmem>>, %arg6: memref<1x64xf32, #tpu.memory_space<vmem>>, %arg7: memref<16x64xbf16, #tpu.memory_space<vmem>>) attributes {dimension_semantics = [#tpu.dimension_semantics<parallel>], iteration_bounds = array<i64: 1>, scalar_prefetch = 0 : i64, scratch_operands = 0 : i64, tpu.core_type = #tpu.core_type<tc>, window_params = [{transform_indices = @transform_0, window_bounds = array<i64: 16, 64>}, {pipeline_mode = #tpu.pipeline_mode<synchronous>, transform_indices = @transform_1, window_bounds = array<i64: 64, 64>}, {pipeline_mode = #tpu.pipeline_mode<synchronous>, transform_indices = @transform_2, window_bounds = array<i64: 1, 64>}, {transform_indices = @transform_3, window_bounds = array<i64: 16, 64>}, {pipeline_mode = #tpu.pipeline_mode<synchronous>, transform_indices = @transform_4, window_bounds = array<i64: 1, 64>}, {pipeline_mode = #tpu.pipeline_mode<synchronous>, transform_indices = @transform_5, window_bounds = array<i64: 1, 64>}, {transform_indices = @transform_6, window_bounds = array<i64: 16, 64>}]} {
    %c0 = arith.constant 0 : index
    %c0_0 = arith.constant 0 : index
    %0 = vector.load %arg1[%c0, %c0_0] : memref<16x64xbf16, #tpu.memory_space<vmem>>, vector<16x64xbf16>
    %c0_1 = arith.constant 0 : index
    %c0_2 = arith.constant 0 : index
    %1 = vector.load %arg2[%c0_1, %c0_2] : memref<64x64xbf16, #tpu.memory_space<vmem>>, vector<64x64xbf16>
    %cst = arith.constant dense<0.000000e+00> : vector<16x64xf32>
    %2 = tpu.matmul %0, %1, %cst {dimension_numbers = #tpu.dot_dimension_numbers<[1], [0], [0], [1], [0, 0, 1, 1], [], []>} : vector<16x64xbf16>, vector<64x64xbf16>, vector<16x64xf32> -> vector<16x64xf32>
    %c0_3 = arith.constant 0 : index
    %c0_4 = arith.constant 0 : index
    %3 = vector.load %arg3[%c0_3, %c0_4] : memref<1x64xf32, #tpu.memory_space<vmem>>, vector<1x64xf32>
    %4 = vector.broadcast %3 : vector<1x64xf32> to vector<16x64xf32>
    %5 = arith.addf %2, %4 : vector<16x64xf32>
    %c0_5 = arith.constant 0 : index
    %c0_6 = arith.constant 0 : index
    %6 = vector.load %arg4[%c0_5, %c0_6] : memref<16x64xbf16, #tpu.memory_space<vmem>>, vector<16x64xbf16>
    %7 = arith.extf %6 : vector<16x64xbf16> to vector<16x64xf32>
    %8 = arith.addf %5, %7 : vector<16x64xf32>
    %c0_7 = arith.constant 0 : index
    %c0_8 = arith.constant 0 : index
    %9 = vector.load %arg5[%c0_7, %c0_8] : memref<1x64xf32, #tpu.memory_space<vmem>>, vector<1x64xf32>
    %c0_9 = arith.constant 0 : index
    %c0_10 = arith.constant 0 : index
    %10 = vector.load %arg6[%c0_9, %c0_10] : memref<1x64xf32, #tpu.memory_space<vmem>>, vector<1x64xf32>
    %cst_11 = arith.constant dense<0.000000e+00> : vector<16xf32>
    %11 = vector.multi_reduction <add>, %8, %cst_11 [1] : vector<16x64xf32> to vector<16xf32>
    %12 = vector.shape_cast %11 : vector<16xf32> to vector<16x1xf32>
    %cst_12 = arith.constant 6.400000e+01 : f32
    %13 = vector.broadcast %cst_12 : f32 to vector<16x1xf32>
    %14 = arith.divf %12, %13 : vector<16x1xf32>
    %15 = vector.broadcast %14 : vector<16x1xf32> to vector<16x64xf32>
    %16 = arith.subf %8, %15 : vector<16x64xf32>
    %17 = arith.mulf %16, %16 : vector<16x64xf32>
    %cst_13 = arith.constant dense<0.000000e+00> : vector<16xf32>
    %18 = vector.multi_reduction <add>, %17, %cst_13 [1] : vector<16x64xf32> to vector<16xf32>
    %19 = vector.shape_cast %18 : vector<16xf32> to vector<16x1xf32>
    %cst_14 = arith.constant 6.400000e+01 : f32
    %20 = vector.broadcast %cst_14 : f32 to vector<16x1xf32>
    %21 = arith.divf %19, %20 : vector<16x1xf32>
    %22 = vector.broadcast %14 : vector<16x1xf32> to vector<16x64xf32>
    %23 = arith.subf %8, %22 : vector<16x64xf32>
    %cst_15 = arith.constant 9.99999974E-6 : f32
    %24 = vector.broadcast %cst_15 : f32 to vector<16x1xf32>
    %25 = arith.addf %21, %24 : vector<16x1xf32>
    %26 = math.rsqrt %25 : vector<16x1xf32>
    %27 = vector.broadcast %26 : vector<16x1xf32> to vector<16x64xf32>
    %28 = arith.mulf %23, %27 : vector<16x64xf32>
    %29 = vector.broadcast %9 : vector<1x64xf32> to vector<16x64xf32>
    %30 = arith.mulf %28, %29 : vector<16x64xf32>
    %31 = vector.broadcast %10 : vector<1x64xf32> to vector<16x64xf32>
    %32 = arith.addf %30, %31 : vector<16x64xf32>
    %33 = arith.truncf %32 : vector<16x64xf32> to vector<16x64xbf16>
    %c0_16 = arith.constant 0 : index
    %c0_17 = arith.constant 0 : index
    %34 = vector.load %arg7[%c0_16, %c0_17] : memref<16x64xbf16, #tpu.memory_space<vmem>>, vector<16x64xbf16>
    tpu.vector_store %arg7[%c0_16, %c0_17], %33 {strides = array<i32>} : memref<16x64xbf16, #tpu.memory_space<vmem>>, vector<16x64xbf16>,
    return
  }
  func.func @transform_0(%arg0: i32) -> (i32, i32) {
    %c0_i32 = arith.constant 0 : i32
    %c0_i32_0 = arith.constant 0 : i32
    return %arg0, %c0_i32 : i32, i32
  }
  func.func @transform_1(%arg0: i32) -> (i32, i32) {
    %c0_i32 = arith.constant 0 : i32
    %c0_i32_0 = arith.constant 0 : i32
    %c0_i32_1 = arith.constant 0 : i32
    return %c0_i32, %c0_i32_0 : i32, i32
  }
  func.func @transform_2(%arg0: i32) -> (i32, i32) {
    %c0_i32 = arith.constant 0 : i32
    %c0_i32_0 = arith.constant 0 : i32
    %c0_i32_1 = arith.constant 0 : i32
    return %c0_i32, %c0_i32_0 : i32, i32
  }
  func.func @transform_3(%arg0: i32) -> (i32, i32) {
    %c0_i32 = arith.constant 0 : i32
    %c0_i32_0 = arith.constant 0 : i32
    return %arg0, %c0_i32 : i32, i32
  }
  func.func @transform_4(%arg0: i32) -> (i32, i32) {
    %c0_i32 = arith.constant 0 : i32
    %c0_i32_0 = arith.constant 0 : i32
    %c0_i32_1 = arith.constant 0 : i32
    return %c0_i32, %c0_i32_0 : i32, i32
  }
  func.func @transform_5(%arg0: i32) -> (i32, i32) {
    %c0_i32 = arith.constant 0 : i32
    %c0_i32_0 = arith.constant 0 : i32
    %c0_i32_1 = arith.constant 0 : i32
    return %c0_i32, %c0_i32_0 : i32, i32
  }
  func.func @transform_6(%arg0: i32) -> (i32, i32) {
    %c0_i32 = arith.constant 0 : i32
    %c0_i32_0 = arith.constant 0 : i32
    return %arg0, %c0_i32 : i32, i32
  }
}

module attributes {stable_mosaic.version = 11 : i64} {
  func.func @_linear_res_ln_kernel(%arg0: i32, %arg1: memref<16x64xbf16, #tpu.memory_space<vmem>>, %arg2: memref<64x64xbf16, #tpu.memory_space<vmem>>, %arg3: memref<1x64xf32, #tpu.memory_space<vmem>>, %arg4: memref<16x64xbf16, #tpu.memory_space<vmem>>, %arg5: memref<1x64xf32, #tpu.memory_space<vmem>>, %arg6: memref<1x64xf32, #tpu.memory_space<vmem>>, %arg7: memref<16x64xbf16, #tpu.memory_space<vmem>>) attributes {dimension_semantics = [#tpu.dimension_semantics<parallel>], iteration_bounds = array<i64: 1>, scalar_prefetch = 0 : i64, scratch_operands = 0 : i64, tpu.core_type = #tpu.core_type<tc>, window_params = [{transform_indices = @transform_0, window_bounds = array<i64: 16, 64>}, {pipeline_mode = #tpu.pipeline_mode<synchronous>, transform_indices = @transform_1, window_bounds = array<i64: 64, 64>}, {pipeline_mode = #tpu.pipeline_mode<synchronous>, transform_indices = @transform_2, window_bounds = array<i64: 1, 64>}, {transform_indices = @transform_3, window_bounds = array<i64: 16, 64>}, {pipeline_mode = #tpu.pipeline_mode<synchronous>, transform_indices = @transform_4, window_bounds = array<i64: 1, 64>}, {pipeline_mode = #tpu.pipeline_mode<synchronous>, transform_indices = @transform_5, window_bounds = array<i64: 1, 64>}, {transform_indices = @transform_6, window_bounds = array<i64: 16, 64>}]} {
    %c0 = arith.constant 0 : index
    %c0_0 = arith.constant 0 : index
    %0 = vector.load %arg1[%c0, %c0_0] : memref<16x64xbf16, #tpu.memory_space<vmem>>, vector<16x64xbf16>
    %c0_1 = arith.constant 0 : index
    %c0_2 = arith.constant 0 : index
    %1 = vector.load %arg2[%c0_1, %c0_2] : memref<64x64xbf16, #tpu.memory_space<vmem>>, vector<64x64xbf16>
    %cst = arith.constant dense<0.000000e+00> : vector<16x64xf32>
    %2 = tpu.matmul %0, %1, %cst {dimension_numbers = #tpu.dot_dimension_numbers<[1], [0], [0], [1], [0, 0, 1, 1], [], []>} : vector<16x64xbf16>, vector<64x64xbf16>, vector<16x64xf32> -> vector<16x64xf32>
    %c0_3 = arith.constant 0 : index
    %c0_4 = arith.constant 0 : index
    %3 = vector.load %arg3[%c0_3, %c0_4] : memref<1x64xf32, #tpu.memory_space<vmem>>, vector<1x64xf32>
    %4 = vector.broadcast %3 : vector<1x64xf32> to vector<16x64xf32>
    %5 = arith.addf %2, %4 : vector<16x64xf32>
    %c0_5 = arith.constant 0 : index
    %c0_6 = arith.constant 0 : index
    %6 = vector.load %arg4[%c0_5, %c0_6] : memref<16x64xbf16, #tpu.memory_space<vmem>>, vector<16x64xbf16>
    %7 = arith.extf %6 : vector<16x64xbf16> to vector<16x64xf32>
    %8 = arith.addf %5, %7 : vector<16x64xf32>
    %c0_7 = arith.constant 0 : index
    %c0_8 = arith.constant 0 : index
    %9 = vector.load %arg5[%c0_7, %c0_8] : memref<1x64xf32, #tpu.memory_space<vmem>>, vector<1x64xf32>
    %c0_9 = arith.constant 0 : index
    %c0_10 = arith.constant 0 : index
    %10 = vector.load %arg6[%c0_9, %c0_10] : memref<1x64xf32, #tpu.memory_space<vmem>>, vector<1x64xf32>
    %cst_11 = arith.constant dense<0.000000e+00> : vector<16xf32>
    %11 = vector.multi_reduction <add>, %8, %cst_11 [1] : vector<16x64xf32> to vector<16xf32>
    %12 = vector.shape_cast %11 : vector<16xf32> to vector<16x1xf32>
    %cst_12 = arith.constant 6.400000e+01 : f32
    %13 = vector.broadcast %cst_12 : f32 to vector<16x1xf32>
    %14 = arith.divf %12, %13 : vector<16x1xf32>
    %15 = vector.broadcast %14 : vector<16x1xf32> to vector<16x64xf32>
    %16 = arith.subf %8, %15 : vector<16x64xf32>
    %17 = arith.mulf %16, %16 : vector<16x64xf32>
    %cst_13 = arith.constant dense<0.000000e+00> : vector<16xf32>
    %18 = vector.multi_reduction <add>, %17, %cst_13 [1] : vector<16x64xf32> to vector<16xf32>
    %19 = vector.shape_cast %18 : vector<16xf32> to vector<16x1xf32>
    %cst_14 = arith.constant 6.400000e+01 : f32
    %20 = vector.broadcast %cst_14 : f32 to vector<16x1xf32>
    %21 = arith.divf %19, %20 : vector<16x1xf32>
    %22 = vector.broadcast %14 : vector<16x1xf32> to vector<16x64xf32>
    %23 = arith.subf %8, %22 : vector<16x64xf32>
    %cst_15 = arith.constant 9.99999974E-6 : f32
    %24 = vector.broadcast %cst_15 : f32 to vector<16x1xf32>
    %25 = arith.addf %21, %24 : vector<16x1xf32>
    %26 = math.rsqrt %25 : vector<16x1xf32>
    %27 = vector.broadcast %26 : vector<16x1xf32> to vector<16x64xf32>
    %28 = arith.mulf %23, %27 : vector<16x64xf32>
    %29 = vector.broadcast %9 : vector<1x64xf32> to vector<16x64xf32>
    %30 = arith.mulf %28, %29 : vector<16x64xf32>
    %31 = vector.broadcast %10 : vector<1x64xf32> to vector<16x64xf32>
    %32 = arith.addf %30, %31 : vector<16x64xf32>
    %33 = arith.truncf %32 : vector<16x64xf32> to vector<16x64xbf16>
    %c0_16 = arith.constant 0 : index
    %c0_17 = arith.constant 0 : index
    %34 = vector.load %arg7[%c0_16, %c0_17] : memref<16x64xbf16, #tpu.memory_space<vmem>>, vector<16x64xbf16>
    tpu.vector_store %arg7[%c0_16, %c0_17], %33 {strides = array<i32>} : memref<16x64xbf16, #tpu.memory_space<vmem>>, vector<16x64xbf16>,
    return
  }
  func.func @transform_0(%arg0: i32) -> (i32, i32) {
    %c0_i32 = arith.constant 0 : i32
    %c0_i32_0 = arith.constant 0 : i32
    return %arg0, %c0_i32 : i32, i32
  }
  func.func @transform_1(%arg0: i32) -> (i32, i32) {
    %c0_i32 = arith.constant 0 : i32
    %c0_i32_0 = arith.constant 0 : i32
    %c0_i32_1 = arith.constant 0 : i32
    return %c0_i32, %c0_i32_0 : i32, i32
  }
  func.func @transform_2(%arg0: i32) -> (i32, i32) {
    %c0_i32 = arith.constant 0 : i32
    %c0_i32_0 = arith.constant 0 : i32
    %c0_i32_1 = arith.constant 0 : i32
    return %c0_i32, %c0_i32_0 : i32, i32
  }
  func.func @transform_3(%arg0: i32) -> (i32, i32) {
    %c0_i32 = arith.constant 0 : i32
    %c0_i32_0 = arith.constant 0 : i32
    return %arg0, %c0_i32 : i32, i32
  }
  func.func @transform_4(%arg0: i32) -> (i32, i32) {
    %c0_i32 = arith.constant 0 : i32
    %c0_i32_0 = arith.constant 0 : i32
    %c0_i32_1 = arith.constant 0 : i32
    return %c0_i32, %c0_i32_0 : i32, i32
  }
  func.func @transform_5(%arg0: i32) -> (i32, i32) {
    %c0_i32 = arith.constant 0 : i32
    %c0_i32_0 = arith.constant 0 : i32
    %c0_i32_1 = arith.constant 0 : i32
    return %c0_i32, %c0_i32_0 : i32, i32
  }
  func.func @transform_6(%arg0: i32) -> (i32, i32) {
    %c0_i32 = arith.constant 0 : i32
    %c0_i32_0 = arith.constant 0 : i32
    return %arg0, %c0_i32 : i32, i32
  }
}

module attributes {stable_mosaic.version = 11 : i64} {
  func.func @_linear_split_kernel(%arg0: i32, %arg1: memref<16x64xbf16, #tpu.memory_space<vmem>>, %arg2: memref<64x128xbf16, #tpu.memory_space<vmem>>, %arg3: memref<1x128xf32, #tpu.memory_space<vmem>>, %arg4: memref<16x64xbf16, #tpu.memory_space<vmem>>, %arg5: memref<16x64xbf16, #tpu.memory_space<vmem>>) attributes {dimension_semantics = [#tpu.dimension_semantics<parallel>], iteration_bounds = array<i64: 1>, scalar_prefetch = 0 : i64, scratch_operands = 0 : i64, tpu.core_type = #tpu.core_type<tc>, window_params = [{transform_indices = @transform_0, window_bounds = array<i64: 16, 64>}, {pipeline_mode = #tpu.pipeline_mode<synchronous>, transform_indices = @transform_1, window_bounds = array<i64: 64, 128>}, {pipeline_mode = #tpu.pipeline_mode<synchronous>, transform_indices = @transform_2, window_bounds = array<i64: 1, 128>}, {transform_indices = @transform_3, window_bounds = array<i64: 16, 64>}, {transform_indices = @transform_4, window_bounds = array<i64: 16, 64>}]} {
    %c0 = arith.constant 0 : index
    %c0_0 = arith.constant 0 : index
    %0 = vector.load %arg1[%c0, %c0_0] : memref<16x64xbf16, #tpu.memory_space<vmem>>, vector<16x64xbf16>
    %c0_1 = arith.constant 0 : index
    %c0_2 = arith.constant 0 : index
    %1 = vector.load %arg2[%c0_1, %c0_2] : memref<64x128xbf16, #tpu.memory_space<vmem>>, vector<64x128xbf16>
    %cst = arith.constant dense<0.000000e+00> : vector<16x128xf32>
    %2 = tpu.matmul %0, %1, %cst {dimension_numbers = #tpu.dot_dimension_numbers<[1], [0], [0], [1], [0, 0, 1, 1], [], []>} : vector<16x64xbf16>, vector<64x128xbf16>, vector<16x128xf32> -> vector<16x128xf32>
    %c0_3 = arith.constant 0 : index
    %c0_4 = arith.constant 0 : index
    %3 = vector.load %arg3[%c0_3, %c0_4] : memref<1x128xf32, #tpu.memory_space<vmem>>, vector<1x128xf32>
    %4 = vector.broadcast %3 : vector<1x128xf32> to vector<16x128xf32>
    %5 = arith.addf %2, %4 : vector<16x128xf32>
    %6 = vector.extract_strided_slice %5 {offsets = [0, 0], sizes = [16, 64], strides = [1, 1]} : vector<16x128xf32> to vector<16x64xf32>
    %7 = arith.truncf %6 : vector<16x64xf32> to vector<16x64xbf16>
    %c0_5 = arith.constant 0 : index
    %c0_6 = arith.constant 0 : index
    %8 = vector.load %arg4[%c0_5, %c0_6] : memref<16x64xbf16, #tpu.memory_space<vmem>>, vector<16x64xbf16>
    tpu.vector_store %arg4[%c0_5, %c0_6], %7 {strides = array<i32>} : memref<16x64xbf16, #tpu.memory_space<vmem>>, vector<16x64xbf16>,
    %9 = vector.extract_strided_slice %5 {offsets = [0, 64], sizes = [16, 64], strides = [1, 1]} : vector<16x128xf32> to vector<16x64xf32>
    %10 = arith.truncf %9 : vector<16x64xf32> to vector<16x64xbf16>
    %c0_7 = arith.constant 0 : index
    %c0_8 = arith.constant 0 : index
    %11 = vector.load %arg5[%c0_7, %c0_8] : memref<16x64xbf16, #tpu.memory_space<vmem>>, vector<16x64xbf16>
    tpu.vector_store %arg5[%c0_7, %c0_8], %10 {strides = array<i32>} : memref<16x64xbf16, #tpu.memory_space<vmem>>, vector<16x64xbf16>,
    return
  }
  func.func @transform_0(%arg0: i32) -> (i32, i32) {
    %c0_i32 = arith.constant 0 : i32
    %c0_i32_0 = arith.constant 0 : i32
    return %arg0, %c0_i32 : i32, i32
  }
  func.func @transform_1(%arg0: i32) -> (i32, i32) {
    %c0_i32 = arith.constant 0 : i32
    %c0_i32_0 = arith.constant 0 : i32
    %c0_i32_1 = arith.constant 0 : i32
    return %c0_i32, %c0_i32_0 : i32, i32
  }
  func.func @transform_2(%arg0: i32) -> (i32, i32) {
    %c0_i32 = arith.constant 0 : i32
    %c0_i32_0 = arith.constant 0 : i32
    %c0_i32_1 = arith.constant 0 : i32
    return %c0_i32, %c0_i32_0 : i32, i32
  }
  func.func @transform_3(%arg0: i32) -> (i32, i32) {
    %c0_i32 = arith.constant 0 : i32
    %c0_i32_0 = arith.constant 0 : i32
    return %arg0, %c0_i32 : i32, i32
  }
  func.func @transform_4(%arg0: i32) -> (i32, i32) {
    %c0_i32 = arith.constant 0 : i32
    %c0_i32_0 = arith.constant 0 : i32
    return %arg0, %c0_i32 : i32, i32
  }
}

module attributes {stable_mosaic.version = 11 : i64} {
  func.func @_matmul_nt_kernel(%arg0: i32, %arg1: i32, %arg2: i32, %arg3: memref<16x64xbf16, #tpu.memory_space<vmem>>, %arg4: memref<64x64xbf16, #tpu.memory_space<vmem>>, %arg5: memref<16x64xf32, #tpu.memory_space<vmem>>, %arg6: memref<16x64xf32, #tpu.memory_space<vmem>>) attributes {dimension_semantics = [#tpu.dimension_semantics<parallel>, #tpu.dimension_semantics<parallel>, #tpu.dimension_semantics<arbitrary>], iteration_bounds = array<i64: 1, 1, 1>, scalar_prefetch = 0 : i64, scratch_operands = 1 : i64, tpu.core_type = #tpu.core_type<tc>, window_params = [{transform_indices = @transform_0, window_bounds = array<i64: 16, 64>}, {transform_indices = @transform_1, window_bounds = array<i64: 64, 64>}, {transform_indices = @transform_2, window_bounds = array<i64: 16, 64>}]} {
    %c0_i32 = arith.constant 0 : i32
    %0 = arith.cmpi eq, %arg2, %c0_i32 : i32
    %1 = arith.extui %0 : i1 to i32
    %c0_i32_0 = arith.constant 0 : i32
    %2 = arith.cmpi ne, %1, %c0_i32_0 : i32
    scf.if %2 {
      %cst_10 = arith.constant 0.000000e+00 : f32
      %12 = vector.broadcast %cst_10 : f32 to vector<16x64xf32>
      %c0_11 = arith.constant 0 : index
      %c0_12 = arith.constant 0 : index
      %13 = vector.load %arg6[%c0_11, %c0_12] : memref<16x64xf32, #tpu.memory_space<vmem>>, vector<16x64xf32>
      tpu.vector_store %arg6[%c0_11, %c0_12], %12 {strides = array<i32>} : memref<16x64xf32, #tpu.memory_space<vmem>>, vector<16x64xf32>,
    } else {
    }
    %c0 = arith.constant 0 : index
    %c0_1 = arith.constant 0 : index
    %3 = vector.load %arg6[%c0, %c0_1] : memref<16x64xf32, #tpu.memory_space<vmem>>, vector<16x64xf32>
    %c0_2 = arith.constant 0 : index
    %c0_3 = arith.constant 0 : index
    %4 = vector.load %arg3[%c0_2, %c0_3] : memref<16x64xbf16, #tpu.memory_space<vmem>>, vector<16x64xbf16>
    %c0_4 = arith.constant 0 : index
    %c0_5 = arith.constant 0 : index
    %5 = vector.load %arg4[%c0_4, %c0_5] : memref<64x64xbf16, #tpu.memory_space<vmem>>, vector<64x64xbf16>
    %cst = arith.constant dense<0.000000e+00> : vector<16x64xf32>
    %6 = tpu.matmul %4, %5, %cst {dimension_numbers = #tpu.dot_dimension_numbers<[1], [1], [0], [0], [0, 0, 1, 0], [], []>} : vector<16x64xbf16>, vector<64x64xbf16>, vector<16x64xf32> -> vector<16x64xf32>
    %7 = arith.addf %3, %6 : vector<16x64xf32>
    %c0_6 = arith.constant 0 : index
    %c0_7 = arith.constant 0 : index
    %8 = vector.load %arg6[%c0_6, %c0_7] : memref<16x64xf32, #tpu.memory_space<vmem>>, vector<16x64xf32>
    tpu.vector_store %arg6[%c0_6, %c0_7], %7 {strides = array<i32>} : memref<16x64xf32, #tpu.memory_space<vmem>>, vector<16x64xf32>,
    %c0_i32_8 = arith.constant 0 : i32
    %9 = arith.cmpi eq, %arg2, %c0_i32_8 : i32
    %10 = arith.extui %9 : i1 to i32
    %c0_i32_9 = arith.constant 0 : i32
    %11 = arith.cmpi ne, %10, %c0_i32_9 : i32
    scf.if %11 {
      %c0_10 = arith.constant 0 : index
      %c0_11 = arith.constant 0 : index
      %12 = vector.load %arg6[%c0_10, %c0_11] : memref<16x64xf32, #tpu.memory_space<vmem>>, vector<16x64xf32>
      %c0_12 = arith.constant 0 : index
      %c0_13 = arith.constant 0 : index
      %13 = vector.load %arg5[%c0_12, %c0_13] : memref<16x64xf32, #tpu.memory_space<vmem>>, vector<16x64xf32>
      tpu.vector_store %arg5[%c0_12, %c0_13], %12 {strides = array<i32>} : memref<16x64xf32, #tpu.memory_space<vmem>>, vector<16x64xf32>,
    } else {
    }
    return
  }
  func.func @transform_0(%arg0: i32, %arg1: i32, %arg2: i32) -> (i32, i32) {
    %c0_i32 = arith.constant 0 : i32
    return %arg0, %arg2 : i32, i32
  }
  func.func @transform_1(%arg0: i32, %arg1: i32, %arg2: i32) -> (i32, i32) {
    %c0_i32 = arith.constant 0 : i32
    return %arg1, %arg2 : i32, i32
  }
  func.func @transform_2(%arg0: i32, %arg1: i32, %arg2: i32) -> (i32, i32) {
    %c0_i32 = arith.constant 0 : i32
    return %arg0, %arg1 : i32, i32
  }
}

</mosaic_0001>

<bundles_post_ra>
// kernel: transformer_forward.29
= control target key start
LH: loop header
LB: loop body
LE: loop exit
PB: predicated region body
PF: predicated region fallthrough
CT: control target
= control target key end

     0   :  { %vm67_vm0 = vcmask 523264   ;;  %v203_v17 = vmov 64.0   ;;  %vm156_vm6 = vcmask 519168   ;;  %s277_s1 = inlined_call_operand.vmem [shape: bf16[64,64], index: 1, kind: input, shape index: {}]   ;;  %s278_s2 = inlined_call_operand.vmem [shape: f32[1,64], index: 2, kind: input, shape index: {}]   ;;  %s279_s0 = inlined_call_operand.vmem [shape: bf16[16,64], index: 0, kind: input, shape index: {}]   ;;  %s280_s3 = inlined_call_operand.vmem [shape: bf16[16,64], index: 3, kind: input, shape index: {}]   ;;  %s281_s4 = inlined_call_operand.vmem [shape: f32[1,64], index: 4, kind: input, shape index: {}]   ;;  %s282_s5 = inlined_call_operand.vmem [shape: f32[1,64], index: 5, kind: input, shape index: {}]   ;;  %s283_s6 = inlined_call_operand.vmem [shape: bf16[16,64], index: 6, kind: output, shape index: {}]  }
   0x1   :  { %v188_v0 = vld [vmem:[%s277_s1 + $0x18] sm:$0xff]  ;;  %v187_v1 = vld [vmem:[%s277_s1 + $0x10] sm:$0xff]  ;;  %v186_v2 = vld [vmem:[%s277_s1 + $0x8] sm:$0xff]  ;;  %197 = vrcp.f32 %v203_v17 }
   0x2   :  { %75 = vmatpush.bf16.msra.mxu0 %v188_v0  ;;  %v185_v3 = vld [vmem:[%s277_s1] sm:$0xff] }
   0x3   :  { %v184_v4 = vld [vmem:[%s279_s0] sm:$0xff] }
   0x4   :  { %v190_v5 = vld [vmem:[%s280_s3] sm:$0xff]  }
   0x5   :  { %v194_v6 = vld [vmem:[%s278_s2] ss:$0 sm:$0xff]  ;;  %v191_v7 = vunpack.c.l.bf16 %v190_v5  ;;  %v192_v12 = vunpack.c.h.bf16 %v190_v5 }
   0x6   :  { %76 = vmatpush.bf16.msra.mxu0 %v187_v1  ;;  %v195_v48 = vld [vmem:[%s281_s4] ss:$0 sm:$0xff] }
   0x7   :  { %v198_v18 = vpop.eup %197  ;;  %v196_v51 = vld [vmem:[%s282_s5] ss:$0 sm:$0xff] }
   0x8   :  { %v100_v19 = vmul.f32 64.0, %v198_v18  ;;  %vm104_vm1 = vweird.f32 %v198_v18 }
   0xa   :  { %77 = vmatpush.bf16.msra.mxu0 %v186_v2  ;;  %v101_v20 = vsub.f32 1.0, %v100_v19 }
   0xc   :  { %v102_v21 = vmul.f32 %v198_v18, %v101_v20 }
   0xe   :  { %78 = vmatpush.bf16.msra.mxu0 %v185_v3  ;;  %v103_v22 = vadd.f32 %v198_v18, %v102_v21 }
  0x10   :  { %v105_v23 = vsel %vm104_vm1, %v198_v18, %v103_v22 }
  0x11   :  { %183 = vmatmul.msk.bf16.vlgmr.msra.gmra.mxu0 %vm67_vm0, %v184_v4 }
  0x8e   :  { %v80_v8 = vpop.f32.mrf.mxu0 }
  0x8f   :  { %v81_v9 = vadd.f32 %v194_v6, %v80_v8 }
  0x91   :  { %v89_v10 = vadd.f32 %v191_v7, %v81_v9 }
  0x93   :  { %v93_v11 = vsel %vm67_vm0, %v89_v10, 0.0 }
  0x94   :  { %94 = vadd.xlane.f32.xlu0 %v93_v11 }
  0x96   :  { %v82_v13 = vpop.f32.mrf.mxu0 }
  0x97   :  { %v83_v14 = vadd.f32 %v194_v6, %v82_v13 }
  0x99   :  { %v90_v15 = vadd.f32 %v192_v12, %v83_v14 }
  0x9b   :  { %v96_v16 = vsel %vm67_vm0, %v90_v15, 0.0 }
  0x9c   :  { %97 = vadd.xlane.f32.xlu0 %v96_v16 }
 0x107   :  { %v95_v24 = vpop.xlane.xlu0 %94 }
 0x108   :  { %v106_v25 = vmul.f32 %v105_v23, %v95_v24 }
 0x10a   :  { %v108_v26 = vsub.f32 %v89_v10, %v106_v25 }
 0x10c   :  { %v110_v27 = vmul.f32 %v108_v26, %v108_v26 }
 0x10e   :  { %v112_v28 = vsel %vm67_vm0, %v110_v27, 0.0 }
 0x10f   :  { %113 = vadd.xlane.f32.xlu1 %v112_v28  ;;  %v98_v29 = vpop.xlane.xlu0 %97 }
 0x110   :  { %v107_v30 = vmul.f32 %v105_v23, %v98_v29 }
 0x112   :  { %v109_v31 = vsub.f32 %v90_v15, %v107_v30 }
 0x114   :  { %v111_v32 = vmul.f32 %v109_v31, %v109_v31 }
 0x116   :  { %v115_v33 = vsel %vm67_vm0, %v111_v32, 0.0 }
 0x117   :  { %116 = vadd.xlane.f32.xlu1 %v115_v33 }
 0x182   :  { %v114_v34 = vpop.xlane.xlu1 %113 }
 0x183   :  { %v118_v35 = vmul.f32 %v114_v34, %v105_v23 }
 0x185   :  { %v120_v36 = vadd.f32 1e-05, %v118_v35 }
 0x187   :  { %199 = vrsqrt.f32 %v120_v36  ;;  %vm128_vm3 = vweird.f32 %v120_v36 }
 0x18a   :  { %v117_v37 = vpop.xlane.xlu1 %116 }
 0x18b   :  { %v119_v38 = vmul.f32 %v117_v37, %v105_v23 }
 0x18d   :  { %v200_v39 = vpop.eup %199  ;;  %v121_v40 = vadd.f32 1e-05, %v119_v38 }
 0x18e   :  { %v123_v41 = vmul.f32 %v200_v39, %v120_v36  ;;  %vm129_vm2 = vweird.f32 %v200_v39 }
 0x18f   :  { %201 = vrsqrt.f32 %v121_v40  ;;  %vm130_vm4 = vmor %vm128_vm3, %vm129_vm2  ;;  %vm138_vm7 = vweird.f32 %v121_v40 }
 0x190   :  { %v124_v42 = vmul.f32 %v200_v39, %v123_v41 }
 0x192   :  { %v125_v43 = vmul.f32 0.5, %v124_v42 }
 0x194   :  { %v126_v44 = vsub.f32 1.5, %v125_v43 }
 0x195   :  { %v202_v45 = vpop.eup %201 }
 0x196   :  { %v127_v46 = vmul.f32 %v200_v39, %v126_v44  ;;  %v133_v47 = vmul.f32 %v202_v45, %v121_v40  ;;  %vm139_vm5 = vweird.f32 %v202_v45 }
 0x197   :  { %vm140_vm8 = vmor %vm138_vm7, %vm139_vm5 }
 0x198   :  { %v131_v49 = vsel %vm130_vm4, %v200_v39, %v127_v46  ;;  %v134_v50 = vmul.f32 %v202_v45, %v133_v47 }
 0x199   :  { %v142_v52 = vmul.f32 %v131_v49, %v108_v26 }
 0x19a   :  { %v135_v53 = vmul.f32 0.5, %v134_v50 }
 0x19b   :  { %v147_v54 = vmul.f32 %v195_v48, %v142_v52 }
 0x19c   :  { %v136_v55 = vsub.f32 1.5, %v135_v53 }
 0x19d   :  { %v152_v56 = vadd.f32 %v196_v51, %v147_v54 }
 0x19e   :  { %v137_v57 = vmul.f32 %v202_v45, %v136_v55 }
 0x19f   :  { %v154_v58 = vpack.c.bf16 %v152_v56, %v152_v56 }
 0x1a0   :  { %v141_v59 = vsel %vm140_vm8, %v202_v45, %v137_v57 }
 0x1a1   :  { %157 = vst.msk [vmem:[%s283_s6] sm:$0xf] %vm156_vm6, %v154_v58  ;;  %v143_v60 = vmul.f32 %v141_v59, %v109_v31 }
 0x1a3   :  { %v148_v61 = vmul.f32 %v195_v48, %v143_v60 }
 0x1a5   :  { %v153_v62 = vadd.f32 %v196_v51, %v148_v61 }
 0x1a7   :  { %v155_v63 = vpack.c.bf16 %v153_v62, %v153_v62 }
 0x1a9   :  { %158 = vst.msk [vmem:[%s283_s6 + $0x4] sm:$0xf] %vm156_vm6, %v155_v63 }

// kernel: transformer_forward.27
= control target key start
LH: loop header
LB: loop body
LE: loop exit
PB: predicated region body
PF: predicated region fallthrough
CT: control target
= control target key end

     0   :  { %vm79_vm0 = vcmask 523264   ;;  %vm113_vm1 = vcmask 519168   ;;  %s190_s29 = smov 64   ;;  %s299_s1 = inlined_call_operand.vmem [shape: bf16[64,192], index: 1, kind: input, shape index: {}]   ;;  %s300_s0 = inlined_call_operand.vmem [shape: bf16[16,64], index: 0, kind: input, shape index: {}]   ;;  %s301_s2 = inlined_call_operand.vmem [shape: f32[1,192], index: 2, kind: input, shape index: {}]   ;;  %s302_s3 = inlined_call_operand.vmem [shape: bf16[16,64], index: 3, kind: output, shape index: {0}]   ;;  %s303_s5 = inlined_call_operand.vmem [shape: bf16[16,64], index: 5, kind: output, shape index: {2}]   ;;  %s304_s4 = inlined_call_operand.vmem [shape: bf16[16,64], index: 4, kind: output, shape index: {1}]  }
   0x1   :  { %v172_v0 = vld [vmem:[%s299_s1 + $0x30] sm:$0xf]  ;;  %v188_v1 = vld [vmem:[%s299_s1 + $0x34] sm:$0xf0]  ;;  %v164_v2 = vld [vmem:[%s299_s1 + $0x20] sm:$0xf] }
   0x2   :  { %v173_v3 = vor.u32 %v188_v1, %v172_v0  ;;  %v186_v4 = vld [vmem:[%s299_s1 + $0x24] sm:$0xf0]  ;;  %v187_v6 = vld [vmem:[%s299_s1 + $0x34] sm:$0xf]  ;;  %v174_v7 = vld [vmem:[%s299_s1 + $0x38] sm:$0xf0] }
   0x3   :  { %v165_v5 = vor.u32 %v186_v4, %v164_v2  ;;  %v185_v8 = vld [vmem:[%s299_s1 + $0x24] sm:$0xf]  ;;  %v156_v9 = vld [vmem:[%s299_s1 + $0x10] sm:$0xf]  ;;  %v184_v10 = vld [vmem:[%s299_s1 + $0x14] sm:$0xf0]  ;;  %v177_v11 = vor.u32 %v187_v6, %v174_v7 }
   0x4   :  { %87 = vmatpush.bf16.msra.mxu0 %v173_v3  ;;  %v166_v12 = vld [vmem:[%s299_s1 + $0x28] sm:$0xf0]  ;;  %v157_v14 = vor.u32 %v184_v10, %v156_v9  ;;  %v183_v15 = vld [vmem:[%s299_s1 + $0x14] sm:$0xf]  ;;  %v158_v16 = vld [vmem:[%s299_s1 + $0x18] sm:$0xf0] }
   0x5   :  { %101 = vmatpush.bf16.msra.mxu1 %v177_v11  ;;  %v169_v13 = vor.u32 %v185_v8, %v166_v12  ;;  %v148_v17 = vld [vmem:[%s299_s1] sm:$0xf]  ;;  %v182_v18 = vld [vmem:[%s299_s1 + $0x4] sm:$0xf0]  ;;  %v161_v19 = vor.u32 %v183_v15, %v158_v16  ;;  %v181_v21 = vld [vmem:[%s299_s1 + $0x4] sm:$0xf] }
   0x6   :  { %v149_v20 = vor.u32 %v182_v18, %v148_v17  ;;  %v150_v22 = vld [vmem:[%s299_s1 + $0x8] sm:$0xf0]  ;;  %v180_v23 = vld [vmem:[%s300_s0] sm:$0xff] }
   0x7   :  { %v153_v24 = vor.u32 %v181_v21, %v150_v22  ;;  %v28_v25 = vld [vmem:[%s301_s2] sm:$0x3] }
   0x8   :  { %88 = vmatpush.bf16.msra.mxu0 %v165_v5  ;;  %v30_v26 = vperm.slane %v28_v25, 0  ;;  %v31_v28 = vperm.slane %v28_v25, 1 }
   0x9   :  { %102 = vmatpush.bf16.msra.mxu1 %v169_v13 }
   0xc   :  { %89 = vmatpush.bf16.msra.mxu0 %v157_v14 }
   0xd   :  { %103 = vmatpush.bf16.msra.mxu1 %v161_v19 }
  0x10   :  { %90 = vmatpush.bf16.msra.mxu0 %v149_v20 }
  0x11   :  { %104 = vmatpush.bf16.msra.mxu1 %v153_v24 }
  0x13   :  { %178 = vmatmul.msk.bf16.vlgmr.msra.gmra.mxu0 %vm79_vm0, %v180_v23 }
  0x14   :  { %179 = vmatmul.msk.bf16.vlgmr.msra.gmra.mxu1 %vm79_vm0, %v180_v23 }
  0x90   :  { %v92_v27 = vpop.f32.mrf.mxu0 }
  0x91   :  { %v93_v29 = vadd.f32 %v92_v27, %v30_v26  ;;  %v106_v31 = vpop.f32.mrf.mxu1 }
  0x92   :  { %v107_v32 = vadd.f32 %v106_v31, %v31_v28 }
  0x93   :  { %v111_v30 = vpack.c.bf16 %v93_v29, %v93_v29 }
  0x94   :  { %v126_v33 = vpack.c.bf16 %v107_v32, %v107_v32 }
  0x95   :  { %114 = vst.msk [vmem:[%s302_s3] sm:$0xf] %vm113_vm1, %v111_v30  ;;  %118 = vrot.lane.b32.xlu0 %v111_v30, %s190_s29 }
  0x96   :  { %128 = vst.msk [vmem:[%s303_s5] sm:$0xf] %vm113_vm1, %v126_v33 }
  0x98   :  { %v94_v34 = vpop.f32.mrf.mxu0 }
  0x99   :  { %v95_v35 = vadd.f32 %v94_v34, %v30_v26  ;;  %v108_v37 = vpop.f32.mrf.mxu1 }
  0x9a   :  { %v109_v38 = vadd.f32 %v108_v37, %v31_v28 }
  0x9b   :  { %v112_v36 = vpack.c.bf16 %v95_v35, %v95_v35 }
  0x9c   :  { %v127_v39 = vpack.c.bf16 %v109_v38, %v109_v38 }
  0x9d   :  { %115 = vst.msk [vmem:[%s302_s3 + $0x4] sm:$0xf] %vm113_vm1, %v112_v36  ;;  %120 = vrot.lane.b32.xlu0 %v112_v36, %s190_s29 }
  0x9e   :  { %129 = vst.msk [vmem:[%s303_s5 + $0x4] sm:$0xf] %vm113_vm1, %v127_v39 }
 0x107   :  { %v119_v40 = vpop.permute.xlu0 %118 }
 0x108   :  { %124 = vst.msk [vmem:[%s304_s4] sm:$0xf] %vm113_vm1, %v119_v40 }
 0x10f   :  { %v121_v41 = vpop.permute.xlu0 %120 }
 0x110   :  { %125 = vst.msk [vmem:[%s304_s4 + $0x4] sm:$0xf] %vm113_vm1, %v121_v41 }

// kernel: transformer_forward.30
= control target key start
LH: loop header
LB: loop body
LE: loop exit
PB: predicated region body
PF: predicated region fallthrough
CT: control target
= control target key end

     0   :  { %vm31_vm0 = vcmask 523264   ;;  %v347_v13 = vmov 0.0   ;;  %v348_v40 = vmov 64.0   ;;  %vm262_vm6 = vcmask 519168   ;;  %s458_s1 = inlined_call_operand.vmem [shape: bf16[64,128], index: 1, kind: input, shape index: {}]   ;;  %s459_s3 = inlined_call_operand.vmem [shape: bf16[128,64], index: 3, kind: input, shape index: {}]   ;;  %s460_s2 = inlined_call_operand.vmem [shape: f32[1,128], index: 2, kind: input, shape index: {}]   ;;  %s461_s0 = inlined_call_operand.vmem [shape: bf16[16,64], index: 0, kind: input, shape index: {}]   ;;  %s462_s4 = inlined_call_operand.vmem [shape: f32[1,64], index: 4, kind: input, shape index: {}]   ;;  %s463_s5 = inlined_call_operand.vmem [shape: f32[1,64], index: 5, kind: input, shape index: {}]   ;;  %s464_s6 = inlined_call_operand.vmem [shape: f32[1,64], index: 6, kind: input, shape index: {}]   ;;  %s465_s7 = inlined_call_operand.vmem [shape: bf16[16,64], index: 7, kind: output, shape index: {}]  }
   0x1   :  { %v326_v0 = vld [vmem:[%s458_s1 + $0x18] sm:$0xff]  ;;  %v325_v2 = vld [vmem:[%s458_s1 + $0x10] sm:$0xff]  ;;  %v324_v4 = vld [vmem:[%s458_s1 + $0x8] sm:$0xff]  ;;  %32 = vst.msk [vmem:[#allocation2] sm:$0xff] %vm31_vm0, %v347_v13  ;;  %341 = vrcp.f32 %v348_v40 }
   0x2   :  { %v334_v1 = vld [vmem:[%s459_s3 + $0x38] sm:$0xff]  ;;  %85 = vmatpush.bf16.msra.mxu0 %v326_v0  ;;  %v333_v3 = vld [vmem:[%s459_s3 + $0x30] sm:$0xff]  ;;  %v332_v5 = vld [vmem:[%s459_s3 + $0x28] sm:$0xff]  ;;  %33 = vst.msk [vmem:[#allocation2 + $0x8] sm:$0xff] %vm31_vm0, %v347_v13 }
   0x3   :  { %164 = vmatpush.bf16.msra.mxu1 %v334_v1  ;;  %v323_v6 = vld [vmem:[%s458_s1] sm:$0xff]  ;;  %v330_v9 = vld [vmem:[%s459_s3 + $0x18] sm:$0xff]  ;;  %v329_v10 = vld [vmem:[%s459_s3 + $0x10] sm:$0xff] }
   0x4   :  { %v331_v7 = vld [vmem:[%s459_s3 + $0x20] sm:$0xff]  ;;  %v328_v11 = vld [vmem:[%s459_s3 + $0x8] sm:$0xff] }
   0x5   :  { %v322_v8 = vld [vmem:[%s461_s0] sm:$0xff] }
   0x6   :  { %86 = vmatpush.bf16.msra.mxu0 %v325_v2  ;;  %v327_v12 = vld [vmem:[%s459_s3] sm:$0xff] }
   0x7   :  { %165 = vmatpush.bf16.msra.mxu1 %v333_v3  ;;  %v337_v15 = vld [vmem:[%s460_s2] ss:$0 sm:$0xff]  ;;  %v342_v41 = vpop.eup %341 }
   0x8   :  { %v97_v22 = vld [vmem:[#allocation2] sm:$0xff]  ;;  %v206_v42 = vmul.f32 64.0, %v342_v41  ;;  %vm210_vm1 = vweird.f32 %v342_v41 }
   0x9   :  { %v98_v25 = vld [vmem:[#allocation2 + $0x8] sm:$0xff]  ;;  %v34_v26 = vld [vmem:[%s461_s0] sm:$0xff]  }
   0xa   :  { %87 = vmatpush.bf16.msra.mxu0 %v324_v4  ;;  %v338_v27 = vld [vmem:[%s462_s4] ss:$0 sm:$0xff]  ;;  %v193_v30 = vunpack.c.l.bf16 %v34_v26  ;;  %v194_v35 = vunpack.c.h.bf16 %v34_v26  ;;  %v207_v43 = vsub.f32 1.0, %v206_v42 }
   0xb   :  { %166 = vmatpush.bf16.msra.mxu1 %v332_v5 }
   0xc   :  { %v208_v44 = vmul.f32 %v342_v41, %v207_v43 }
   0xe   :  { %88 = vmatpush.bf16.msra.mxu0 %v323_v6  ;;  %v209_v45 = vadd.f32 %v342_v41, %v208_v44 }
   0xf   :  { %167 = vmatpush.bf16.msra.mxu1 %v331_v7  ;;  %v339_v7 = vld [vmem:[%s463_s5] ss:$0 sm:$0xff] }
  0x10   :  { %v211_v46 = vsel %vm210_vm1, %v342_v41, %v209_v45 }
  0x11   :  { %289 = vmatmul.msk.bf16.vlgmr.msra.gmra.mxu0 %vm31_vm0, %v322_v8 }
  0x13   :  { %168 = vmatpush.bf16.msra.mxu1 %v330_v9 }
  0x17   :  { %169 = vmatpush.bf16.msra.mxu1 %v329_v10  ;;  %v340_v10 = vld [vmem:[%s464_s6] ss:$0 sm:$0xff] }
  0x1b   :  { %170 = vmatpush.bf16.msra.mxu1 %v328_v11 }
  0x1f   :  { %171 = vmatpush.bf16.msra.mxu1 %v327_v12 }
  0x8e   :  { %v90_v14 = vpop.f32.mrf.mxu0 }
  0x8f   :  { %v91_v16 = vadd.f32 %v337_v15, %v90_v14 }
  0x91   :  { %v95_v19 = vmax.f32 %v91_v16, 0.0 }
  0x96   :  { %v92_v17 = vpop.f32.mrf.mxu0 }
  0x97   :  { %v93_v18 = vadd.f32 %v337_v15, %v92_v17 }
  0x99   :  { %v96_v20 = vmax.f32 %v93_v18, 0.0 }
  0x9b   :  { %v99_v21 = vpack.c.bf16 %v96_v20, %v95_v19 }
  0x9d   :  { %172 = vmatmul.bf16.vlgmr.msra.gmra.mxu1 %v99_v21 }
 0x11a   :  { %v173_v23 = vpop.f32.mrf.mxu1 }
 0x11b   :  { %v178_v24 = vadd.f32 %v173_v23, %v97_v22 }
 0x11d   :  { %180 = vst.msk [vmem:[#allocation2] sm:$0xff] %vm31_vm0, %v178_v24 }
 0x122   :  { %v175_v28 = vpop.f32.mrf.mxu1 }
 0x123   :  { %v179_v29 = vadd.f32 %v175_v28, %v98_v25 }
 0x124   :  { %v185_v31 = vld [vmem:[#allocation2] sm:$0xff] }
 0x125   :  { %181 = vst.msk [vmem:[#allocation2 + $0x8] sm:$0xff] %vm31_vm0, %v179_v29  ;;  %v191_v32 = vadd.f32 %v338_v27, %v185_v31 }
 0x127   :  { %v195_v33 = vadd.f32 %v193_v30, %v191_v32 }
 0x129   :  { %v199_v34 = vsel %vm31_vm0, %v195_v33, 0.0 }
 0x12a   :  { %200 = vadd.xlane.f32.xlu0 %v199_v34 }
 0x12c   :  { %v186_v36 = vld [vmem:[#allocation2 + $0x8] sm:$0xff] }
 0x12d   :  { %v192_v37 = vadd.f32 %v338_v27, %v186_v36 }
 0x12f   :  { %v196_v38 = vadd.f32 %v194_v35, %v192_v37 }
 0x131   :  { %v202_v39 = vsel %vm31_vm0, %v196_v38, 0.0 }
 0x132   :  { %203 = vadd.xlane.f32.xlu0 %v202_v39 }
 0x19d   :  { %v201_v47 = vpop.xlane.xlu0 %200 }
 0x19e   :  { %v212_v48 = vmul.f32 %v211_v46, %v201_v47 }
 0x1a0   :  { %v214_v49 = vsub.f32 %v195_v33, %v212_v48 }
 0x1a2   :  { %v216_v50 = vmul.f32 %v214_v49, %v214_v49 }
 0x1a4   :  { %v218_v51 = vsel %vm31_vm0, %v216_v50, 0.0 }
 0x1a5   :  { %219 = vadd.xlane.f32.xlu1 %v218_v51  ;;  %v204_v52 = vpop.xlane.xlu0 %203 }
 0x1a6   :  { %v213_v53 = vmul.f32 %v211_v46, %v204_v52 }
 0x1a8   :  { %v215_v54 = vsub.f32 %v196_v38, %v213_v53 }
 0x1aa   :  { %v217_v55 = vmul.f32 %v215_v54, %v215_v54 }
 0x1ac   :  { %v221_v56 = vsel %vm31_vm0, %v217_v55, 0.0 }
 0x1ad   :  { %222 = vadd.xlane.f32.xlu1 %v221_v56 }
 0x218   :  { %v220_v57 = vpop.xlane.xlu1 %219 }
 0x219   :  { %v224_v58 = vmul.f32 %v220_v57, %v211_v46 }
 0x21b   :  { %v226_v59 = vadd.f32 1e-05, %v224_v58 }
 0x21d   :  { %343 = vrsqrt.f32 %v226_v59  ;;  %vm234_vm3 = vweird.f32 %v226_v59 }
 0x220   :  { %v223_v60 = vpop.xlane.xlu1 %222 }
 0x221   :  { %v225_v61 = vmul.f32 %v223_v60, %v211_v46 }
 0x223   :  { %v344_v62 = vpop.eup %343  ;;  %v227_v63 = vadd.f32 1e-05, %v225_v61 }
 0x224   :  { %v229_v0 = vmul.f32 %v344_v62, %v226_v59  ;;  %vm235_vm2 = vweird.f32 %v344_v62 }
 0x225   :  { %345 = vrsqrt.f32 %v227_v63  ;;  %vm236_vm4 = vmor %vm234_vm3, %vm235_vm2  ;;  %vm244_vm7 = vweird.f32 %v227_v63 }
 0x226   :  { %v230_v1 = vmul.f32 %v344_v62, %v229_v0 }
 0x228   :  { %v231_v2 = vmul.f32 0.5, %v230_v1 }
 0x22a   :  { %v232_v3 = vsub.f32 1.5, %v231_v2 }
 0x22b   :  { %v346_v4 = vpop.eup %345 }
 0x22c   :  { %v233_v5 = vmul.f32 %v344_v62, %v232_v3  ;;  %v239_v6 = vmul.f32 %v346_v4, %v227_v63  ;;  %vm245_vm5 = vweird.f32 %v346_v4 }
 0x22d   :  { %vm246_vm8 = vmor %vm244_vm7, %vm245_vm5 }
 0x22e   :  { %v237_v8 = vsel %vm236_vm4, %v344_v62, %v233_v5  ;;  %v240_v9 = vmul.f32 %v346_v4, %v239_v6 }
 0x22f   :  { %v248_v11 = vmul.f32 %v237_v8, %v214_v49 }
 0x230   :  { %v241_v12 = vmul.f32 0.5, %v240_v9 }
 0x231   :  { %v253_v13 = vmul.f32 %v339_v7, %v248_v11 }
 0x232   :  { %v242_v14 = vsub.f32 1.5, %v241_v12 }
 0x233   :  { %v258_v15 = vadd.f32 %v340_v10, %v253_v13 }
 0x234   :  { %v243_v16 = vmul.f32 %v346_v4, %v242_v14 }
 0x235   :  { %v260_v17 = vpack.c.bf16 %v258_v15, %v258_v15 }
 0x236   :  { %v247_v18 = vsel %vm246_vm8, %v346_v4, %v243_v16 }
 0x237   :  { %263 = vst.msk [vmem:[%s465_s7] sm:$0xf] %vm262_vm6, %v260_v17  ;;  %v249_v19 = vmul.f32 %v247_v18, %v215_v54 }
 0x239   :  { %v254_v20 = vmul.f32 %v339_v7, %v249_v19 }
 0x23b   :  { %v259_v21 = vadd.f32 %v340_v10, %v254_v20 }
 0x23d   :  { %v261_v22 = vpack.c.bf16 %v259_v21, %v259_v21 }
 0x23f   :  { %264 = vst.msk [vmem:[%s465_s7 + $0x4] sm:$0xf] %vm262_vm6, %v261_v22 }

// kernel: transformer_forward.28
= control target key start
LH: loop header
LB: loop body
LE: loop exit
PB: predicated region body
PF: predicated region fallthrough
CT: control target
= control target key end

     0   :  { %s990_s15 = smov 0   ;;  %s992_s16 = smov 0   ;;  %s1125_s0 = inlined_call_operand.vmem [shape: bf16[2,8,64], index: 0, kind: input, shape index: {}]   ;;  %s1126_s1 = inlined_call_operand.vmem [shape: bf16[2,8,64], index: 1, kind: input, shape index: {}]   ;;  %s1127_s2 = inlined_call_operand.vmem [shape: bf16[2,8,64], index: 2, kind: input, shape index: {}]   ;;  %s1128_s3 = inlined_call_operand.vmem [shape: f32[2,1,8], index: 3, kind: input, shape index: {}]   ;;  %s1129_s4 = inlined_call_operand.vmem [shape: bf16[2,8,64], index: 4, kind: output, shape index: {}]  }
   0x1   :  { %s994_s17 = smov 0  }
   0x2 LB: > { %s33_s18 = sadd.s32 1, %s950_s16  ;;  %p856_p0 = scmp.ge.s32.totalorder %s954_s17, 1  ;;  %s954_s17 = sphi %s994_s17, %s14_s17   ;;  %s950_s16 = sphi %s992_s16, %s1131_s16   ;;  %s946_s15 = sphi %s990_s15, %s1130_s15  }
   0x3   : > { %p35_p1 = scmp.ge.s32.totalorder %s33_s18, 2  ;;  %p228_p2 = scmp.lt.s32.totalorder %s954_s17, 3 }
   0x5   : > { %s1133_s18 = smov (%p35_p1, %s33_s18), 0  ;;  %p229_p3 = pnand %p856_p0, %p228_p2 }
   0x6   : > { %p278_p4 = scmp.lt.s32.totalorder (!%p229_p3), %s946_s15, 1  ;;  %s957_s29 = smov (!%p229_p3), 96  }
   0x7   : > { %232 = sbr.rel (%p229_p3) target bundleno = 1139 (0x473), region = 36  ;;  %s958_s30 = smov (!%p229_p3), 80  }
   0x8   : > { %s959_s5 = smov (!%p229_p3), 112   ;;  %s962_s9 = smov (!%p229_p3), 16  }
   0x9   : > { %s963_s10 = smov (!%p229_p3), 48   ;;  %s964_s11 = smov (!%p229_p3), 32  }
   0xc   : > { %s1135_s15 = smov (!%p278_p4, %s946_s15), 1  ;;  %vm326_vm0 = vcmask 130048   ;;  %vm317_vm1 = vcmask 7168   ;;  %v956_v3 = vmov -inf   ;;  %vm361_vm2 = vcmask 64512  }
   0xd   : > { %s1008_s19 = sshll.u32 %s1135_s15, 2  ;;  %s304_s22 = scalar_lea.vmem %s1128_s3, %s1135_s15  ;;  %318 = vst.msk [vmem:[#allocation2] sm:$0xff] %vm317_vm1, %v956_v3  ;;  %v960_v14 = vmov 0   ;;  %v961_v15 = vmov 0.0   ;;  %vm396_vm3 = vcmask 1043456   ;;  %vm726_vm4 = vcmask 261120  }
   0xe   : > { %s291_s25 = scalar_lea.vmem %s1126_s1, %s1008_s19  ;;  %s284_s28 = scalar_lea.vmem %s1125_s0, %s1008_s19  ;;  %319 = vst.msk [vmem:[#allocation2 + $0x8] sm:$0xff] %vm317_vm1, %v956_v3  ;;  %v1027_v4 = vld [vmem:[%s304_s22] ss:$0 sm:$0xff]  ;;  %904 = vset.pattern.permute.xlu1 %v960_v14  ;;  %905 = vset.pattern.permute.xlu2 %v960_v14  ;;  %vm728_vm5 = vcmask 392192   ;;  %vm731_vm6 = vcmask 519168  }
   0xf   : > { %v332_v0 = vld [vmem:[%s291_s25] sm:$0xf]  ;;  %320 = vst.msk [vmem:[#allocation2 + $0x10] sm:$0xff] %vm317_vm1, %v956_v3  ;;  %906 = vset.pattern.permute.xlu0 %v960_v14  ;;  %s298_s8 = scalar_lea.vmem %s1127_s2, %s1008_s19  ;;  %s311_s14 = scalar_lea.vmem %s1129_s4, %s1008_s19 }
  0x10   : > { %v343_v1 = vsel %vm326_vm0, %v332_v0, 0  ;;  %v331_v2 = vld [vmem:[%s284_s28] sm:$0xf]  ;;  %321 = vst.msk [vmem:[#allocation2 + $0x18] sm:$0xff] %vm317_vm1, %v956_v3  ;;  %v422_v5 = vunpack.c.l.b16 %v332_v0 }
  0x11   : > { %352 = vmatpush.bf16.xpose.msra.mxu0 %v343_v1  ;;  %v417_v12 = vunpack.c.l.b16 %v331_v2  ;;  %322 = vst.msk [vmem:[#allocation3] sm:$0xff] %vm317_vm1, %v961_v15  ;;  %v333_v23 = vld [vmem:[%s298_s8] sm:$0xf] }
  0x12   : > { %v423_v8 = vpack.c.b16 %v422_v5, %v422_v5  ;;  %323 = vst.msk [vmem:[#allocation3 + $0x8] sm:$0xff] %vm317_vm1, %v961_v15  ;;  %v398_v24 = vsel %vm396_vm3, %v333_v23, 0  ;;  %v482_v52 = vunpack.c.l.b16 %v333_v23 }
  0x13   : > { %v418_v13 = vpack.c.b16 %v417_v12, %v417_v12  ;;  %324 = vst.msk [vmem:[#allocation3 + $0x10] sm:$0xff] %vm317_vm1, %v961_v15  ;;  %407 = vmatpush.bf16.msra.mxu1 %v398_v24 }
  0x14   : > { %510 = vrot.lane.b32.xlu2 %v423_v8, %s957_s29  ;;  %325 = vst.msk [vmem:[#allocation3 + $0x18] sm:$0xff] %vm317_vm1, %v961_v15  ;;  %v1043_v16 = vld [vmem:[#allocation2] sm:$0xff]  ;;  %v483_v54 = vpack.c.b16 %v482_v52, %v482_v52 }
  0x15   : > { %327 = vst.msk [vmem:[#allocation4] sm:$0xff] %vm326_vm0, %v961_v15  ;;  %v448_v60 = vld [vmem:[#allocation2 + $0x8] sm:$0xff] }
  0x16   : > { %328 = vst.msk [vmem:[#allocation4 + $0x8] sm:$0xff] %vm326_vm0, %v961_v15  ;;  %v534_v63 = vld [vmem:[#allocation2 + $0x10] sm:$0xff] }
  0x17   : > { %329 = vst.msk [vmem:[#allocation4 + $0x10] sm:$0xff] %vm326_vm0, %v961_v15  ;;  %v617_v56 = vld [vmem:[#allocation2 + $0x18] sm:$0xff] }
  0x18   : > { %861 = vmatmul.msk.bf16.vlgmr.msra.gmra.mxu0 %vm326_vm0, %v331_v2  ;;  %330 = vst.msk [vmem:[#allocation4 + $0x18] sm:$0xff] %vm326_vm0, %v961_v15 }
  0x1c   : > { %593 = vrot.lane.b32.xlu2 %v423_v8, %s958_s30 }
  0x24   : > { %591 = vrot.lane.b32.xlu2 %v418_v13, %s958_s30 }
  0x6e   : > { %v511_v22 = vpop.permute.xlu2 %510 }
  0x6f   : > { %v516_v25 = vsel %vm326_vm0, %v511_v22, 0 }
  0x70   : > { %525 = vmatpush.bf16.xpose.msrb.mxu1 %v516_v25 }
  0x76   : > { %v594_v26 = vpop.permute.xlu2 %593 }
  0x77   : > { %v599_v27 = vsel %vm326_vm0, %v594_v26, 0 }
  0x78   : > { %608 = vmatpush.bf16.xpose.msrb.mxu0 %v599_v27 }
  0x7e   : > { %v592_v28 = vpop.permute.xlu2 %591 }
  0x7f   : > { %867 = vmatmul.msk.bf16.vlgmr.msrb.gmra.mxu0 %vm326_vm0, %v592_v28 }
  0x95   : > { %v354_v6 = vpop.f32.mrf.mxu0 }
  0x96   : > { %v358_v7 = vmul.f32 0.25, %v354_v6 }
  0x98   : > { %v359_v9 = vadd.f32 %v1027_v4, %v358_v7 }
  0x9a   : > { %v362_v10 = vsel %vm361_vm2, %v359_v9, -inf }
  0x9b   : > { %363 = vmax.xlane.f32.xlu0 %v362_v10  ;;  %v377_v10 = vld [vmem:[#allocation3] sm:$0xff] }
  0x9d   : > { %v356_v11 = vpop.f32.mrf.mxu0 }
  0xaf   : > { %424 = vrot.lane.b32.xlu0 %v423_v8, %s959_s5 }
  0xfc   : > { %v610_v36 = vpop.f32.mrf.mxu0 }
  0xfd   : > { %v614_v37 = vmul.f32 0.25, %v610_v36 }
  0xff   : > { %v1068_v38 = vadd.f32 %v1027_v4, %v614_v37 }
 0x101   : > { %v618_v39 = vsel %vm361_vm2, %v1068_v38, -inf }
 0x102   : > { %619 = vmax.xlane.f32.xlu0 %v618_v39 }
 0x104   : > { %v612_v40 = vpop.f32.mrf.mxu0 }
 0x10e   : > { %v364_v17 = vpop.xlane.xlu0 %363 }
 0x10f   : > { %v1046_v18 = vmax.f32 %v1043_v16, %v364_v17 }
 0x111   : > { %v366_v19 = vsub.f32 %v1043_v16, %v1046_v18  ;;  %415 = vst.msk [vmem:[#allocation2] sm:$0xff] %vm317_vm1, %v1046_v18  ;;  %371 = vperm.xlu1 %904, %v1046_v18  }
 0x113   : > { %v367_v1 = vmul.f32 1.442695, %v366_v19 }
 0x119   : > { %419 = vrot.lane.b32.xlu1 %v418_v13, %s959_s5 }
 0x121   : > { %508 = vrot.lane.b32.xlu1 %v418_v13, %s957_s29  ;;  %v425_v20 = vpop.permute.xlu0 %424 }
 0x122   : > { %v430_v21 = vsel %vm326_vm0, %v425_v20, 0 }
 0x123   : > { %439 = vmatpush.bf16.xpose.msra.mxu2 %v430_v21 }
 0x175   : > { %v620_v57 = vpop.xlane.xlu0 %619 }
 0x176   : > { %v621_v58 = vmax.f32 %v617_v56, %v620_v57 }
 0x178   : > { %v622_v59 = vsub.f32 %v617_v56, %v621_v58  ;;  %673 = vst.msk [vmem:[#allocation2 + $0x18] sm:$0xff] %vm317_vm1, %v621_v58 }
 0x183   : > { %v372_v29 = vpop.permute.xlu1 %371 }
 0x184   : > { %v374_v30 = vsub.f32 %v359_v9, %v372_v29 }
 0x186   : > { %v375_v31 = vmul.f32 1.442695, %v374_v30  ;;  %v623_v30 = vmul.f32 1.442695, %v622_v59 }
 0x188   : > { %908 = vpow2.f32 %v375_v31  ;;  %v385_v31 = vld [vmem:[#allocation4] sm:$0xff] }
 0x189   : > { %910 = vpow2.f32 %v367_v1 }
 0x18b   : > { %v420_v32 = vpop.permute.xlu1 %419 }
 0x18c   : > { %863 = vmatmul.msk.bf16.vlgmr.msra.gmra.mxu2 %vm326_vm0, %v420_v32 }
 0x18e   : > { %v909_v33 = vpop.eup %908 }
 0x18f   : > { %v392_v34 = vpack.c.bf16 %v909_v33, %v909_v33  ;;  %v379_v55 = vsel %vm361_vm2, %v909_v33, 0.0  ;;  %v911_v6 = vpop.eup %910 }
 0x190   : > { %v378_v12 = vmul.f32 %v911_v6, %v377_v10 }
 0x191   : > { %862 = vmatmul.msk.bf16.vlgmr.msra.gmra.mxu1 %vm361_vm2, %v392_v34 }
 0x193   : > { %v509_v35 = vpop.permute.xlu1 %508 }
 0x1a1   : > { %865 = vmatmul.msk.bf16.vlgmr.msrb.gmra.mxu1 %vm326_vm0, %v509_v35 }
 0x20e   : > { %v1072_v41 = vpop.f32.mrf.mxu1 }
 0x20f   : > { %v441_v42 = vpop.f32.mrf.mxu2 }
 0x210   : > { %v445_v43 = vmul.f32 0.25, %v441_v42 }
 0x212   : > { %v446_v44 = vadd.f32 %v1027_v4, %v445_v43 }
 0x214   : > { %v449_v45 = vsel %vm361_vm2, %v446_v44, -inf }
 0x215   : > { %450 = vmax.xlane.f32.xlu1 %v449_v45 }
 0x216   : > { %v411_v46 = vpop.f32.mrf.mxu1 }
 0x217   : > { %v443_v47 = vpop.f32.mrf.mxu2  ;;  %v465_v46 = vld [vmem:[#allocation3 + $0x8] sm:$0xff] }
 0x21e   : > { %v527_v48 = vpop.f32.mrf.mxu1 }
 0x21f   : > { %v531_v49 = vmul.f32 0.25, %v527_v48 }
 0x221   : > { %v1077_v50 = vadd.f32 %v1027_v4, %v531_v49 }
 0x223   : > { %v535_v51 = vsel %vm361_vm2, %v1077_v50, -inf }
 0x224   : > { %536 = vmax.xlane.f32.xlu2 %v535_v51 }
 0x226   : > { %v529_v53 = vpop.f32.mrf.mxu1 }
 0x22e   : > { %484 = vrot.lane.b32.xlu1 %v483_v54, %s959_s5 }
 0x236   : > { %567 = vrot.lane.b32.xlu1 %v483_v54, %s957_s29 }
 0x260   : > { %380 = vadd.xlane.f32.xlu1 %v379_v55  ;;  %v473_v55 = vld [vmem:[#allocation4 + $0x8] sm:$0xff] }
 0x288   : > { %v451_v61 = vpop.xlane.xlu1 %450 }
 0x289   : > { %v452_v62 = vmax.f32 %v448_v60, %v451_v61 }
 0x28b   : > { %507 = vst.msk [vmem:[#allocation2 + $0x8] sm:$0xff] %vm317_vm1, %v452_v62  ;;  %458 = vperm.xlu2 %905, %v452_v62   ;;  %v453_v4 = vsub.f32 %v448_v60, %v452_v62  ;;  %v642_v62 = vld [vmem:[#allocation4 + $0x18] sm:$0xff] }
 0x28d   : > { %v454_v5 = vmul.f32 1.442695, %v453_v4 }
 0x28f   : > { %912 = vpow2.f32 %v454_v5 }
 0x293   : > { %627 = vperm.xlu2 %905, %v621_v58  }
 0x295   : > { %v913_v7 = vpop.eup %912 }
 0x296   : > { %v466_v47 = vmul.f32 %v913_v7, %v465_v46 }
 0x297   : > { %v537_v0 = vpop.xlane.xlu2 %536 }
 0x298   : > { %v538_v2 = vmax.f32 %v534_v63, %v537_v0 }
 0x29a   : > { %v539_v3 = vsub.f32 %v534_v63, %v538_v2  ;;  %590 = vst.msk [vmem:[#allocation2 + $0x10] sm:$0xff] %vm317_vm1, %v538_v2  ;;  %544 = vperm.xlu0 %906, %v538_v2  }
 0x29b   : > { %650 = vrot.lane.b32.xlu2 %v483_v54, %s958_s30 }
 0x29c   : > { %v540_v36 = vmul.f32 1.442695, %v539_v3 }
 0x2a0   : > { %v485_v8 = vpop.permute.xlu1 %484 }
 0x2a1   : > { %v490_v11 = vsel %vm396_vm3, %v485_v8, 0 }
 0x2a2   : > { %499 = vmatpush.bf16.msra.mxu3 %v490_v11  ;;  %v559_v11 = vld [vmem:[#allocation4 + $0x10] sm:$0xff] }
 0x2a3   : > { %388 = vperm.xlu2 %905, %v911_v6   ;;  %v551_v6 = vld [vmem:[#allocation3 + $0x10] sm:$0xff] }
 0x2a8   : > { %v568_v9 = vpop.permute.xlu1 %567 }
 0x2a9   : > { %v573_v24 = vsel %vm396_vm3, %v568_v9, 0 }
 0x2aa   : > { %582 = vmatpush.bf16.msrb.mxu3 %v573_v24 }
 0x2ab   : > { %476 = vperm.xlu2 %905, %v913_v7  }
 0x2d3   : > { %v381_v13 = vpop.xlane.xlu1 %380 }
 0x2d4   : > { %v382_v14 = vadd.f32 %v381_v13, %v378_v12 }
 0x2d6   : > { %384 = vst.msk [vmem:[#allocation3] sm:$0xff] %vm317_vm1, %v382_v14 }
 0x2e5   : > { %v459_v15 = vpop.permute.xlu2 %458 }
 0x2e6   : > { %v461_v16 = vsub.f32 %v446_v44, %v459_v15 }
 0x2e8   : > { %v462_v17 = vmul.f32 1.442695, %v461_v16 }
 0x2ea   : > { %914 = vpow2.f32 %v462_v17 }
 0x2ed   : > { %v628_v18 = vpop.permute.xlu2 %627 }
 0x2ee   : > { %v630_v19 = vsub.f32 %v1068_v38, %v628_v18 }
 0x2f0   : > { %v915_v20 = vpop.eup %914  ;;  %v631_v21 = vmul.f32 1.442695, %v630_v19 }
 0x2f1   : > { %v467_v22 = vsel %vm361_vm2, %v915_v20, 0.0  ;;  %v480_v23 = vpack.c.bf16 %v915_v20, %v915_v20 }
 0x2f2   : > { %916 = vpow2.f32 %v631_v21  ;;  %468 = vadd.xlane.f32.xlu0 %v467_v22 }
 0x2f3   : > { %864 = vmatmul.msk.bf16.vlgmr.msra.gmra.mxu3 %vm361_vm2, %v480_v23  ;;  %918 = vpow2.f32 %v623_v30 }
 0x2f4   : > { %920 = vpow2.f32 %v540_v36 }
 0x2f5   : > { %v651_v25 = vpop.permute.xlu2 %650 }
 0x2f6   : > { %v656_v26 = vsel %vm396_vm3, %v651_v25, 0 }
 0x2f7   : > { %665 = vmatpush.bf16.msrb.mxu2 %v656_v26 }
 0x2f8   : > { %v917_v27 = vpop.eup %916 }
 0x2f9   : > { %v636_v28 = vsel %vm361_vm2, %v917_v27, 0.0  ;;  %v649_v29 = vpack.c.bf16 %v917_v27, %v917_v27  ;;  %v919_v35 = vpop.eup %918 }
 0x2fa   : > { %637 = vadd.xlane.f32.xlu1 %v636_v28  ;;  %v921_v40 = vpop.eup %920 }
 0x2fb   : > { %868 = vmatmul.msk.bf16.vlgmr.msrb.gmra.mxu2 %vm361_vm2, %v649_v29  ;;  %v552_v7 = vmul.f32 %v921_v40, %v551_v6 }
 0x2fd   : > { %v389_v32 = vpop.permute.xlu2 %388 }
 0x2fe   : > { %v391_v33 = vmul.f32 %v389_v32, %v385_v31 }
 0x300   : > { %v413_v34 = vadd.f32 %v1072_v41, %v391_v33  ;;  %v678_v41 = vld [vmem:[#allocation3] sm:$0xff] }
 0x302   : > { %414 = vst.msk [vmem:[#allocation4] sm:$0xff] %vm326_vm0, %v413_v34 }
 0x305   : > { %v477_v56 = vpop.permute.xlu2 %476 }
 0x306   : > { %645 = vperm.xlu0 %906, %v919_v35   ;;  %v479_v57 = vmul.f32 %v477_v56, %v473_v55 }
 0x309   : > { %v677_v28 = vld [vmem:[#allocation4] sm:$0xff] }
 0x30c   : > { %v545_v37 = vpop.permute.xlu0 %544 }
 0x30d   : > { %v547_v38 = vsub.f32 %v1077_v50, %v545_v37  ;;  %v634_v50 = vld [vmem:[#allocation3 + $0x18] sm:$0xff] }
 0x30e   : > { %v635_v51 = vmul.f32 %v919_v35, %v634_v50 }
 0x30f   : > { %v548_v39 = vmul.f32 1.442695, %v547_v38 }
 0x311   : > { %922 = vpow2.f32 %v548_v39 }
 0x312   : > { %924 = vrcp.f32 %v678_v41 }
 0x313   : > { %562 = vperm.xlu1 %904, %v921_v40  }
 0x317   : > { %v923_v42 = vpop.eup %922 }
 0x318   : > { %v553_v43 = vsel %vm361_vm2, %v923_v42, 0.0  ;;  %v566_v44 = vpack.c.bf16 %v923_v42, %v923_v42  ;;  %v925_v45 = vpop.eup %924 }
 0x319   : > { %554 = vadd.xlane.f32.xlu2 %v553_v43 }
 0x31a   : > { %866 = vmatmul.msk.bf16.vlgmr.msrb.gmra.mxu3 %vm361_vm2, %v566_v44 }
 0x331   : > { %682 = vperm.xlu2 %905, %v925_v45  }
 0x365   : > { %v469_v48 = vpop.xlane.xlu0 %468 }
 0x366   : > { %v470_v49 = vadd.f32 %v469_v48, %v466_v47 }
 0x368   : > { %471 = vst.msk [vmem:[#allocation3 + $0x8] sm:$0xff] %vm317_vm1, %v470_v49 }
 0x36d   : > { %v638_v52 = vpop.xlane.xlu1 %637 }
 0x36e   : > { %v639_v53 = vadd.f32 %v638_v52, %v635_v51 }
 0x36f   : > { %v687_v54 = vld [vmem:[#allocation3 + $0x8] sm:$0xff] }
 0x370   : > { %640 = vst.msk [vmem:[#allocation3 + $0x18] sm:$0xff] %vm317_vm1, %v639_v53  ;;  %926 = vrcp.f32 %v687_v54 }
 0x376   : > { %v927_v58 = vpop.eup %926  ;;  %v501_v59 = vpop.f32.mrf.mxu3 }
 0x377   : > { %v505_v60 = vadd.f32 %v501_v59, %v479_v57  ;;  %691 = vperm.xlu0 %906, %v927_v58   ;;  %v705_v61 = vld [vmem:[#allocation3 + $0x18] sm:$0xff] }
 0x378   : > { %928 = vrcp.f32 %v705_v61  ;;  %v646_v63 = vpop.permute.xlu0 %645 }
 0x379   : > { %506 = vst.msk [vmem:[#allocation4 + $0x8] sm:$0xff] %vm326_vm0, %v505_v60  ;;  %v648_v0 = vmul.f32 %v646_v63, %v642_v62 }
 0x37e   : > { %v929_v1 = vpop.eup %928  ;;  %v503_v2 = vpop.f32.mrf.mxu3 }
 0x37f   : > { %v667_v3 = vpop.f32.mrf.mxu2  ;;  %709 = vperm.xlu0 %906, %v929_v1  }
 0x380   : > { %v671_v4 = vadd.f32 %v667_v3, %v648_v0  ;;  %v686_v18 = vld [vmem:[#allocation4 + $0x8] sm:$0xff] }
 0x382   : > { %672 = vst.msk [vmem:[#allocation4 + $0x18] sm:$0xff] %vm326_vm0, %v671_v4 }
 0x385   : > { %v563_v12 = vpop.permute.xlu1 %562 }
 0x386   : > { %v565_v13 = vmul.f32 %v563_v12, %v559_v11 }
 0x387   : > { %v669_v5 = vpop.f32.mrf.mxu2 }
 0x389   : > { %v704_v21 = vld [vmem:[#allocation4 + $0x18] sm:$0xff] }
 0x38c   : > { %v555_v8 = vpop.xlane.xlu2 %554 }
 0x38d   : > { %v556_v9 = vadd.f32 %v555_v8, %v552_v7 }
 0x38f   : > { %557 = vst.msk [vmem:[#allocation3 + $0x10] sm:$0xff] %vm317_vm1, %v556_v9 }
 0x394   : > { %v683_v27 = vpop.permute.xlu2 %682 }
 0x395   : > { %v685_v30 = vmul.f32 %v683_v27, %v677_v28 }
 0x396   : > { %v696_v10 = vld [vmem:[#allocation3 + $0x10] sm:$0xff] }
 0x397   : > { %930 = vrcp.f32 %v696_v10 }
 0x39d   : > { %v931_v14 = vpop.eup %930  ;;  %v584_v15 = vpop.f32.mrf.mxu3 }
 0x39e   : > { %v588_v16 = vadd.f32 %v584_v15, %v565_v13  ;;  %700 = vperm.xlu1 %904, %v931_v14  }
 0x3a0   : > { %589 = vst.msk [vmem:[#allocation4 + $0x10] sm:$0xff] %vm326_vm0, %v588_v16 }
 0x3a5   : > { %v586_v17 = vpop.f32.mrf.mxu3 }
 0x3a7   : > { %v695_v24 = vld [vmem:[#allocation4 + $0x10] sm:$0xff] }
 0x3e9   : > { %v692_v19 = vpop.permute.xlu0 %691 }
 0x3ea   : > { %v694_v20 = vmul.f32 %v692_v19, %v686_v18 }
 0x3ec   : > { %714 = vrot.lane.b32.xlu1 %v694_v20, %s962_s9 }
 0x3f1   : > { %v710_v22 = vpop.permute.xlu0 %709 }
 0x3f2   : > { %v712_v23 = vmul.f32 %v710_v22, %v704_v21 }
 0x3f4   : > { %722 = vrot.lane.b32.xlu0 %v712_v23, %s963_s10 }
 0x410   : > { %v701_v25 = vpop.permute.xlu1 %700 }
 0x411   : > { %v703_v26 = vmul.f32 %v701_v25, %v695_v24 }
 0x413   : > { %718 = vrot.lane.b32.xlu2 %v703_v26, %s964_s11 }
 0x45e   : > { %v715_v29 = vpop.permute.xlu1 %714 }
 0x45f   : > { %v725_v31 = vsel %vm326_vm0, %v685_v30, %v715_v29 }
 0x466   : > { %v723_v33 = vpop.permute.xlu0 %722 }
 0x46d   : > { %v719_v32 = vpop.permute.xlu2 %718 }
 0x46e   : > { %v727_v34 = vsel %vm726_vm4, %v725_v31, %v719_v32 }
 0x46f   : > { %v729_v35 = vsel %vm728_vm5, %v727_v34, %v723_v33 }
 0x470   : > { %v730_v36 = vpack.c.bf16 %v729_v35, %v729_v35 }
 0x472   : > { %732 = vst.msk [vmem:[%s311_s14] sm:$0xf] %vm731_vm6, %v730_v36 }
 0x473 PF: > { %s14_s17 = sadd.s32 1, %s954_s17   ;;  %s1130_s15 = smov %s950_s16 }
 0x474   : > { %p11_p5 = scmp.ge.s32.totalorder %s14_s17, 4   ;;  %s1131_s16 = smov %s1133_s18 }
 0x476   :  { %13 = sbr.rel (!%p11_p5) target bundleno = 2 (0x2), region = 92 }

// kernel: transformer_forward.37
= control target key start
LH: loop header
LB: loop body
LE: loop exit
PB: predicated region body
PF: predicated region fallthrough
CT: control target
= control target key end

     0   :  { %s1003_s15 = smov 0   ;;  %s1005_s16 = smov 0   ;;  %s1142_s0 = inlined_call_operand.vmem [shape: bf16[2,8,64], index: 0, kind: input, shape index: {}]   ;;  %s1143_s1 = inlined_call_operand.vmem [shape: bf16[2,8,64], index: 1, kind: input, shape index: {}]   ;;  %s1144_s2 = inlined_call_operand.vmem [shape: bf16[2,8,64], index: 2, kind: input, shape index: {}]   ;;  %s1145_s3 = inlined_call_operand.vmem [shape: f32[2,1,8], index: 3, kind: input, shape index: {}]   ;;  %s1146_s4 = inlined_call_operand.vmem [shape: bf16[2,8,64], index: 4, kind: output, shape index: {}]  }
   0x1   :  { %s1007_s17 = smov 0  }
   0x2 LB: > { %s33_s18 = sadd.s32 1, %s963_s16  ;;  %p869_p0 = scmp.ge.s32.totalorder %s967_s17, 1  ;;  %s967_s17 = sphi %s1007_s17, %s14_s17   ;;  %s963_s16 = sphi %s1005_s16, %s1148_s16   ;;  %s959_s15 = sphi %s1003_s15, %s1147_s15  }
   0x3   : > { %p35_p1 = scmp.ge.s32.totalorder %s33_s18, 2  ;;  %p228_p2 = scmp.lt.s32.totalorder %s967_s17, 3 }
   0x5   : > { %s1150_s18 = smov (%p35_p1, %s33_s18), 0  ;;  %p229_p3 = pnand %p869_p0, %p228_p2 }
   0x6   : > { %p278_p4 = scmp.lt.s32.totalorder (!%p229_p3), %s959_s15, 1  ;;  %s971_s29 = smov (!%p229_p3), 96  }
   0x7   : > { %232 = sbr.rel (%p229_p3) target bundleno = 1139 (0x473), region = 36  ;;  %s972_s30 = smov (!%p229_p3), 80  }
   0x8   : > { %s973_s5 = smov (!%p229_p3), 112   ;;  %s975_s9 = smov (!%p229_p3), 16  }
   0x9   : > { %s976_s10 = smov (!%p229_p3), 48   ;;  %s977_s11 = smov (!%p229_p3), 32  }
   0xc   : > { %s1152_s15 = smov (!%p278_p4, %s959_s15), 1  ;;  %vm326_vm0 = vcmask 130048   ;;  %v969_v3 = vmov 0.0   ;;  %vm317_vm1 = vcmask 7168   ;;  %v970_v4 = vmov -inf  }
   0xd   : > { %s1024_s19 = sshll.u32 %s1152_s15, 2  ;;  %s304_s22 = scalar_lea.vmem %s1145_s3, %s1152_s15  ;;  %327 = vst.msk [vmem:[#allocation4] sm:$0xff] %vm326_vm0, %v969_v3  ;;  %v338_v5 = vlaneseq  ;;  %vm374_vm3 = vcmask 64512   ;;  %v974_v20 = vmov 0   ;;  %vm409_vm4 = vcmask 1043456  }
   0xe   : > { %s291_s25 = scalar_lea.vmem %s1143_s1, %s1024_s19  ;;  %s284_s28 = scalar_lea.vmem %s1142_s0, %s1024_s19  ;;  %328 = vst.msk [vmem:[#allocation4 + $0x8] sm:$0xff] %vm326_vm0, %v969_v3  ;;  %v920_v8 = vld [vmem:[%s304_s22] ss:$0 sm:$0xff]  ;;  %917 = vset.pattern.permute.xlu1 %v974_v20  ;;  %918 = vset.pattern.permute.xlu2 %v974_v20  ;;  %vm739_vm5 = vcmask 261120   ;;  %vm741_vm6 = vcmask 392192   ;;  %vm744_vm7 = vcmask 519168  }
   0xf   : > { %v332_v0 = vld [vmem:[%s291_s25] sm:$0xf]  ;;  %329 = vst.msk [vmem:[#allocation4 + $0x10] sm:$0xff] %vm326_vm0, %v969_v3  ;;  %v339_v6 = vshrl.u32 %v338_v5, 7  ;;  %v344_v7 = vand.u32 127, %v338_v5  ;;  %919 = vset.pattern.permute.xlu0 %v974_v20  ;;  %s298_s8 = scalar_lea.vmem %s1144_s2, %s1024_s19  ;;  %s311_s14 = scalar_lea.vmem %s1146_s4, %s1024_s19 }
  0x10   : > { %v356_v1 = vsel %vm326_vm0, %v332_v0, 0  ;;  %v331_v2 = vld [vmem:[%s284_s28] sm:$0xf]  ;;  %330 = vst.msk [vmem:[#allocation4 + $0x18] sm:$0xff] %vm326_vm0, %v969_v3  ;;  %v435_v10 = vunpack.c.l.b16 %v332_v0 }
  0x11   : > { %365 = vmatpush.bf16.xpose.msra.mxu0 %v356_v1  ;;  %318 = vst.msk [vmem:[#allocation2] sm:$0xff] %vm317_vm1, %v970_v4  ;;  %vm348_vm2 = vcmp.gt.s32.totalorder %v344_v7, %v339_v6  ;;  %v430_v18 = vunpack.c.l.b16 %v331_v2  ;;  %v333_v28 = vld [vmem:[%s298_s8] sm:$0xf] }
  0x12   : > { %319 = vst.msk [vmem:[#allocation2 + $0x8] sm:$0xff] %vm317_vm1, %v970_v4  ;;  %v349_v9 = vsel %vm348_vm2, -1e+30, %v969_v3  ;;  %v436_v14 = vpack.c.b16 %v435_v10, %v435_v10  ;;  %v411_v29 = vsel %vm409_vm4, %v333_v28, 0  ;;  %v495_v57 = vunpack.c.l.b16 %v333_v28 }
  0x13   : > { %320 = vst.msk [vmem:[#allocation2 + $0x10] sm:$0xff] %vm317_vm1, %v970_v4  ;;  %v1052_v11 = vadd.f32 %v920_v8, %v349_v9  ;;  %v431_v19 = vpack.c.b16 %v430_v18, %v430_v18  ;;  %420 = vmatpush.bf16.msra.mxu1 %v411_v29 }
  0x14   : > { %321 = vst.msk [vmem:[#allocation2 + $0x18] sm:$0xff] %vm317_vm1, %v970_v4  ;;  %523 = vrot.lane.b32.xlu2 %v436_v14, %s971_s29  ;;  %v496_v59 = vpack.c.b16 %v495_v57, %v495_v57 }
  0x15   : > { %322 = vst.msk [vmem:[#allocation3] sm:$0xff] %vm317_vm1, %v969_v3 }
  0x16   : > { %323 = vst.msk [vmem:[#allocation3 + $0x8] sm:$0xff] %vm317_vm1, %v969_v3 }
  0x17   : > { %324 = vst.msk [vmem:[#allocation3 + $0x10] sm:$0xff] %vm317_vm1, %v969_v3 }
  0x18   : > { %874 = vmatmul.msk.bf16.vlgmr.msra.gmra.mxu0 %vm326_vm0, %v331_v2  ;;  %325 = vst.msk [vmem:[#allocation3 + $0x18] sm:$0xff] %vm317_vm1, %v969_v3  ;;  %v1060_v21 = vld [vmem:[#allocation2] sm:$0xff] }
  0x19   : > { %v461_v1 = vld [vmem:[#allocation2 + $0x8] sm:$0xff] }
  0x1a   : > { %v547_v4 = vld [vmem:[#allocation2 + $0x10] sm:$0xff] }
  0x1b   : > { %v630_v61 = vld [vmem:[#allocation2 + $0x18] sm:$0xff] }
  0x1c   : > { %606 = vrot.lane.b32.xlu2 %v436_v14, %s972_s30 }
  0x24   : > { %604 = vrot.lane.b32.xlu2 %v431_v19, %s972_s30 }
  0x6e   : > { %v524_v27 = vpop.permute.xlu2 %523 }
  0x6f   : > { %v529_v30 = vsel %vm326_vm0, %v524_v27, 0 }
  0x70   : > { %538 = vmatpush.bf16.xpose.msrb.mxu1 %v529_v30 }
  0x76   : > { %v607_v31 = vpop.permute.xlu2 %606 }
  0x77   : > { %v612_v32 = vsel %vm326_vm0, %v607_v31, 0 }
  0x78   : > { %621 = vmatpush.bf16.xpose.msrb.mxu0 %v612_v32 }
  0x7e   : > { %v605_v33 = vpop.permute.xlu2 %604 }
  0x7f   : > { %880 = vmatmul.msk.bf16.vlgmr.msrb.gmra.mxu0 %vm326_vm0, %v605_v33 }
  0x95   : > { %v367_v12 = vpop.f32.mrf.mxu0 }
  0x96   : > { %v371_v13 = vmul.f32 0.25, %v367_v12 }
  0x98   : > { %v372_v15 = vadd.f32 %v371_v13, %v1052_v11 }
  0x9a   : > { %v375_v16 = vsel %vm374_vm3, %v372_v15, -inf }
  0x9b   : > { %376 = vmax.xlane.f32.xlu0 %v375_v16 }
  0x9d   : > { %v369_v17 = vpop.f32.mrf.mxu0 }
  0xaf   : > { %437 = vrot.lane.b32.xlu0 %v436_v14, %s973_s5 }
  0xfc   : > { %v623_v41 = vpop.f32.mrf.mxu0 }
  0xfd   : > { %v627_v42 = vmul.f32 0.25, %v623_v41 }
  0xff   : > { %v1085_v43 = vadd.f32 %v627_v42, %v1052_v11 }
 0x101   : > { %v631_v44 = vsel %vm374_vm3, %v1085_v43, -inf }
 0x102   : > { %632 = vmax.xlane.f32.xlu0 %v631_v44 }
 0x104   : > { %v625_v45 = vpop.f32.mrf.mxu0 }
 0x10e   : > { %v377_v22 = vpop.xlane.xlu0 %376 }
 0x10f   : > { %v1063_v23 = vmax.f32 %v1060_v21, %v377_v22 }
 0x111   : > { %v379_v24 = vsub.f32 %v1060_v21, %v1063_v23  ;;  %428 = vst.msk [vmem:[#allocation2] sm:$0xff] %vm317_vm1, %v1063_v23  ;;  %384 = vperm.xlu1 %917, %v1063_v23  }
 0x113   : > { %v380_v6 = vmul.f32 1.442695, %v379_v24 }
 0x119   : > { %432 = vrot.lane.b32.xlu1 %v431_v19, %s973_s5 }
 0x121   : > { %521 = vrot.lane.b32.xlu1 %v431_v19, %s971_s29  ;;  %v438_v25 = vpop.permute.xlu0 %437 }
 0x122   : > { %v443_v26 = vsel %vm326_vm0, %v438_v25, 0 }
 0x123   : > { %452 = vmatpush.bf16.xpose.msra.mxu2 %v443_v26 }
 0x175   : > { %v633_v62 = vpop.xlane.xlu0 %632 }
 0x176   : > { %v634_v63 = vmax.f32 %v630_v61, %v633_v62 }
 0x178   : > { %v635_v0 = vsub.f32 %v630_v61, %v634_v63  ;;  %686 = vst.msk [vmem:[#allocation2 + $0x18] sm:$0xff] %vm317_vm1, %v634_v63 }
 0x183   : > { %v385_v34 = vpop.permute.xlu1 %384 }
 0x184   : > { %v387_v35 = vsub.f32 %v372_v15, %v385_v34  ;;  %v390_v15 = vld [vmem:[#allocation3] sm:$0xff] }
 0x186   : > { %v388_v36 = vmul.f32 1.442695, %v387_v35  ;;  %v636_v35 = vmul.f32 1.442695, %v635_v0 }
 0x188   : > { %921 = vpow2.f32 %v388_v36  ;;  %v398_v36 = vld [vmem:[#allocation4] sm:$0xff] }
 0x189   : > { %923 = vpow2.f32 %v380_v6 }
 0x18b   : > { %v433_v37 = vpop.permute.xlu1 %432 }
 0x18c   : > { %876 = vmatmul.msk.bf16.vlgmr.msra.gmra.mxu2 %vm326_vm0, %v433_v37 }
 0x18e   : > { %v922_v38 = vpop.eup %921 }
 0x18f   : > { %v405_v39 = vpack.c.bf16 %v922_v38, %v922_v38  ;;  %v392_v60 = vsel %vm374_vm3, %v922_v38, 0.0 }
 0x191   : > { %875 = vmatmul.msk.bf16.vlgmr.msra.gmra.mxu1 %vm374_vm3, %v405_v39 }
 0x193   : > { %v522_v40 = vpop.permute.xlu1 %521 }
 0x1a1   : > { %878 = vmatmul.msk.bf16.vlgmr.msrb.gmra.mxu1 %vm326_vm0, %v522_v40 }
 0x20e   : > { %v1089_v46 = vpop.f32.mrf.mxu1 }
 0x20f   : > { %v454_v47 = vpop.f32.mrf.mxu2 }
 0x210   : > { %v458_v48 = vmul.f32 0.25, %v454_v47 }
 0x212   : > { %v459_v49 = vadd.f32 %v458_v48, %v1052_v11 }
 0x214   : > { %v462_v50 = vsel %vm374_vm3, %v459_v49, -inf }
 0x215   : > { %463 = vmax.xlane.f32.xlu1 %v462_v50 }
 0x216   : > { %v424_v51 = vpop.f32.mrf.mxu1 }
 0x217   : > { %v456_v52 = vpop.f32.mrf.mxu2  ;;  %v478_v51 = vld [vmem:[#allocation3 + $0x8] sm:$0xff] }
 0x21e   : > { %v540_v53 = vpop.f32.mrf.mxu1 }
 0x21f   : > { %v544_v54 = vmul.f32 0.25, %v540_v53 }
 0x221   : > { %v1094_v55 = vadd.f32 %v544_v54, %v1052_v11  ;;  %v924_v11 = vpop.eup %923 }
 0x222   : > { %v391_v17 = vmul.f32 %v924_v11, %v390_v15 }
 0x223   : > { %v548_v56 = vsel %vm374_vm3, %v1094_v55, -inf }
 0x224   : > { %549 = vmax.xlane.f32.xlu2 %v548_v56 }
 0x226   : > { %v542_v58 = vpop.f32.mrf.mxu1 }
 0x22e   : > { %497 = vrot.lane.b32.xlu1 %v496_v59, %s973_s5 }
 0x236   : > { %580 = vrot.lane.b32.xlu1 %v496_v59, %s971_s29 }
 0x260   : > { %393 = vadd.xlane.f32.xlu1 %v392_v60  ;;  %v486_v60 = vld [vmem:[#allocation4 + $0x8] sm:$0xff] }
 0x288   : > { %v464_v2 = vpop.xlane.xlu1 %463 }
 0x289   : > { %v465_v3 = vmax.f32 %v461_v1, %v464_v2 }
 0x28b   : > { %520 = vst.msk [vmem:[#allocation2 + $0x8] sm:$0xff] %vm317_vm1, %v465_v3  ;;  %471 = vperm.xlu2 %918, %v465_v3   ;;  %v466_v9 = vsub.f32 %v461_v1, %v465_v3  ;;  %v655_v3 = vld [vmem:[#allocation4 + $0x18] sm:$0xff] }
 0x28d   : > { %v467_v10 = vmul.f32 1.442695, %v466_v9 }
 0x28f   : > { %925 = vpow2.f32 %v467_v10 }
 0x293   : > { %640 = vperm.xlu2 %918, %v634_v63  }
 0x295   : > { %v926_v12 = vpop.eup %925 }
 0x296   : > { %v479_v52 = vmul.f32 %v926_v12, %v478_v51 }
 0x297   : > { %v550_v5 = vpop.xlane.xlu2 %549 }
 0x298   : > { %v551_v7 = vmax.f32 %v547_v4, %v550_v5 }
 0x29a   : > { %v552_v8 = vsub.f32 %v547_v4, %v551_v7  ;;  %603 = vst.msk [vmem:[#allocation2 + $0x10] sm:$0xff] %vm317_vm1, %v551_v7  ;;  %557 = vperm.xlu0 %919, %v551_v7  }
 0x29b   : > { %663 = vrot.lane.b32.xlu2 %v496_v59, %s972_s30 }
 0x29c   : > { %v553_v41 = vmul.f32 1.442695, %v552_v8 }
 0x2a0   : > { %v498_v13 = vpop.permute.xlu1 %497 }
 0x2a1   : > { %v503_v16 = vsel %vm409_vm4, %v498_v13, 0 }
 0x2a2   : > { %512 = vmatpush.bf16.msra.mxu3 %v503_v16  ;;  %v572_v16 = vld [vmem:[#allocation4 + $0x10] sm:$0xff] }
 0x2a3   : > { %401 = vperm.xlu2 %918, %v924_v11   ;;  %v564_v11 = vld [vmem:[#allocation3 + $0x10] sm:$0xff] }
 0x2a8   : > { %v581_v14 = vpop.permute.xlu1 %580 }
 0x2a9   : > { %v586_v29 = vsel %vm409_vm4, %v581_v14, 0 }
 0x2aa   : > { %595 = vmatpush.bf16.msrb.mxu3 %v586_v29 }
 0x2ab   : > { %489 = vperm.xlu2 %918, %v926_v12  }
 0x2d3   : > { %v394_v18 = vpop.xlane.xlu1 %393 }
 0x2d4   : > { %v395_v19 = vadd.f32 %v394_v18, %v391_v17 }
 0x2d6   : > { %397 = vst.msk [vmem:[#allocation3] sm:$0xff] %vm317_vm1, %v395_v19 }
 0x2e5   : > { %v472_v20 = vpop.permute.xlu2 %471 }
 0x2e6   : > { %v474_v21 = vsub.f32 %v459_v49, %v472_v20 }
 0x2e8   : > { %v475_v22 = vmul.f32 1.442695, %v474_v21 }
 0x2ea   : > { %927 = vpow2.f32 %v475_v22 }
 0x2ed   : > { %v641_v23 = vpop.permute.xlu2 %640 }
 0x2ee   : > { %v643_v24 = vsub.f32 %v1085_v43, %v641_v23 }
 0x2f0   : > { %v928_v25 = vpop.eup %927  ;;  %v644_v26 = vmul.f32 1.442695, %v643_v24 }
 0x2f1   : > { %v480_v27 = vsel %vm374_vm3, %v928_v25, 0.0  ;;  %v493_v28 = vpack.c.bf16 %v928_v25, %v928_v25 }
 0x2f2   : > { %929 = vpow2.f32 %v644_v26  ;;  %481 = vadd.xlane.f32.xlu0 %v480_v27 }
 0x2f3   : > { %877 = vmatmul.msk.bf16.vlgmr.msra.gmra.mxu3 %vm374_vm3, %v493_v28  ;;  %931 = vpow2.f32 %v636_v35 }
 0x2f4   : > { %933 = vpow2.f32 %v553_v41 }
 0x2f5   : > { %v664_v30 = vpop.permute.xlu2 %663 }
 0x2f6   : > { %v669_v31 = vsel %vm409_vm4, %v664_v30, 0 }
 0x2f7   : > { %678 = vmatpush.bf16.msrb.mxu2 %v669_v31 }
 0x2f8   : > { %v930_v32 = vpop.eup %929 }
 0x2f9   : > { %v649_v33 = vsel %vm374_vm3, %v930_v32, 0.0  ;;  %v662_v34 = vpack.c.bf16 %v930_v32, %v930_v32  ;;  %v932_v40 = vpop.eup %931 }
 0x2fa   : > { %650 = vadd.xlane.f32.xlu1 %v649_v33  ;;  %v934_v45 = vpop.eup %933 }
 0x2fb   : > { %881 = vmatmul.msk.bf16.vlgmr.msrb.gmra.mxu2 %vm374_vm3, %v662_v34  ;;  %v565_v12 = vmul.f32 %v934_v45, %v564_v11 }
 0x2fd   : > { %v402_v37 = vpop.permute.xlu2 %401 }
 0x2fe   : > { %v404_v38 = vmul.f32 %v402_v37, %v398_v36 }
 0x300   : > { %v426_v39 = vadd.f32 %v1089_v46, %v404_v38  ;;  %v691_v46 = vld [vmem:[#allocation3] sm:$0xff] }
 0x302   : > { %427 = vst.msk [vmem:[#allocation4] sm:$0xff] %vm326_vm0, %v426_v39 }
 0x305   : > { %v490_v61 = vpop.permute.xlu2 %489 }
 0x306   : > { %658 = vperm.xlu0 %919, %v932_v40   ;;  %v492_v62 = vmul.f32 %v490_v61, %v486_v60 }
 0x309   : > { %v690_v33 = vld [vmem:[#allocation4] sm:$0xff] }
 0x30c   : > { %v558_v42 = vpop.permute.xlu0 %557 }
 0x30d   : > { %v560_v43 = vsub.f32 %v1094_v55, %v558_v42  ;;  %v647_v55 = vld [vmem:[#allocation3 + $0x18] sm:$0xff] }
 0x30e   : > { %v648_v56 = vmul.f32 %v932_v40, %v647_v55 }
 0x30f   : > { %v561_v44 = vmul.f32 1.442695, %v560_v43 }
 0x311   : > { %935 = vpow2.f32 %v561_v44 }
 0x312   : > { %937 = vrcp.f32 %v691_v46 }
 0x313   : > { %575 = vperm.xlu1 %917, %v934_v45  }
 0x317   : > { %v936_v47 = vpop.eup %935 }
 0x318   : > { %v566_v48 = vsel %vm374_vm3, %v936_v47, 0.0  ;;  %v579_v49 = vpack.c.bf16 %v936_v47, %v936_v47  ;;  %v938_v50 = vpop.eup %937 }
 0x319   : > { %567 = vadd.xlane.f32.xlu2 %v566_v48 }
 0x31a   : > { %879 = vmatmul.msk.bf16.vlgmr.msrb.gmra.mxu3 %vm374_vm3, %v579_v49 }
 0x331   : > { %695 = vperm.xlu2 %918, %v938_v50  }
 0x365   : > { %v482_v53 = vpop.xlane.xlu0 %481 }
 0x366   : > { %v483_v54 = vadd.f32 %v482_v53, %v479_v52 }
 0x368   : > { %484 = vst.msk [vmem:[#allocation3 + $0x8] sm:$0xff] %vm317_vm1, %v483_v54 }
 0x36d   : > { %v651_v57 = vpop.xlane.xlu1 %650 }
 0x36e   : > { %v652_v58 = vadd.f32 %v651_v57, %v648_v56 }
 0x36f   : > { %v700_v59 = vld [vmem:[#allocation3 + $0x8] sm:$0xff] }
 0x370   : > { %653 = vst.msk [vmem:[#allocation3 + $0x18] sm:$0xff] %vm317_vm1, %v652_v58  ;;  %939 = vrcp.f32 %v700_v59 }
 0x376   : > { %v940_v63 = vpop.eup %939  ;;  %v514_v0 = vpop.f32.mrf.mxu3 }
 0x377   : > { %v518_v1 = vadd.f32 %v514_v0, %v492_v62  ;;  %704 = vperm.xlu0 %919, %v940_v63   ;;  %v718_v2 = vld [vmem:[#allocation3 + $0x18] sm:$0xff] }
 0x378   : > { %941 = vrcp.f32 %v718_v2  ;;  %v659_v4 = vpop.permute.xlu0 %658 }
 0x379   : > { %519 = vst.msk [vmem:[#allocation4 + $0x8] sm:$0xff] %vm326_vm0, %v518_v1  ;;  %v661_v5 = vmul.f32 %v659_v4, %v655_v3 }
 0x37e   : > { %v942_v6 = vpop.eup %941  ;;  %v516_v7 = vpop.f32.mrf.mxu3 }
 0x37f   : > { %v680_v8 = vpop.f32.mrf.mxu2  ;;  %722 = vperm.xlu0 %919, %v942_v6  }
 0x380   : > { %v684_v9 = vadd.f32 %v680_v8, %v661_v5  ;;  %v699_v23 = vld [vmem:[#allocation4 + $0x8] sm:$0xff] }
 0x382   : > { %685 = vst.msk [vmem:[#allocation4 + $0x18] sm:$0xff] %vm326_vm0, %v684_v9 }
 0x385   : > { %v576_v17 = vpop.permute.xlu1 %575 }
 0x386   : > { %v578_v18 = vmul.f32 %v576_v17, %v572_v16 }
 0x387   : > { %v682_v10 = vpop.f32.mrf.mxu2 }
 0x389   : > { %v717_v26 = vld [vmem:[#allocation4 + $0x18] sm:$0xff] }
 0x38c   : > { %v568_v13 = vpop.xlane.xlu2 %567 }
 0x38d   : > { %v569_v14 = vadd.f32 %v568_v13, %v565_v12 }
 0x38f   : > { %570 = vst.msk [vmem:[#allocation3 + $0x10] sm:$0xff] %vm317_vm1, %v569_v14 }
 0x394   : > { %v696_v32 = vpop.permute.xlu2 %695 }
 0x395   : > { %v698_v35 = vmul.f32 %v696_v32, %v690_v33 }
 0x396   : > { %v709_v15 = vld [vmem:[#allocation3 + $0x10] sm:$0xff] }
 0x397   : > { %943 = vrcp.f32 %v709_v15 }
 0x39d   : > { %v944_v19 = vpop.eup %943  ;;  %v597_v20 = vpop.f32.mrf.mxu3 }
 0x39e   : > { %v601_v21 = vadd.f32 %v597_v20, %v578_v18  ;;  %713 = vperm.xlu1 %917, %v944_v19  }
 0x3a0   : > { %602 = vst.msk [vmem:[#allocation4 + $0x10] sm:$0xff] %vm326_vm0, %v601_v21 }
 0x3a5   : > { %v599_v22 = vpop.f32.mrf.mxu3 }
 0x3a7   : > { %v708_v29 = vld [vmem:[#allocation4 + $0x10] sm:$0xff] }
 0x3e9   : > { %v705_v24 = vpop.permute.xlu0 %704 }
 0x3ea   : > { %v707_v25 = vmul.f32 %v705_v24, %v699_v23 }
 0x3ec   : > { %727 = vrot.lane.b32.xlu1 %v707_v25, %s975_s9 }
 0x3f1   : > { %v723_v27 = vpop.permute.xlu0 %722 }
 0x3f2   : > { %v725_v28 = vmul.f32 %v723_v27, %v717_v26 }
 0x3f4   : > { %735 = vrot.lane.b32.xlu0 %v725_v28, %s976_s10 }
 0x410   : > { %v714_v30 = vpop.permute.xlu1 %713 }
 0x411   : > { %v716_v31 = vmul.f32 %v714_v30, %v708_v29 }
 0x413   : > { %731 = vrot.lane.b32.xlu2 %v716_v31, %s977_s11 }
 0x45e   : > { %v728_v34 = vpop.permute.xlu1 %727 }
 0x45f   : > { %v738_v36 = vsel %vm326_vm0, %v698_v35, %v728_v34 }
 0x466   : > { %v736_v38 = vpop.permute.xlu0 %735 }
 0x46d   : > { %v732_v37 = vpop.permute.xlu2 %731 }
 0x46e   : > { %v740_v39 = vsel %vm739_vm5, %v738_v36, %v732_v37 }
 0x46f   : > { %v742_v40 = vsel %vm741_vm6, %v740_v39, %v736_v38 }
 0x470   : > { %v743_v41 = vpack.c.bf16 %v742_v40, %v742_v40 }
 0x472   : > { %745 = vst.msk [vmem:[%s311_s14] sm:$0xf] %vm744_vm7, %v743_v41 }
 0x473 PF: > { %s14_s17 = sadd.s32 1, %s967_s17   ;;  %s1147_s15 = smov %s963_s16 }
 0x474   : > { %p11_p5 = scmp.ge.s32.totalorder %s14_s17, 4   ;;  %s1148_s16 = smov %s1150_s18 }
 0x476   :  { %13 = sbr.rel (!%p11_p5) target bundleno = 2 (0x2), region = 92 }

// kernel: transformer_forward.40
= control target key start
LH: loop header
LB: loop body
LE: loop exit
PB: predicated region body
PF: predicated region fallthrough
CT: control target
= control target key end

     0   :  { %vm60_vm0 = vcmask 523264   ;;  %vm80_vm1 = vcmask 519168   ;;  %s185_s1 = inlined_call_operand.vmem [shape: bf16[64,128], index: 1, kind: input, shape index: {}]   ;;  %s186_s2 = inlined_call_operand.vmem [shape: f32[1,128], index: 2, kind: input, shape index: {}]   ;;  %s187_s0 = inlined_call_operand.vmem [shape: bf16[16,64], index: 0, kind: input, shape index: {}]   ;;  %s188_s3 = inlined_call_operand.vmem [shape: bf16[16,64], index: 3, kind: output, shape index: {0}]   ;;  %s189_s4 = inlined_call_operand.vmem [shape: bf16[16,64], index: 4, kind: output, shape index: {1}]  }
   0x1   :  { %v126_v0 = vld [vmem:[%s185_s1 + $0x18] sm:$0xff]  ;;  %v125_v1 = vld [vmem:[%s185_s1 + $0x10] sm:$0xff]  ;;  %v124_v2 = vld [vmem:[%s185_s1 + $0x8] sm:$0xff] }
   0x2   :  { %68 = vmatpush.bf16.msra.mxu0 %v126_v0  ;;  %v123_v3 = vld [vmem:[%s185_s1] sm:$0xff]  ;;  %s129_s1 = smov 64  }
   0x3   :  { %v122_v4 = vld [vmem:[%s187_s0] sm:$0xff] }
   0x4   :  { %v128_v5 = vld [vmem:[%s186_s2] ss:$0 sm:$0xff] }
   0x6   :  { %69 = vmatpush.bf16.msra.mxu0 %v125_v1 }
   0xa   :  { %70 = vmatpush.bf16.msra.mxu0 %v124_v2 }
   0xe   :  { %71 = vmatpush.bf16.msra.mxu0 %v123_v3 }
  0x11   :  { %121 = vmatmul.msk.bf16.vlgmr.msra.gmra.mxu0 %vm60_vm0, %v122_v4 }
  0x8e   :  { %v73_v6 = vpop.f32.mrf.mxu0 }
  0x8f   :  { %v74_v7 = vadd.f32 %v128_v5, %v73_v6 }
  0x91   :  { %v78_v8 = vpack.c.bf16 %v74_v7, %v74_v7 }
  0x93   :  { %81 = vst.msk [vmem:[%s188_s3] sm:$0xf] %vm80_vm1, %v78_v8  ;;  %85 = vrot.lane.b32.xlu0 %v78_v8, %s129_s1 }
  0x96   :  { %v75_v9 = vpop.f32.mrf.mxu0 }
  0x97   :  { %v76_v10 = vadd.f32 %v128_v5, %v75_v9 }
  0x99   :  { %v79_v11 = vpack.c.bf16 %v76_v10, %v76_v10 }
  0x9b   :  { %82 = vst.msk [vmem:[%s188_s3 + $0x4] sm:$0xf] %vm80_vm1, %v79_v11  ;;  %87 = vrot.lane.b32.xlu0 %v79_v11, %s129_s1 }
 0x105   :  { %v86_v12 = vpop.permute.xlu0 %85 }
 0x106   :  { %91 = vst.msk [vmem:[%s189_s4] sm:$0xf] %vm80_vm1, %v86_v12 }
 0x10d   :  { %v88_v13 = vpop.permute.xlu0 %87 }
 0x10e   :  { %92 = vst.msk [vmem:[%s189_s4 + $0x4] sm:$0xf] %vm80_vm1, %v88_v13 }

// kernel: transformer_forward.39
= control target key start
LH: loop header
LB: loop body
LE: loop exit
PB: predicated region body
PF: predicated region fallthrough
CT: control target
= control target key end

     0   :  { %8 = vsyncpa [#allocation3], 0  ;;  %s158_s15 = smov [#allocation2]   ;;  %s159_s17 = smov 64   ;;  %s196_s0 = inlined_call_operand.vmem [shape: bf16[16,64], index: 0, kind: input, shape index: {}]   ;;  %s197_s1 = inlined_call_operand.hbm [shape: bf16[64,64], index: 1, kind: input, shape index: {}]   ;;  %s198_s2 = inlined_call_operand.vmem [shape: f32[1,64], index: 2, kind: input, shape index: {}]   ;;  %s199_s3 = inlined_call_operand.vmem [shape: bf16[16,64], index: 3, kind: output, shape index: {}]  }
   0x1   :  { %s15_s14 = sshll.u32 %s197_s1, 4  ;;  %s17_s16 = sshll.u32 %s158_s15, 4  ;;  %s16_s14 = int_to_ptr.hbm [resolvable:$true] %s15_s14  ;;  %s18_s16 = int_to_ptr.vmem [resolvable:$true] %s17_s16 }
   0x2   :  { %s160_s18 = smov 4  }
   0x3   :  { %23 = dma.hbm_to_vmem [thread:$0]  %s16_s14, 512, %s18_s16, [#allocation3], %s159_s17, %s159_s17, %s160_s18  }
   0x4   :  { %156 = dma.done.wait [#allocation3], 512  }
   0x5   :  { %157 = vsyncadd [#allocation3], 4294966784  ;;  %v127_v0 = vld [vmem:[#allocation2 + $0x18] sm:$0xff]  ;;  %v126_v1 = vld [vmem:[#allocation2 + $0x10] sm:$0xff]  ;;  %vm74_vm0 = vcmask 523264   ;;  %vm94_vm1 = vcmask 519168  }
   0x6   :  { %82 = vmatpush.bf16.msra.mxu0 %v127_v0  ;;  %v125_v2 = vld [vmem:[#allocation2 + $0x8] sm:$0xff]  ;;  %v124_v3 = vld [vmem:[#allocation2] sm:$0xff] }
   0x7   :  { %v123_v4 = vld [vmem:[%s196_s0] sm:$0xff] }
   0x8   :  { %v131_v5 = vld [vmem:[%s198_s2] ss:$0 sm:$0xff] }
   0xa   :  { %83 = vmatpush.bf16.msra.mxu0 %v126_v1 }
   0xe   :  { %84 = vmatpush.bf16.msra.mxu0 %v125_v2 }
  0x12   :  { %85 = vmatpush.bf16.msra.mxu0 %v124_v3 }
  0x15   :  { %122 = vmatmul.msk.bf16.vlgmr.msra.gmra.mxu0 %vm74_vm0, %v123_v4 }
  0x92   :  { %v87_v6 = vpop.f32.mrf.mxu0 }
  0x93   :  { %v88_v7 = vadd.f32 %v131_v5, %v87_v6 }
  0x95   :  { %v92_v8 = vpack.c.bf16 %v88_v7, %v88_v7 }
  0x97   :  { %95 = vst.msk [vmem:[%s199_s3] sm:$0xf] %vm94_vm1, %v92_v8 }
  0x9a   :  { %v89_v9 = vpop.f32.mrf.mxu0 }
  0x9b   :  { %v90_v10 = vadd.f32 %v131_v5, %v89_v9 }
  0x9d   :  { %v93_v11 = vpack.c.bf16 %v90_v10, %v90_v10 }
  0x9f   :  { %96 = vst.msk [vmem:[%s199_s3 + $0x4] sm:$0xf] %vm94_vm1, %v93_v11 }
  0xa0   :  { %101 = vsyncpa [#allocation3], 1 }

// kernel: transformer_forward.35
= control target key start
LH: loop header
LB: loop body
LE: loop exit
PB: predicated region body
PF: predicated region fallthrough
CT: control target
= control target key end

     0   :  { %vm20_vm0 = vcmask 523264   ;;  %v104_v5 = vmov 64.0   ;;  %vm84_vm6 = vcmask 519168   ;;  %s144_s0 = inlined_call_operand.vmem [shape: bf16[16,64], index: 0, kind: input, shape index: {}]   ;;  %s145_s1 = inlined_call_operand.vmem [shape: f32[1,64], index: 1, kind: input, shape index: {}]   ;;  %s146_s2 = inlined_call_operand.vmem [shape: f32[1,64], index: 2, kind: input, shape index: {}]   ;;  %s147_s3 = inlined_call_operand.vmem [shape: bf16[16,64], index: 3, kind: output, shape index: {}]  }
   0x1   :  { %v92_v0 = vld [vmem:[%s144_s0] sm:$0xff]   ;;  %98 = vrcp.f32 %v104_v5 }
   0x2   :  { %v93_v1 = vunpack.c.l.bf16 %v92_v0  ;;  %v94_v3 = vunpack.c.h.bf16 %v92_v0  ;;  %v96_v36 = vld [vmem:[%s145_s1] ss:$0 sm:$0xff] }
   0x3   :  { %v97_v39 = vld [vmem:[%s146_s2] ss:$0 sm:$0xff] }
   0x4   :  { %v21_v2 = vsel %vm20_vm0, %v93_v1, 0.0  ;;  %v24_v4 = vsel %vm20_vm0, %v94_v3, 0.0 }
   0x5   :  { %22 = vadd.xlane.f32.xlu0 %v21_v2 }
   0x7   :  { %v99_v6 = vpop.eup %98 }
   0x8   :  { %v28_v7 = vmul.f32 64.0, %v99_v6  ;;  %vm32_vm1 = vweird.f32 %v99_v6 }
   0xa   :  { %v29_v8 = vsub.f32 1.0, %v28_v7 }
   0xc   :  { %v30_v9 = vmul.f32 %v99_v6, %v29_v8 }
   0xd   :  { %25 = vadd.xlane.f32.xlu0 %v24_v4 }
   0xe   :  { %v31_v10 = vadd.f32 %v99_v6, %v30_v9 }
  0x10   :  { %v33_v11 = vsel %vm32_vm1, %v99_v6, %v31_v10 }
  0x78   :  { %v23_v12 = vpop.xlane.xlu0 %22 }
  0x79   :  { %v34_v13 = vmul.f32 %v33_v11, %v23_v12 }
  0x7b   :  { %v36_v14 = vsub.f32 %v93_v1, %v34_v13 }
  0x7d   :  { %v38_v15 = vmul.f32 %v36_v14, %v36_v14 }
  0x7f   :  { %v40_v16 = vsel %vm20_vm0, %v38_v15, 0.0 }
  0x80   :  { %41 = vadd.xlane.f32.xlu1 %v40_v16  ;;  %v26_v17 = vpop.xlane.xlu0 %25 }
  0x81   :  { %v35_v18 = vmul.f32 %v33_v11, %v26_v17 }
  0x83   :  { %v37_v19 = vsub.f32 %v94_v3, %v35_v18 }
  0x85   :  { %v39_v20 = vmul.f32 %v37_v19, %v37_v19 }
  0x87   :  { %v43_v21 = vsel %vm20_vm0, %v39_v20, 0.0 }
  0x88   :  { %44 = vadd.xlane.f32.xlu1 %v43_v21 }
  0xf3   :  { %v42_v22 = vpop.xlane.xlu1 %41 }
  0xf4   :  { %v46_v23 = vmul.f32 %v42_v22, %v33_v11 }
  0xf6   :  { %v48_v24 = vadd.f32 1e-05, %v46_v23 }
  0xf8   :  { %100 = vrsqrt.f32 %v48_v24  ;;  %vm56_vm3 = vweird.f32 %v48_v24 }
  0xfb   :  { %v45_v25 = vpop.xlane.xlu1 %44 }
  0xfc   :  { %v47_v26 = vmul.f32 %v45_v25, %v33_v11 }
  0xfe   :  { %v101_v27 = vpop.eup %100  ;;  %v49_v28 = vadd.f32 1e-05, %v47_v26 }
  0xff   :  { %v51_v29 = vmul.f32 %v101_v27, %v48_v24  ;;  %vm57_vm2 = vweird.f32 %v101_v27 }
 0x100   :  { %102 = vrsqrt.f32 %v49_v28  ;;  %vm58_vm4 = vmor %vm56_vm3, %vm57_vm2  ;;  %vm66_vm7 = vweird.f32 %v49_v28 }
 0x101   :  { %v52_v30 = vmul.f32 %v101_v27, %v51_v29 }
 0x103   :  { %v53_v31 = vmul.f32 0.5, %v52_v30 }
 0x105   :  { %v54_v32 = vsub.f32 1.5, %v53_v31 }
 0x106   :  { %v103_v33 = vpop.eup %102 }
 0x107   :  { %v55_v34 = vmul.f32 %v101_v27, %v54_v32  ;;  %v61_v35 = vmul.f32 %v103_v33, %v49_v28  ;;  %vm67_vm5 = vweird.f32 %v103_v33 }
 0x108   :  { %vm68_vm8 = vmor %vm66_vm7, %vm67_vm5 }
 0x109   :  { %v59_v37 = vsel %vm58_vm4, %v101_v27, %v55_v34  ;;  %v62_v38 = vmul.f32 %v103_v33, %v61_v35 }
 0x10a   :  { %v70_v40 = vmul.f32 %v59_v37, %v36_v14 }
 0x10b   :  { %v63_v41 = vmul.f32 0.5, %v62_v38 }
 0x10c   :  { %v75_v42 = vmul.f32 %v96_v36, %v70_v40 }
 0x10d   :  { %v64_v43 = vsub.f32 1.5, %v63_v41 }
 0x10e   :  { %v80_v44 = vadd.f32 %v97_v39, %v75_v42 }
 0x10f   :  { %v65_v45 = vmul.f32 %v103_v33, %v64_v43 }
 0x110   :  { %v82_v46 = vpack.c.bf16 %v80_v44, %v80_v44 }
 0x111   :  { %v69_v47 = vsel %vm68_vm8, %v103_v33, %v65_v45 }
 0x112   :  { %85 = vst.msk [vmem:[%s147_s3] sm:$0xf] %vm84_vm6, %v82_v46  ;;  %v71_v48 = vmul.f32 %v69_v47, %v37_v19 }
 0x114   :  { %v76_v49 = vmul.f32 %v96_v36, %v71_v48 }
 0x116   :  { %v81_v50 = vadd.f32 %v97_v39, %v76_v49 }
 0x118   :  { %v83_v51 = vpack.c.bf16 %v81_v50, %v81_v50 }
 0x11a   :  { %86 = vst.msk [vmem:[%s147_s3 + $0x4] sm:$0xf] %vm84_vm6, %v83_v51 }

// kernel: transformer_forward.47
= control target key start
LH: loop header
LB: loop body
LE: loop exit
PB: predicated region body
PF: predicated region fallthrough
CT: control target
= control target key end

     0   :  { %8 = vsyncpa [#allocation3], 0  ;;  %s239_s0 = inlined_call_operand.vmem [shape: bf16[16,64], index: 0, kind: input, shape index: {}]   ;;  %s240_s1 = inlined_call_operand.hbm [shape: bf16[64,64], index: 1, kind: input, shape index: {}]   ;;  %s241_s2 = inlined_call_operand.hbm [shape: f32[1,64], index: 2, kind: input, shape index: {}]   ;;  %s242_s3 = inlined_call_operand.vmem [shape: bf16[16,64], index: 3, kind: output, shape index: {}]  }
   0x1   :  { %s16_s14 = sshll.u32 %s240_s1, 4  ;;  %s17_s14 = int_to_ptr.hbm [resolvable:$true] %s16_s14 }
   0x2   :  { %9 = vsyncpa [#allocation5], 0  ;;  %s200_s15 = smov [#allocation2]   ;;  %s30_s19 = sshll.u32 %s241_s2, 4  ;;  %s31_s19 = int_to_ptr.hbm [resolvable:$true] %s30_s19 }
   0x3   :  { %s18_s16 = sshll.u32 %s200_s15, 4  ;;  %s201_s20 = smov 64   ;;  %s19_s16 = int_to_ptr.vmem [resolvable:$true] %s18_s16 }
   0x4   :  { %s202_s21 = smov 4   ;;  %s203_s22 = smov [#allocation4]  }
   0x5   :  { %24 = dma.hbm_to_vmem [thread:$0]  %s17_s14, 512, %s19_s16, [#allocation3], %s201_s20, %s201_s20, %s202_s21  }
   0x6   :  { %s32_s23 = sshll.u32 %s203_s22, 4  ;;  %s33_s23 = int_to_ptr.vmem [resolvable:$true] %s32_s23 }
   0x7   :  { %35 = dma.hbm_to_vmem [thread:$0]  %s31_s19, 16, %s33_s23, [#allocation5]  }
   0x8   :  { %196 = dma.done.wait [#allocation3], 512  }
   0x9   :  { %197 = vsyncadd [#allocation3], 4294966784 }
   0xa   :  { %198 = dma.done.wait [#allocation5], 16  }
   0xb   :  { %199 = vsyncadd [#allocation5], 4294967280  ;;  %v142_v0 = vld [vmem:[#allocation2 + $0x18] sm:$0xff]  ;;  %v141_v1 = vld [vmem:[#allocation2 + $0x10] sm:$0xff]  ;;  %vm88_vm0 = vcmask 523264   ;;  %vm108_vm1 = vcmask 519168  }
   0xc   :  { %96 = vmatpush.bf16.msra.mxu0 %v142_v0  ;;  %v140_v2 = vld [vmem:[#allocation2 + $0x8] sm:$0xff]  ;;  %v139_v3 = vld [vmem:[#allocation2] sm:$0xff] }
   0xd   :  { %v138_v4 = vld [vmem:[%s239_s0] sm:$0xff] }
   0xe   :  { %v147_v5 = vld [vmem:[#allocation4] ss:$0 sm:$0xff] }
  0x10   :  { %97 = vmatpush.bf16.msra.mxu0 %v141_v1 }
  0x14   :  { %98 = vmatpush.bf16.msra.mxu0 %v140_v2 }
  0x18   :  { %99 = vmatpush.bf16.msra.mxu0 %v139_v3 }
  0x1b   :  { %137 = vmatmul.msk.bf16.vlgmr.msra.gmra.mxu0 %vm88_vm0, %v138_v4 }
  0x98   :  { %v101_v6 = vpop.f32.mrf.mxu0 }
  0x99   :  { %v102_v7 = vadd.f32 %v147_v5, %v101_v6 }
  0x9b   :  { %v106_v8 = vpack.c.bf16 %v102_v7, %v102_v7 }
  0x9d   :  { %109 = vst.msk [vmem:[%s242_s3] sm:$0xf] %vm108_vm1, %v106_v8 }
  0xa0   :  { %v103_v9 = vpop.f32.mrf.mxu0 }
  0xa1   :  { %v104_v10 = vadd.f32 %v147_v5, %v103_v9 }
  0xa3   :  { %v107_v11 = vpack.c.bf16 %v104_v10, %v104_v10 }
  0xa5   :  { %110 = vst.msk [vmem:[%s242_s3 + $0x4] sm:$0xf] %vm108_vm1, %v107_v11 }
  0xa6   :  { %115 = vsyncpa [#allocation3], 1 }
  0xa7   :  { %116 = vsyncpa [#allocation5], 1 }

// kernel: transformer_forward.46
= control target key start
LH: loop header
LB: loop body
LE: loop exit
PB: predicated region body
PF: predicated region fallthrough
CT: control target
= control target key end

     0   :  { %11 = vsyncpa [#allocation3], 0  ;;  %s442_s0 = inlined_call_operand.vmem [shape: bf16[16,64], index: 0, kind: input, shape index: {}]   ;;  %s443_s1 = inlined_call_operand.hbm [shape: bf16[64,64], index: 1, kind: input, shape index: {}]   ;;  %s444_s2 = inlined_call_operand.hbm [shape: f32[1,64], index: 2, kind: input, shape index: {}]   ;;  %s445_s3 = inlined_call_operand.vmem [shape: bf16[16,64], index: 3, kind: input, shape index: {}]   ;;  %s446_s4 = inlined_call_operand.hbm [shape: f32[1,64], index: 4, kind: input, shape index: {}]   ;;  %s447_s5 = inlined_call_operand.hbm [shape: f32[1,64], index: 5, kind: input, shape index: {}]   ;;  %s448_s6 = inlined_call_operand.vmem [shape: bf16[16,64], index: 6, kind: output, shape index: {}]  }
   0x1   :  { %12 = vsyncpa [#allocation5], 0  ;;  %s34_s23 = sshll.u32 %s444_s2, 4  ;;  %s35_s23 = int_to_ptr.hbm [resolvable:$true] %s34_s23 }
   0x2   :  { %13 = vsyncpa [#allocation8], 0  ;;  %s371_s24 = smov [#allocation4]   ;;  %s20_s28 = sshll.u32 %s443_s1, 4  ;;  %s21_s28 = int_to_ptr.hbm [resolvable:$true] %s20_s28 }
   0x3   :  { %s36_s25 = sshll.u32 %s371_s24, 4  ;;  %s372_s29 = smov [#allocation2]   ;;  %s37_s25 = int_to_ptr.vmem [resolvable:$true] %s36_s25 }
   0x4   :  { %39 = dma.hbm_to_vmem [thread:$0]  %s35_s23, 16, %s37_s25, [#allocation5]  }
   0x5   :  { %s22_s30 = sshll.u32 %s372_s29, 4  ;;  %s373_s7 = smov 64   ;;  %s23_s30 = int_to_ptr.vmem [resolvable:$true] %s22_s30 }
   0x6   :  { %s374_s8 = smov 4   ;;  %s47_s2 = sshll.u32 %s446_s4, 4  ;;  %s48_s2 = int_to_ptr.hbm [resolvable:$true] %s47_s2 }
   0x7   :  { %28 = dma.hbm_to_vmem [thread:$0]  %s21_s28, 512, %s23_s30, [#allocation3], %s373_s7, %s373_s7, %s374_s8  }
   0x8   :  { %s375_s11 = smov [#allocation6]   ;;  %s58_s1 = sshll.u32 %s447_s5, 4  ;;  %s59_s1 = int_to_ptr.hbm [resolvable:$true] %s58_s1 }
   0x9   :  { %s49_s12 = sshll.u32 %s375_s11, 4  ;;  %s376_s15 = smov [#allocation7]   ;;  %s50_s12 = int_to_ptr.vmem [resolvable:$true] %s49_s12 }
   0xa   :  { %52 = dma.hbm_to_vmem [thread:$0]  %s48_s2, 16, %s50_s12, [#allocation5]  }
   0xb   :  { %s60_s16 = sshll.u32 %s376_s15, 4  ;;  %s61_s16 = int_to_ptr.vmem [resolvable:$true] %s60_s16 }
   0xc   :  { %63 = dma.hbm_to_vmem [thread:$0]  %s59_s1, 16, %s61_s16, [#allocation8]  }
   0xd   :  { %365 = dma.done.wait [#allocation3], 512  }
   0xe   :  { %366 = vsyncadd [#allocation3], 4294966784 }
   0xf   :  { %367 = dma.done.wait [#allocation5], 32  }
  0x10   :  { %368 = vsyncadd [#allocation5], 4294967264 }
  0x11   :  { %369 = dma.done.wait [#allocation8], 16  }
  0x12   :  { %370 = vsyncadd [#allocation8], 4294967280  ;;  %v248_v0 = vld [vmem:[#allocation2 + $0x18] sm:$0xff]  ;;  %v247_v1 = vld [vmem:[#allocation2 + $0x10] sm:$0xff]  ;;  %vm124_vm0 = vcmask 523264   ;;  %v377_v17 = vmov 64.0  }
  0x13   :  { %132 = vmatpush.bf16.msra.mxu0 %v248_v0  ;;  %v246_v2 = vld [vmem:[#allocation2 + $0x8] sm:$0xff]  ;;  %v245_v3 = vld [vmem:[#allocation2] sm:$0xff]  ;;  %263 = vrcp.f32 %v377_v17  ;;  %vm213_vm6 = vcmask 519168  }
  0x14   :  { %v244_v4 = vld [vmem:[%s442_s0] sm:$0xff] }
  0x15   :  { %v250_v5 = vld [vmem:[%s445_s3] sm:$0xff]  }
  0x16   :  { %v260_v6 = vld [vmem:[#allocation4] ss:$0 sm:$0xff]  ;;  %v251_v7 = vunpack.c.l.bf16 %v250_v5  ;;  %v252_v12 = vunpack.c.h.bf16 %v250_v5  ;;  %v261_v48 = vld [vmem:[#allocation6] ss:$0 sm:$0xff]  ;;  %v262_v51 = vld [vmem:[#allocation7] ss:$0 sm:$0xff] }
  0x17   :  { %133 = vmatpush.bf16.msra.mxu0 %v247_v1 }
  0x19   :  { %v264_v18 = vpop.eup %263 }
  0x1a   :  { %v157_v19 = vmul.f32 64.0, %v264_v18  ;;  %vm161_vm1 = vweird.f32 %v264_v18 }
  0x1b   :  { %134 = vmatpush.bf16.msra.mxu0 %v246_v2 }
  0x1c   :  { %v158_v20 = vsub.f32 1.0, %v157_v19 }
  0x1e   :  { %v159_v21 = vmul.f32 %v264_v18, %v158_v20 }
  0x1f   :  { %135 = vmatpush.bf16.msra.mxu0 %v245_v3 }
  0x20   :  { %v160_v22 = vadd.f32 %v264_v18, %v159_v21 }
  0x22   :  { %243 = vmatmul.msk.bf16.vlgmr.msra.gmra.mxu0 %vm124_vm0, %v244_v4  ;;  %v162_v23 = vsel %vm161_vm1, %v264_v18, %v160_v22 }
  0x9f   :  { %v137_v8 = vpop.f32.mrf.mxu0 }
  0xa0   :  { %v138_v9 = vadd.f32 %v260_v6, %v137_v8 }
  0xa2   :  { %v146_v10 = vadd.f32 %v251_v7, %v138_v9 }
  0xa4   :  { %v150_v11 = vsel %vm124_vm0, %v146_v10, 0.0 }
  0xa5   :  { %151 = vadd.xlane.f32.xlu0 %v150_v11 }
  0xa7   :  { %v139_v13 = vpop.f32.mrf.mxu0 }
  0xa8   :  { %v140_v14 = vadd.f32 %v260_v6, %v139_v13 }
  0xaa   :  { %v147_v15 = vadd.f32 %v252_v12, %v140_v14 }
  0xac   :  { %v153_v16 = vsel %vm124_vm0, %v147_v15, 0.0 }
  0xad   :  { %154 = vadd.xlane.f32.xlu0 %v153_v16 }
 0x118   :  { %v152_v24 = vpop.xlane.xlu0 %151 }
 0x119   :  { %v163_v25 = vmul.f32 %v162_v23, %v152_v24 }
 0x11b   :  { %v165_v26 = vsub.f32 %v146_v10, %v163_v25 }
 0x11d   :  { %v167_v27 = vmul.f32 %v165_v26, %v165_v26 }
 0x11f   :  { %v169_v28 = vsel %vm124_vm0, %v167_v27, 0.0 }
 0x120   :  { %170 = vadd.xlane.f32.xlu1 %v169_v28  ;;  %v155_v29 = vpop.xlane.xlu0 %154 }
 0x121   :  { %v164_v30 = vmul.f32 %v162_v23, %v155_v29 }
 0x123   :  { %v166_v31 = vsub.f32 %v147_v15, %v164_v30 }
 0x125   :  { %v168_v32 = vmul.f32 %v166_v31, %v166_v31 }
 0x127   :  { %v172_v33 = vsel %vm124_vm0, %v168_v32, 0.0 }
 0x128   :  { %173 = vadd.xlane.f32.xlu1 %v172_v33 }
 0x193   :  { %v171_v34 = vpop.xlane.xlu1 %170 }
 0x194   :  { %v175_v35 = vmul.f32 %v171_v34, %v162_v23 }
 0x196   :  { %v177_v36 = vadd.f32 1e-05, %v175_v35 }
 0x198   :  { %265 = vrsqrt.f32 %v177_v36  ;;  %vm185_vm3 = vweird.f32 %v177_v36 }
 0x19b   :  { %v174_v37 = vpop.xlane.xlu1 %173 }
 0x19c   :  { %v176_v38 = vmul.f32 %v174_v37, %v162_v23 }
 0x19e   :  { %v266_v39 = vpop.eup %265  ;;  %v178_v40 = vadd.f32 1e-05, %v176_v38 }
 0x19f   :  { %v180_v41 = vmul.f32 %v266_v39, %v177_v36  ;;  %vm186_vm2 = vweird.f32 %v266_v39 }
 0x1a0   :  { %267 = vrsqrt.f32 %v178_v40  ;;  %vm187_vm4 = vmor %vm185_vm3, %vm186_vm2  ;;  %vm195_vm7 = vweird.f32 %v178_v40 }
 0x1a1   :  { %v181_v42 = vmul.f32 %v266_v39, %v180_v41 }
 0x1a3   :  { %v182_v43 = vmul.f32 0.5, %v181_v42 }
 0x1a5   :  { %v183_v44 = vsub.f32 1.5, %v182_v43 }
 0x1a6   :  { %v268_v45 = vpop.eup %267 }
 0x1a7   :  { %v184_v46 = vmul.f32 %v266_v39, %v183_v44  ;;  %v190_v47 = vmul.f32 %v268_v45, %v178_v40  ;;  %vm196_vm5 = vweird.f32 %v268_v45 }
 0x1a8   :  { %vm197_vm8 = vmor %vm195_vm7, %vm196_vm5 }
 0x1a9   :  { %v188_v49 = vsel %vm187_vm4, %v266_v39, %v184_v46  ;;  %v191_v50 = vmul.f32 %v268_v45, %v190_v47 }
 0x1aa   :  { %v199_v52 = vmul.f32 %v188_v49, %v165_v26 }
 0x1ab   :  { %v192_v53 = vmul.f32 0.5, %v191_v50 }
 0x1ac   :  { %v204_v54 = vmul.f32 %v261_v48, %v199_v52 }
 0x1ad   :  { %v193_v55 = vsub.f32 1.5, %v192_v53 }
 0x1ae   :  { %v209_v56 = vadd.f32 %v262_v51, %v204_v54 }
 0x1af   :  { %v194_v57 = vmul.f32 %v268_v45, %v193_v55 }
 0x1b0   :  { %v211_v58 = vpack.c.bf16 %v209_v56, %v209_v56 }
 0x1b1   :  { %v198_v59 = vsel %vm197_vm8, %v268_v45, %v194_v57 }
 0x1b2   :  { %214 = vst.msk [vmem:[%s448_s6] sm:$0xf] %vm213_vm6, %v211_v58  ;;  %v200_v60 = vmul.f32 %v198_v59, %v166_v31 }
 0x1b4   :  { %v205_v61 = vmul.f32 %v261_v48, %v200_v60 }
 0x1b6   :  { %v210_v62 = vadd.f32 %v262_v51, %v205_v61 }
 0x1b8   :  { %v212_v63 = vpack.c.bf16 %v210_v62, %v210_v62 }
 0x1ba   :  { %215 = vst.msk [vmem:[%s448_s6 + $0x4] sm:$0xf] %vm213_vm6, %v212_v63 }
 0x1bb   :  { %220 = vsyncpa [#allocation3], 1 }
 0x1bc   :  { %221 = vsyncpa [#allocation5], 1 }
 0x1bd   :  { %222 = vsyncpa [#allocation8], 1 }

// kernel: transformer_forward.38
= control target key start
LH: loop header
LB: loop body
LE: loop exit
PB: predicated region body
PF: predicated region fallthrough
CT: control target
= control target key end

     0   :  { %11 = vsyncpa [#allocation3], 0  ;;  %s249_s24 = smov [#allocation2]   ;;  %s250_s26 = smov 64   ;;  %s317_s0 = inlined_call_operand.vmem [shape: bf16[16,64], index: 0, kind: input, shape index: {}]   ;;  %s318_s1 = inlined_call_operand.hbm [shape: bf16[64,64], index: 1, kind: input, shape index: {}]   ;;  %s319_s2 = inlined_call_operand.vmem [shape: f32[1,64], index: 2, kind: input, shape index: {}]   ;;  %s320_s3 = inlined_call_operand.vmem [shape: bf16[16,64], index: 3, kind: input, shape index: {}]   ;;  %s321_s4 = inlined_call_operand.vmem [shape: f32[1,64], index: 4, kind: input, shape index: {}]   ;;  %s322_s5 = inlined_call_operand.vmem [shape: f32[1,64], index: 5, kind: input, shape index: {}]   ;;  %s323_s6 = inlined_call_operand.vmem [shape: bf16[16,64], index: 6, kind: output, shape index: {}]  }
   0x1   :  { %s18_s23 = sshll.u32 %s318_s1, 4  ;;  %s20_s25 = sshll.u32 %s249_s24, 4  ;;  %s19_s23 = int_to_ptr.hbm [resolvable:$true] %s18_s23  ;;  %s21_s25 = int_to_ptr.vmem [resolvable:$true] %s20_s25 }
   0x2   :  { %s251_s27 = smov 4  }
   0x3   :  { %26 = dma.hbm_to_vmem [thread:$0]  %s19_s23, 512, %s21_s25, [#allocation3], %s250_s26, %s250_s26, %s251_s27  }
   0x4   :  { %247 = dma.done.wait [#allocation3], 512  }
   0x5   :  { %248 = vsyncadd [#allocation3], 4294966784  ;;  %v205_v0 = vld [vmem:[#allocation2 + $0x18] sm:$0xff]  ;;  %v204_v1 = vld [vmem:[#allocation2 + $0x10] sm:$0xff]  ;;  %vm83_vm0 = vcmask 523264   ;;  %v252_v17 = vmov 64.0  }
   0x6   :  { %91 = vmatpush.bf16.msra.mxu0 %v205_v0  ;;  %v203_v2 = vld [vmem:[#allocation2 + $0x8] sm:$0xff]  ;;  %v202_v3 = vld [vmem:[#allocation2] sm:$0xff]  ;;  %217 = vrcp.f32 %v252_v17  ;;  %vm172_vm6 = vcmask 519168  }
   0x7   :  { %v201_v4 = vld [vmem:[%s317_s0] sm:$0xff] }
   0x8   :  { %v207_v5 = vld [vmem:[%s320_s3] sm:$0xff]  }
   0x9   :  { %v214_v6 = vld [vmem:[%s319_s2] ss:$0 sm:$0xff]  ;;  %v208_v7 = vunpack.c.l.bf16 %v207_v5  ;;  %v209_v12 = vunpack.c.h.bf16 %v207_v5 }
   0xa   :  { %92 = vmatpush.bf16.msra.mxu0 %v204_v1  ;;  %v215_v48 = vld [vmem:[%s321_s4] ss:$0 sm:$0xff] }
   0xb   :  { %v216_v51 = vld [vmem:[%s322_s5] ss:$0 sm:$0xff] }
   0xc   :  { %v218_v18 = vpop.eup %217 }
   0xd   :  { %v116_v19 = vmul.f32 64.0, %v218_v18  ;;  %vm120_vm1 = vweird.f32 %v218_v18 }
   0xe   :  { %93 = vmatpush.bf16.msra.mxu0 %v203_v2 }
   0xf   :  { %v117_v20 = vsub.f32 1.0, %v116_v19 }
  0x11   :  { %v118_v21 = vmul.f32 %v218_v18, %v117_v20 }
  0x12   :  { %94 = vmatpush.bf16.msra.mxu0 %v202_v3 }
  0x13   :  { %v119_v22 = vadd.f32 %v218_v18, %v118_v21 }
  0x15   :  { %200 = vmatmul.msk.bf16.vlgmr.msra.gmra.mxu0 %vm83_vm0, %v201_v4  ;;  %v121_v23 = vsel %vm120_vm1, %v218_v18, %v119_v22 }
  0x92   :  { %v96_v8 = vpop.f32.mrf.mxu0 }
  0x93   :  { %v97_v9 = vadd.f32 %v214_v6, %v96_v8 }
  0x95   :  { %v105_v10 = vadd.f32 %v208_v7, %v97_v9 }
  0x97   :  { %v109_v11 = vsel %vm83_vm0, %v105_v10, 0.0 }
  0x98   :  { %110 = vadd.xlane.f32.xlu0 %v109_v11 }
  0x9a   :  { %v98_v13 = vpop.f32.mrf.mxu0 }
  0x9b   :  { %v99_v14 = vadd.f32 %v214_v6, %v98_v13 }
  0x9d   :  { %v106_v15 = vadd.f32 %v209_v12, %v99_v14 }
  0x9f   :  { %v112_v16 = vsel %vm83_vm0, %v106_v15, 0.0 }
  0xa0   :  { %113 = vadd.xlane.f32.xlu0 %v112_v16 }
 0x10b   :  { %v111_v24 = vpop.xlane.xlu0 %110 }
 0x10c   :  { %v122_v25 = vmul.f32 %v121_v23, %v111_v24 }
 0x10e   :  { %v124_v26 = vsub.f32 %v105_v10, %v122_v25 }
 0x110   :  { %v126_v27 = vmul.f32 %v124_v26, %v124_v26 }
 0x112   :  { %v128_v28 = vsel %vm83_vm0, %v126_v27, 0.0 }
 0x113   :  { %129 = vadd.xlane.f32.xlu1 %v128_v28  ;;  %v114_v29 = vpop.xlane.xlu0 %113 }
 0x114   :  { %v123_v30 = vmul.f32 %v121_v23, %v114_v29 }
 0x116   :  { %v125_v31 = vsub.f32 %v106_v15, %v123_v30 }
 0x118   :  { %v127_v32 = vmul.f32 %v125_v31, %v125_v31 }
 0x11a   :  { %v131_v33 = vsel %vm83_vm0, %v127_v32, 0.0 }
 0x11b   :  { %132 = vadd.xlane.f32.xlu1 %v131_v33 }
 0x186   :  { %v130_v34 = vpop.xlane.xlu1 %129 }
 0x187   :  { %v134_v35 = vmul.f32 %v130_v34, %v121_v23 }
 0x189   :  { %v136_v36 = vadd.f32 1e-05, %v134_v35 }
 0x18b   :  { %219 = vrsqrt.f32 %v136_v36  ;;  %vm144_vm3 = vweird.f32 %v136_v36 }
 0x18e   :  { %v133_v37 = vpop.xlane.xlu1 %132 }
 0x18f   :  { %v135_v38 = vmul.f32 %v133_v37, %v121_v23 }
 0x191   :  { %v220_v39 = vpop.eup %219  ;;  %v137_v40 = vadd.f32 1e-05, %v135_v38 }
 0x192   :  { %v139_v41 = vmul.f32 %v220_v39, %v136_v36  ;;  %vm145_vm2 = vweird.f32 %v220_v39 }
 0x193   :  { %221 = vrsqrt.f32 %v137_v40  ;;  %vm146_vm4 = vmor %vm144_vm3, %vm145_vm2  ;;  %vm154_vm7 = vweird.f32 %v137_v40 }
 0x194   :  { %v140_v42 = vmul.f32 %v220_v39, %v139_v41 }
 0x196   :  { %v141_v43 = vmul.f32 0.5, %v140_v42 }
 0x198   :  { %v142_v44 = vsub.f32 1.5, %v141_v43 }
 0x199   :  { %v222_v45 = vpop.eup %221 }
 0x19a   :  { %v143_v46 = vmul.f32 %v220_v39, %v142_v44  ;;  %v149_v47 = vmul.f32 %v222_v45, %v137_v40  ;;  %vm155_vm5 = vweird.f32 %v222_v45 }
 0x19b   :  { %vm156_vm8 = vmor %vm154_vm7, %vm155_vm5 }
 0x19c   :  { %v147_v49 = vsel %vm146_vm4, %v220_v39, %v143_v46  ;;  %v150_v50 = vmul.f32 %v222_v45, %v149_v47 }
 0x19d   :  { %v158_v52 = vmul.f32 %v147_v49, %v124_v26 }
 0x19e   :  { %v151_v53 = vmul.f32 0.5, %v150_v50 }
 0x19f   :  { %v163_v54 = vmul.f32 %v215_v48, %v158_v52 }
 0x1a0   :  { %v152_v55 = vsub.f32 1.5, %v151_v53 }
 0x1a1   :  { %v168_v56 = vadd.f32 %v216_v51, %v163_v54 }
 0x1a2   :  { %v153_v57 = vmul.f32 %v222_v45, %v152_v55 }
 0x1a3   :  { %v170_v58 = vpack.c.bf16 %v168_v56, %v168_v56 }
 0x1a4   :  { %v157_v59 = vsel %vm156_vm8, %v222_v45, %v153_v57 }
 0x1a5   :  { %173 = vst.msk [vmem:[%s323_s6] sm:$0xf] %vm172_vm6, %v170_v58  ;;  %v159_v60 = vmul.f32 %v157_v59, %v125_v31 }
 0x1a7   :  { %v164_v61 = vmul.f32 %v215_v48, %v159_v60 }
 0x1a9   :  { %v169_v62 = vadd.f32 %v216_v51, %v164_v61 }
 0x1ab   :  { %v171_v63 = vpack.c.bf16 %v169_v62, %v169_v62 }
 0x1ad   :  { %174 = vst.msk [vmem:[%s323_s6 + $0x4] sm:$0xf] %vm172_vm6, %v171_v63 }
 0x1ae   :  { %179 = vsyncpa [#allocation3], 1 }

// kernel: transformer_forward.48
= control target key start
LH: loop header
LB: loop body
LE: loop exit
PB: predicated region body
PF: predicated region fallthrough
CT: control target
= control target key end

     0   :  { %10 = vsyncpa [#allocation3], 0  ;;  %s270_s0 = inlined_call_operand.vmem [shape: bf16[16,64], index: 0, kind: input, shape index: {}]   ;;  %s271_s1 = inlined_call_operand.hbm [shape: bf16[64,128], index: 1, kind: input, shape index: {}]   ;;  %s272_s2 = inlined_call_operand.hbm [shape: f32[1,128], index: 2, kind: input, shape index: {}]   ;;  %s273_s3 = inlined_call_operand.vmem [shape: bf16[16,64], index: 3, kind: output, shape index: {0}]   ;;  %s274_s4 = inlined_call_operand.vmem [shape: bf16[16,64], index: 4, kind: output, shape index: {1}]  }
   0x1   :  { %s18_s17 = sshll.u32 %s271_s1, 4  ;;  %s19_s17 = int_to_ptr.hbm [resolvable:$true] %s18_s17 }
   0x2   :  { %11 = vsyncpa [#allocation5], 0  ;;  %s216_s18 = smov [#allocation2]   ;;  %s32_s22 = sshll.u32 %s272_s2, 4  ;;  %s33_s22 = int_to_ptr.hbm [resolvable:$true] %s32_s22 }
   0x3   :  { %s20_s19 = sshll.u32 %s216_s18, 4  ;;  %s217_s23 = smov 64   ;;  %s21_s19 = int_to_ptr.vmem [resolvable:$true] %s20_s19 }
   0x4   :  { %s218_s24 = smov 4   ;;  %s219_s25 = smov [#allocation4]  }
   0x5   :  { %26 = dma.hbm_to_vmem [thread:$0]  %s19_s17, 512, %s21_s19, [#allocation3], %s217_s23, %s217_s23, %s218_s24  }
   0x6   :  { %s34_s26 = sshll.u32 %s219_s25, 4  ;;  %s35_s26 = int_to_ptr.vmem [resolvable:$true] %s34_s26 }
   0x7   :  { %37 = dma.hbm_to_vmem [thread:$0]  %s33_s22, 16, %s35_s26, [#allocation5]  }
   0x8   :  { %212 = dma.done.wait [#allocation3], 512  }
   0x9   :  { %213 = vsyncadd [#allocation3], 4294966784 }
   0xa   :  { %214 = dma.done.wait [#allocation5], 16  }
   0xb   :  { %215 = vsyncadd [#allocation5], 4294967280  ;;  %v158_v0 = vld [vmem:[#allocation2 + $0x18] sm:$0xff]  ;;  %v157_v1 = vld [vmem:[#allocation2 + $0x10] sm:$0xff]  ;;  %vm90_vm0 = vcmask 523264   ;;  %vm110_vm1 = vcmask 519168  }
   0xc   :  { %98 = vmatpush.bf16.msra.mxu0 %v158_v0  ;;  %v156_v2 = vld [vmem:[#allocation2 + $0x8] sm:$0xff]  ;;  %v155_v3 = vld [vmem:[#allocation2] sm:$0xff] }
   0xd   :  { %v154_v4 = vld [vmem:[%s270_s0] sm:$0xff] }
   0xe   :  { %v163_v5 = vld [vmem:[#allocation4] ss:$0 sm:$0xff] }
  0x10   :  { %99 = vmatpush.bf16.msra.mxu0 %v157_v1 }
  0x14   :  { %100 = vmatpush.bf16.msra.mxu0 %v156_v2 }
  0x18   :  { %101 = vmatpush.bf16.msra.mxu0 %v155_v3 }
  0x1b   :  { %153 = vmatmul.msk.bf16.vlgmr.msra.gmra.mxu0 %vm90_vm0, %v154_v4 }
  0x98   :  { %v103_v6 = vpop.f32.mrf.mxu0 }
  0x99   :  { %v104_v7 = vadd.f32 %v163_v5, %v103_v6 }
  0x9b   :  { %v108_v8 = vpack.c.bf16 %v104_v7, %v104_v7 }
  0x9d   :  { %111 = vst.msk [vmem:[%s273_s3] sm:$0xf] %vm110_vm1, %v108_v8  ;;  %115 = vrot.lane.b32.xlu0 %v108_v8, %s217_s23 }
  0xa0   :  { %v105_v9 = vpop.f32.mrf.mxu0 }
  0xa1   :  { %v106_v10 = vadd.f32 %v163_v5, %v105_v9 }
  0xa3   :  { %v109_v11 = vpack.c.bf16 %v106_v10, %v106_v10 }
  0xa5   :  { %112 = vst.msk [vmem:[%s273_s3 + $0x4] sm:$0xf] %vm110_vm1, %v109_v11  ;;  %117 = vrot.lane.b32.xlu0 %v109_v11, %s217_s23 }
 0x10f   :  { %v116_v12 = vpop.permute.xlu0 %115 }
 0x110   :  { %121 = vst.msk [vmem:[%s274_s4] sm:$0xf] %vm110_vm1, %v116_v12 }
 0x117   :  { %v118_v13 = vpop.permute.xlu0 %117 }
 0x118   :  { %122 = vst.msk [vmem:[%s274_s4 + $0x4] sm:$0xf] %vm110_vm1, %v118_v13 }
 0x119   :  { %131 = vsyncpa [#allocation3], 1 }
 0x11a   :  { %132 = vsyncpa [#allocation5], 1 }

// kernel: transformer_forward.53
= control target key start
LH: loop header
LB: loop body
LE: loop exit
PB: predicated region body
PF: predicated region fallthrough
CT: control target
= control target key end

     0   :  { %vm17_vm0 = vcmask 523264   ;;  %s220_s0 = inlined_call_operand.vmem [shape: bf16[16,64], index: 0, kind: input, shape index: {}]   ;;  %s221_s1 = inlined_call_operand.vmem [shape: bf16[64,64], index: 1, kind: input, shape index: {}]   ;;  %s222_s2 = inlined_call_operand.hbm [shape: f32[16,64], index: 2, kind: output, shape index: {}]  }
   0x1   :  { %v141_v0 = vld [vmem:[%s221_s1 + $0x18] sm:$0xff] }
   0x2   :  { %7 = vsyncpa [#allocation4], 0  ;;  %v71_v1 = vsel %vm17_vm0, %v141_v0, 0  ;;  %v172_v2 = vmov 0.0   ;;  %v140_v3 = vld [vmem:[%s221_s1 + $0x10] sm:$0xff]  ;;  %v139_v5 = vld [vmem:[%s221_s1 + $0x8] sm:$0xff] }
   0x3   :  { %77 = vmatpush.bf16.xpose.msra.mxu0 %v71_v1  ;;  %18 = vst.msk [vmem:[#allocation2] sm:$0xff] %vm17_vm0, %v172_v2  ;;  %v68_v4 = vsel %vm17_vm0, %v140_v3, 0  ;;  %v65_v6 = vsel %vm17_vm0, %v139_v5, 0  ;;  %v138_v7 = vld [vmem:[%s221_s1] sm:$0xff]  ;;  %s173_s1 = smov [#allocation3]   ;;  %s174_s22 = smov 128  }
   0x4   :  { %19 = vst.msk [vmem:[#allocation2 + $0x8] sm:$0xff] %vm17_vm0, %v172_v2  ;;  %v62_v8 = vsel %vm17_vm0, %v138_v7, 0  ;;  %v137_v9 = vld [vmem:[%s220_s0] sm:$0xff]  ;;  %s102_s19 = sshll.u32 %s173_s1, 4  ;;  %s104_s0 = sshll.u32 %s222_s2, 4  ;;  %s103_s19 = int_to_ptr.vmem [resolvable:$true] %s102_s19  ;;  %s105_s0 = int_to_ptr.hbm [resolvable:$true] %s104_s0 }
   0x5   :  { %s175_s23 = smov 8  }
   0xa   :  { %v20_v10 = vld [vmem:[#allocation2] sm:$0xff] }
   0xb   :  { %78 = vmatpush.bf16.xpose.msra.mxu0 %v68_v4  ;;  %v21_v13 = vld [vmem:[#allocation2 + $0x8] sm:$0xff] }
  0x13   :  { %79 = vmatpush.bf16.xpose.msra.mxu0 %v65_v6 }
  0x1b   :  { %80 = vmatpush.bf16.xpose.msra.mxu0 %v62_v8 }
  0x22   :  { %136 = vmatmul.msk.bf16.vlgmr.msra.gmra.mxu0 %vm17_vm0, %v137_v9 }
  0x9f   :  { %v82_v11 = vpop.f32.mrf.mxu0 }
  0xa0   :  { %v87_v12 = vadd.f32 %v82_v11, %v20_v10 }
  0xa2   :  { %89 = vst.msk [vmem:[#allocation2] sm:$0xff] %vm17_vm0, %v87_v12 }
  0xa7   :  { %v84_v14 = vpop.f32.mrf.mxu0 }
  0xa8   :  { %v88_v15 = vadd.f32 %v84_v14, %v21_v13 }
  0xa9   :  { %v94_v16 = vld [vmem:[#allocation2] sm:$0xff] }
  0xaa   :  { %90 = vst.msk [vmem:[#allocation2 + $0x8] sm:$0xff] %vm17_vm0, %v88_v15 }
  0xab   :  { %96 = vst.msk [vmem:[#allocation3] sm:$0xff] %vm17_vm0, %v94_v16 }
  0xb1   :  { %v95_v17 = vld [vmem:[#allocation2 + $0x8] sm:$0xff] }
  0xb2   :  { %97 = vst.msk [vmem:[#allocation3 + $0x8] sm:$0xff] %vm17_vm0, %v95_v17 }
  0xb3   :  { %110 = dma.vmem_to_hbm [thread:$0]  %s103_s19, 256, %s105_s0, [#allocation4], %s174_s22, %s174_s22, %s175_s23  }
  0xb4   :  { %170 = dma.done.wait [#allocation4], 256  }
  0xb5   :  { %171 = vsyncadd [#allocation4], 4294967040 }
  0xb6   :  { %115 = vsyncpa [#allocation4], 1 }

</bundles_post_ra>
